<compile_context>
chip_gen: v6e
topology: v6e:2x2x1
jax: 0.10.0
libtpu: 0.0.40
codegen_flags: <defaults>
</compile_context>

<pallas_src>
import functools

import jax
import jax.numpy as jnp
from jax import lax
from jax.experimental import pallas as pl
from jax.experimental.pallas import tpu as pltpu

H1 = 28      # conv1 spatial size (MNIST)
C1 = 16      # conv1 out channels
H2 = 14      # conv2 spatial size (after pool1)
C2 = 32      # conv2 out channels
H3 = 7       # spatial size after pool2
HALF = 256   # lane width of each pool-parity half (>= 14*16 = 7*32 = 224)
NPAD = 128   # fc output lanes (10 real logits, padded for a lane-dense store)
NCLS = 10


def _fused_cnn_kernel(x_ref, m1_ref, b1_ref, m2_ref, b2_ref, wfc_ref, bfc_ref,
                      o_ref, p1_ref, p2_ref, acc1_ref, acc2_ref, f2_ref, *, bt):
    """Whole CNN forward for a tile of `bt` images.

    x_ref   : (bt, 28, 28)    input images (single channel squeezed)
    m1_ref  : (3, 28, 512)    conv1 banded weights, one (K=28, N=512) matrix per kh
    b1_ref  : (1, 512)        conv1 bias broadcast over the conv1 column layout
    m2_ref  : (3, 256, 512)   conv2 banded weights, one (K=256, N=512) matrix per kh
    b2_ref  : (1, 512)        conv2 bias broadcast over the conv2 column layout
    wfc_ref : (7, 256, 128)   fc weights split per spatial row h (NHWC order, N->128)
    bfc_ref : (1, 128)
    o_ref   : (bt, 128)       logits (lanes [0,10) valid)
    p1_ref  : (bt, 30, 28)    VMEM scratch: H-padded conv1 input
    p2_ref  : (bt, 16, 256)   VMEM scratch: H-padded conv2 input, lane = w*16+ci
    acc1_ref: (bt*28, 512)    VMEM scratch: conv1 pre-pool accumulator
    acc2_ref: (bt*14, 512)    VMEM scratch: conv2 pre-pool accumulator
    f2_ref  : (bt, 7, 256)    VMEM scratch: pooled conv2 features, lane = w*32+co
    """
    f32 = jnp.float32

    # ---- conv1 (3x3 'same', 1 -> 16) + ReLU + 2x2 max-pool -------------------
    p1_ref[...] = jnp.zeros_like(p1_ref)                 # zero H-padding rows
    p1_ref[:, 1:H1 + 1, :] = x_ref[...]
    for kh in range(3):                                  # kh tap = sublane slice; kw
        xk = p1_ref[:, kh:kh + H1, :].reshape(bt * H1, H1)   # taps + W-pad in m1
        part = jnp.dot(xk, m1_ref[kh], preferred_element_type=f32)
        if kh == 0:
            acc1_ref[...] = part
        else:
            acc1_ref[...] += part
    y1 = jnp.maximum(acc1_ref[...] + b1_ref[...], 0.0)        # (bt*28, 512)
    w1max = jnp.maximum(y1[:, :HALF], y1[:, HALF:])           # pool over W parity
    pool1 = jnp.max(w1max.reshape(bt * H2, 2, HALF), axis=1)  # pool over H pairs
    # pool1: (bt*14, 256), lane = w*16 + c  (lanes [224,256) are zero)

    # ---- conv2 (3x3 'same', 16 -> 32) + ReLU + 2x2 max-pool ------------------
    p2_ref[...] = jnp.zeros_like(p2_ref)
    p2_ref[:, 1:H2 + 1, :] = pool1.reshape(bt, H2, HALF)
    for kh in range(3):
        xk = p2_ref[:, kh:kh + H2, :].reshape(bt * H2, HALF)
        part = jnp.dot(xk, m2_ref[kh], preferred_element_type=f32)
        if kh == 0:
            acc2_ref[...] = part
        else:
            acc2_ref[...] += part
    y2 = jnp.maximum(acc2_ref[...] + b2_ref[...], 0.0)        # (bt*14, 512)
    w2max = jnp.maximum(y2[:, :HALF], y2[:, HALF:])
    pool2 = jnp.max(w2max.reshape(bt * H3, 2, HALF), axis=1)  # (bt*7, 256)

    # ---- fc: logits[b, n] = sum_h f2[b, h, :] @ Wfc[h] + bias ----------------
    f2_ref[...] = pool2.reshape(bt, H3, HALF)
    logits = jnp.dot(f2_ref[:, 0, :], wfc_ref[0], preferred_element_type=f32)
    for h in range(1, H3):
        logits += jnp.dot(f2_ref[:, h, :], wfc_ref[h], preferred_element_type=f32)
    o_ref[...] = logits + bfc_ref[...]


def _band_weights(w_hwio, width, k_rows, half):
    """Banded per-kh weight matrices for a 3x3 'same' conv computed as three
    matmuls over a lane-dense (row = image row, lane = w*Cin + ci) activation.

    Columns are laid out as  wp*half + w2*Cout + co  (w = 2*w2 + wp), so the
    following 2x2 max-pool's W reduction is max(cols[:half], cols[half:]).
    W-direction zero padding is folded into the band; rows/cols are zero-padded
    up to (k_rows, 2*half)."""
    kh_, kw_, cin, cout = w_hwio.shape
    w2cnt = width // 2
    pos = jnp.arange(width)
    # sel[kw, w_in, w] = 1  iff  w_in == w + kw - 1  (zero 'same' padding in W)
    sel = (pos[None, :, None] ==
           pos[None, None, :] + jnp.arange(kw_)[:, None, None] - 1)
    sel = sel.astype(w_hwio.dtype)
    band = jnp.einsum("kxw,hkio->hxiwo", sel, w_hwio)          # (3, W, Cin, W, Cout)
    band = band.reshape(kh_, width * cin, w2cnt, 2, cout)       # split w -> (w2, wp)
    band = jnp.transpose(band, (0, 1, 3, 2, 4))                 # (.., wp, w2, co)
    band = band.reshape(kh_, width * cin, 2, w2cnt * cout)
    band = jnp.pad(band, ((0, 0), (0, k_rows - width * cin),
                          (0, 0), (0, half - w2cnt * cout)))
    return band.reshape(kh_, k_rows, 2 * half)


def _pool_bias(b, w2cnt, half):
    """Bias broadcast over the (wp, w2, co) conv-output column layout."""
    v = jnp.pad(jnp.tile(b, w2cnt), (0, half - w2cnt * b.shape[0]))
    return jnp.tile(v, 2).reshape(1, 2 * half)


def _fc_weights(wfc, bfc):
    """Permute fc rows from PyTorch's NCHW flatten order (c*49 + h*7 + w) to the
    kernel's per-h NHWC layout (h, w*32 + c); pad K per row to 256, N to 128."""
    n = wfc.shape[1]
    w_nhwc = jnp.transpose(wfc.reshape(C2, H3, H3, n), (1, 2, 0, 3))   # [h, w, c, n]
    w_nhwc = w_nhwc.reshape(H3, H3 * C2, n)                            # [h, w*32+c, n]
    w_p = jnp.pad(w_nhwc, ((0, 0), (0, HALF - H3 * C2), (0, NPAD - n)))
    b_p = jnp.pad(bfc, (0, NPAD - n)).reshape(1, NPAD)
    return w_p, b_p


@jax.jit
def cnn_forward(x_nchw, params):
    """Reproduces CNN.forward(x): x is NCHW (B, 1, 28, 28) -> logits (B, 10)."""
    w1, b1, w2, b2, wfc, bfc = params
    B = x_nchw.shape[0]
    bt = 8 if B % 8 == 0 else B            # batch tile folded into the matmul M dim

    x = x_nchw[:, 0]                                  # (B, 28, 28); Cin == 1
    m1 = _band_weights(w1, H1, H1, HALF)              # (3, 28, 512)
    m2 = _band_weights(w2, H2, HALF, HALF)            # (3, 256, 512)
    b1l = _pool_bias(b1, H2, HALF)                    # (1, 512)
    b2l = _pool_bias(b2, H3, HALF)                    # (1, 512)
    wfc_p, bfc_p = _fc_weights(wfc, bfc)              # (7, 256, 128), (1, 128)

    kernel = functools.partial(_fused_cnn_kernel, bt=bt)
    logits_pad = pl.pallas_call(
        kernel,
        out_shape=jax.ShapeDtypeStruct((B, NPAD), jnp.float32),
        grid=(B // bt,),
        in_specs=[
            pl.BlockSpec((bt, H1, H1), lambda i: (i, 0, 0)),
            pl.BlockSpec((3, H1, 2 * HALF), lambda i: (0, 0, 0)),
            pl.BlockSpec((1, 2 * HALF), lambda i: (0, 0)),
            pl.BlockSpec((3, HALF, 2 * HALF), lambda i: (0, 0, 0)),
            pl.BlockSpec((1, 2 * HALF), lambda i: (0, 0)),
            pl.BlockSpec((H3, HALF, NPAD), lambda i: (0, 0, 0)),
            pl.BlockSpec((1, NPAD), lambda i: (0, 0)),
        ],
        out_specs=pl.BlockSpec((bt, NPAD), lambda i: (i, 0)),
        scratch_shapes=[
            pltpu.VMEM((bt, H1 + 2, H1), jnp.float32),     # H-padded conv1 input
            pltpu.VMEM((bt, H2 + 2, HALF), jnp.float32),   # H-padded conv2 input
            pltpu.VMEM((bt * H1, 2 * HALF), jnp.float32),  # conv1 accumulator
            pltpu.VMEM((bt * H2, 2 * HALF), jnp.float32),  # conv2 accumulator
            pltpu.VMEM((bt, H3, HALF), jnp.float32),       # pooled conv2 features
        ],
        compiler_params=pltpu.CompilerParams(
            dimension_semantics=("parallel",)),   # v7x: shard batch tiles across TCs
    )(x, m1, b1l, m2, b2l, wfc_p, bfc_p)
    return logits_pad[:, :NCLS]


def init_params(key):
    """Deterministic synthetic parameters matching the nn.Module shapes."""
    k1, k2, k3 = jax.random.split(key, 3)
    w1 = 0.1 * jax.random.normal(k1, (3, 3, 1, C1), jnp.float32)        # conv1, HWIO
    b1 = 0.01 * jnp.arange(C1, dtype=jnp.float32)
    w2 = 0.1 * jax.random.normal(k2, (3, 3, C1, C2), jnp.float32)       # conv2, HWIO
    b2 = 0.01 * jnp.arange(C2, dtype=jnp.float32)
    wfc = 0.05 * jax.random.normal(k3, (H3 * H3 * C2, NCLS), jnp.float32)
    bfc = 0.01 * jnp.arange(NCLS, dtype=jnp.float32)
    return (w1, b1, w2, b2, wfc, bfc)


def cnn_reference(x_nchw, params):
    """Pure-JAX reference with identical semantics (for validation)."""
    w1, b1, w2, b2, wfc, bfc = params

    def block(x, w_hwio, b):
        w_oihw = jnp.transpose(w_hwio, (3, 2, 0, 1))
        y = lax.conv_general_dilated(x, w_oihw, (1, 1), "SAME",
                                     dimension_numbers=("NCHW", "OIHW", "NCHW"))
        y = jnp.maximum(y + b[None, :, None, None], 0.0)
        return lax.reduce_window(y, -jnp.inf, lax.max,
                                 (1, 1, 2, 2), (1, 1, 2, 2), "VALID")

    y = block(x_nchw, w1, b1)
    y = block(y, w2, b2)
    y = y.reshape(y.shape[0], -1)           # PyTorch view(B, -1): NCHW flatten
    return y @ wfc + bfc


if __name__ == "__main__":
    key = jax.random.PRNGKey(0)
    kx, kp = jax.random.split(key)
    # MNIST-sized input implied by the module (fc expects 7*7*32 features).
    x = jax.random.normal(kx, (2, 1, 28, 28), jnp.float32)   # NCHW
    params = init_params(kp)

    out = jax.block_until_ready(cnn_forward(x, params))
    ref = jax.block_until_ready(cnn_reference(x, params))

    assert out.shape == (2, NCLS)
    assert jnp.allclose(out, ref, rtol=1e-3, atol=1e-3), "Pallas CNN mismatch vs reference"
    print("KERNEL_OK")
</pallas_src>

<mosaic_0001>
module attributes {stable_mosaic.version = 11 : i64} {
  func.func @_fused_cnn_kernel(%arg0: i32, %arg1: memref<2x28x28xf32, #tpu.memory_space<vmem>>, %arg2: memref<3x28x512xf32, #tpu.memory_space<vmem>>, %arg3: memref<1x512xf32, #tpu.memory_space<vmem>>, %arg4: memref<3x256x512xf32, #tpu.memory_space<vmem>>, %arg5: memref<1x512xf32, #tpu.memory_space<vmem>>, %arg6: memref<7x256x128xf32, #tpu.memory_space<vmem>>, %arg7: memref<1x128xf32, #tpu.memory_space<vmem>>, %arg8: memref<2x128xf32, #tpu.memory_space<vmem>>, %arg9: memref<2x30x28xf32, #tpu.memory_space<vmem>>, %arg10: memref<2x16x256xf32, #tpu.memory_space<vmem>>, %arg11: memref<56x512xf32, #tpu.memory_space<vmem>>, %arg12: memref<28x512xf32, #tpu.memory_space<vmem>>, %arg13: memref<2x7x256xf32, #tpu.memory_space<vmem>>) attributes {dimension_semantics = [#tpu.dimension_semantics<parallel>], iteration_bounds = array<i64: 1>, scalar_prefetch = 0 : i64, scratch_operands = 5 : i64, tpu.core_type = #tpu.core_type<tc>, window_params = [{transform_indices = @transform_0, window_bounds = array<i64: 2, 28, 28>}, {pipeline_mode = #tpu.pipeline_mode<synchronous>, transform_indices = @transform_1, window_bounds = array<i64: 3, 28, 512>}, {pipeline_mode = #tpu.pipeline_mode<synchronous>, transform_indices = @transform_2, window_bounds = array<i64: 1, 512>}, {pipeline_mode = #tpu.pipeline_mode<synchronous>, transform_indices = @transform_3, window_bounds = array<i64: 3, 256, 512>}, {pipeline_mode = #tpu.pipeline_mode<synchronous>, transform_indices = @transform_4, window_bounds = array<i64: 1, 512>}, {pipeline_mode = #tpu.pipeline_mode<synchronous>, transform_indices = @transform_5, window_bounds = array<i64: 7, 256, 128>}, {pipeline_mode = #tpu.pipeline_mode<synchronous>, transform_indices = @transform_6, window_bounds = array<i64: 1, 128>}, {transform_indices = @transform_7, window_bounds = array<i64: 2, 128>}]} {
    %cst = arith.constant 0.000000e+00 : f32
    %0 = vector.broadcast %cst : f32 to vector<2x30x28xf32>
    %c0 = arith.constant 0 : index
    %c0_0 = arith.constant 0 : index
    %c0_1 = arith.constant 0 : index
    %1 = vector.load %arg9[%c0, %c0_0, %c0_1] : memref<2x30x28xf32, #tpu.memory_space<vmem>>, vector<2x30x28xf32>
    tpu.vector_store %arg9[%c0, %c0_0, %c0_1], %0 {strides = array<i32>} : memref<2x30x28xf32, #tpu.memory_space<vmem>>, vector<2x30x28xf32>,
    %c0_2 = arith.constant 0 : index
    %c0_3 = arith.constant 0 : index
    %c0_4 = arith.constant 0 : index
    %2 = vector.load %arg1[%c0_2, %c0_3, %c0_4] : memref<2x28x28xf32, #tpu.memory_space<vmem>>, vector<2x28x28xf32>
    %c0_5 = arith.constant 0 : index
    %c1 = arith.constant 1 : index
    %c0_6 = arith.constant 0 : index
    %3 = vector.load %arg9[%c0_5, %c1, %c0_6] : memref<2x30x28xf32, #tpu.memory_space<vmem>>, vector<2x28x28xf32>
    tpu.vector_store %arg9[%c0_5, %c1, %c0_6], %2 {strides = array<i32>} : memref<2x30x28xf32, #tpu.memory_space<vmem>>, vector<2x28x28xf32>,
    %c0_7 = arith.constant 0 : index
    %c0_8 = arith.constant 0 : index
    %c0_9 = arith.constant 0 : index
    %4 = vector.load %arg9[%c0_7, %c0_8, %c0_9] : memref<2x30x28xf32, #tpu.memory_space<vmem>>, vector<2x28x28xf32>
    %5 = vector.shape_cast %4 : vector<2x28x28xf32> to vector<56x28xf32>
    %c0_10 = arith.constant 0 : index
    %c0_11 = arith.constant 0 : index
    %c0_12 = arith.constant 0 : index
    %6 = vector.load %arg2[%c0_10, %c0_11, %c0_12] : memref<3x28x512xf32, #tpu.memory_space<vmem>>, vector<1x28x512xf32>
    %7 = vector.shape_cast %6 : vector<1x28x512xf32> to vector<28x512xf32>
    %cst_13 = arith.constant dense<0.000000e+00> : vector<56x512xf32>
    %8 = tpu.matmul %5, %7, %cst_13 {dimension_numbers = #tpu.dot_dimension_numbers<[1], [0], [0], [1], [0, 0, 1, 1], [], []>} : vector<56x28xf32>, vector<28x512xf32>, vector<56x512xf32> -> vector<56x512xf32>
    %c0_14 = arith.constant 0 : index
    %c0_15 = arith.constant 0 : index
    %9 = vector.load %arg11[%c0_14, %c0_15] : memref<56x512xf32, #tpu.memory_space<vmem>>, vector<56x512xf32>
    tpu.vector_store %arg11[%c0_14, %c0_15], %8 {strides = array<i32>} : memref<56x512xf32, #tpu.memory_space<vmem>>, vector<56x512xf32>,
    %c0_16 = arith.constant 0 : index
    %c1_17 = arith.constant 1 : index
    %c0_18 = arith.constant 0 : index
    %10 = vector.load %arg9[%c0_16, %c1_17, %c0_18] : memref<2x30x28xf32, #tpu.memory_space<vmem>>, vector<2x28x28xf32>
    %11 = vector.shape_cast %10 : vector<2x28x28xf32> to vector<56x28xf32>
    %c1_19 = arith.constant 1 : index
    %c0_20 = arith.constant 0 : index
    %c0_21 = arith.constant 0 : index
    %12 = vector.load %arg2[%c1_19, %c0_20, %c0_21] : memref<3x28x512xf32, #tpu.memory_space<vmem>>, vector<1x28x512xf32>
    %13 = vector.shape_cast %12 : vector<1x28x512xf32> to vector<28x512xf32>
    %cst_22 = arith.constant dense<0.000000e+00> : vector<56x512xf32>
    %14 = tpu.matmul %11, %13, %cst_22 {dimension_numbers = #tpu.dot_dimension_numbers<[1], [0], [0], [1], [0, 0, 1, 1], [], []>} : vector<56x28xf32>, vector<28x512xf32>, vector<56x512xf32> -> vector<56x512xf32>
    %c0_23 = arith.constant 0 : index
    %c0_24 = arith.constant 0 : index
    %15 = vector.load %arg11[%c0_23, %c0_24] : memref<56x512xf32, #tpu.memory_space<vmem>>, vector<56x512xf32>
    %16 = arith.addf %15, %14 : vector<56x512xf32>
    %c0_25 = arith.constant 0 : index
    %c0_26 = arith.constant 0 : index
    %17 = vector.load %arg11[%c0_25, %c0_26] : memref<56x512xf32, #tpu.memory_space<vmem>>, vector<56x512xf32>
    tpu.vector_store %arg11[%c0_25, %c0_26], %16 {strides = array<i32>} : memref<56x512xf32, #tpu.memory_space<vmem>>, vector<56x512xf32>,
    %c0_27 = arith.constant 0 : index
    %c2 = arith.constant 2 : index
    %c0_28 = arith.constant 0 : index
    %18 = vector.load %arg9[%c0_27, %c2, %c0_28] : memref<2x30x28xf32, #tpu.memory_space<vmem>>, vector<2x28x28xf32>
    %19 = vector.shape_cast %18 : vector<2x28x28xf32> to vector<56x28xf32>
    %c2_29 = arith.constant 2 : index
    %c0_30 = arith.constant 0 : index
    %c0_31 = arith.constant 0 : index
    %20 = vector.load %arg2[%c2_29, %c0_30, %c0_31] : memref<3x28x512xf32, #tpu.memory_space<vmem>>, vector<1x28x512xf32>
    %21 = vector.shape_cast %20 : vector<1x28x512xf32> to vector<28x512xf32>
    %cst_32 = arith.constant dense<0.000000e+00> : vector<56x512xf32>
    %22 = tpu.matmul %19, %21, %cst_32 {dimension_numbers = #tpu.dot_dimension_numbers<[1], [0], [0], [1], [0, 0, 1, 1], [], []>} : vector<56x28xf32>, vector<28x512xf32>, vector<56x512xf32> -> vector<56x512xf32>
    %c0_33 = arith.constant 0 : index
    %c0_34 = arith.constant 0 : index
    %23 = vector.load %arg11[%c0_33, %c0_34] : memref<56x512xf32, #tpu.memory_space<vmem>>, vector<56x512xf32>
    %24 = arith.addf %23, %22 : vector<56x512xf32>
    %c0_35 = arith.constant 0 : index
    %c0_36 = arith.constant 0 : index
    %25 = vector.load %arg11[%c0_35, %c0_36] : memref<56x512xf32, #tpu.memory_space<vmem>>, vector<56x512xf32>
    tpu.vector_store %arg11[%c0_35, %c0_36], %24 {strides = array<i32>} : memref<56x512xf32, #tpu.memory_space<vmem>>, vector<56x512xf32>,
    %c0_37 = arith.constant 0 : index
    %c0_38 = arith.constant 0 : index
    %26 = vector.load %arg11[%c0_37, %c0_38] : memref<56x512xf32, #tpu.memory_space<vmem>>, vector<56x512xf32>
    %c0_39 = arith.constant 0 : index
    %c0_40 = arith.constant 0 : index
    %27 = vector.load %arg3[%c0_39, %c0_40] : memref<1x512xf32, #tpu.memory_space<vmem>>, vector<1x512xf32>
    %28 = vector.broadcast %27 : vector<1x512xf32> to vector<56x512xf32>
    %29 = arith.addf %26, %28 : vector<56x512xf32>
    %cst_41 = arith.constant 0.000000e+00 : f32
    %30 = vector.broadcast %cst_41 : f32 to vector<56x512xf32>
    %31 = arith.maximumf %29, %30 : vector<56x512xf32>
    %32 = vector.extract_strided_slice %31 {offsets = [0, 0], sizes = [56, 256], strides = [1, 1]} : vector<56x512xf32> to vector<56x256xf32>
    %33 = vector.extract_strided_slice %31 {offsets = [0, 256], sizes = [56, 256], strides = [1, 1]} : vector<56x512xf32> to vector<56x256xf32>
    %34 = arith.maximumf %32, %33 : vector<56x256xf32>
    %35 = vector.shape_cast %34 : vector<56x256xf32> to vector<28x2x256xf32>
    %cst_42 = arith.constant dense<0xFF800000> : vector<28x256xf32>
    %36 = vector.multi_reduction <maximumf>, %35, %cst_42 [1] : vector<28x2x256xf32> to vector<28x256xf32>
    %cst_43 = arith.constant 0.000000e+00 : f32
    %37 = vector.broadcast %cst_43 : f32 to vector<2x16x256xf32>
    %c0_44 = arith.constant 0 : index
    %c0_45 = arith.constant 0 : index
    %c0_46 = arith.constant 0 : index
    %38 = vector.load %arg10[%c0_44, %c0_45, %c0_46] : memref<2x16x256xf32, #tpu.memory_space<vmem>>, vector<2x16x256xf32>
    tpu.vector_store %arg10[%c0_44, %c0_45, %c0_46], %37 {strides = array<i32>} : memref<2x16x256xf32, #tpu.memory_space<vmem>>, vector<2x16x256xf32>,
    %39 = vector.shape_cast %36 : vector<28x256xf32> to vector<2x14x256xf32>
    %c0_47 = arith.constant 0 : index
    %c1_48 = arith.constant 1 : index
    %c0_49 = arith.constant 0 : index
    %40 = vector.load %arg10[%c0_47, %c1_48, %c0_49] : memref<2x16x256xf32, #tpu.memory_space<vmem>>, vector<2x14x256xf32>
    tpu.vector_store %arg10[%c0_47, %c1_48, %c0_49], %39 {strides = array<i32>} : memref<2x16x256xf32, #tpu.memory_space<vmem>>, vector<2x14x256xf32>,
    %c0_50 = arith.constant 0 : index
    %c0_51 = arith.constant 0 : index
    %c0_52 = arith.constant 0 : index
    %41 = vector.load %arg10[%c0_50, %c0_51, %c0_52] : memref<2x16x256xf32, #tpu.memory_space<vmem>>, vector<2x14x256xf32>
    %42 = vector.shape_cast %41 : vector<2x14x256xf32> to vector<28x256xf32>
    %c0_53 = arith.constant 0 : index
    %c0_54 = arith.constant 0 : index
    %c0_55 = arith.constant 0 : index
    %43 = vector.load %arg4[%c0_53, %c0_54, %c0_55] : memref<3x256x512xf32, #tpu.memory_space<vmem>>, vector<1x256x512xf32>
    %44 = vector.shape_cast %43 : vector<1x256x512xf32> to vector<256x512xf32>
    %cst_56 = arith.constant dense<0.000000e+00> : vector<28x512xf32>
    %45 = tpu.matmul %42, %44, %cst_56 {dimension_numbers = #tpu.dot_dimension_numbers<[1], [0], [0], [1], [0, 0, 1, 1], [], []>} : vector<28x256xf32>, vector<256x512xf32>, vector<28x512xf32> -> vector<28x512xf32>
    %c0_57 = arith.constant 0 : index
    %c0_58 = arith.constant 0 : index
    %46 = vector.load %arg12[%c0_57, %c0_58] : memref<28x512xf32, #tpu.memory_space<vmem>>, vector<28x512xf32>
    tpu.vector_store %arg12[%c0_57, %c0_58], %45 {strides = array<i32>} : memref<28x512xf32, #tpu.memory_space<vmem>>, vector<28x512xf32>,
    %c0_59 = arith.constant 0 : index
    %c1_60 = arith.constant 1 : index
    %c0_61 = arith.constant 0 : index
    %47 = vector.load %arg10[%c0_59, %c1_60, %c0_61] : memref<2x16x256xf32, #tpu.memory_space<vmem>>, vector<2x14x256xf32>
    %48 = vector.shape_cast %47 : vector<2x14x256xf32> to vector<28x256xf32>
    %c1_62 = arith.constant 1 : index
    %c0_63 = arith.constant 0 : index
    %c0_64 = arith.constant 0 : index
    %49 = vector.load %arg4[%c1_62, %c0_63, %c0_64] : memref<3x256x512xf32, #tpu.memory_space<vmem>>, vector<1x256x512xf32>
    %50 = vector.shape_cast %49 : vector<1x256x512xf32> to vector<256x512xf32>
    %cst_65 = arith.constant dense<0.000000e+00> : vector<28x512xf32>
    %51 = tpu.matmul %48, %50, %cst_65 {dimension_numbers = #tpu.dot_dimension_numbers<[1], [0], [0], [1], [0, 0, 1, 1], [], []>} : vector<28x256xf32>, vector<256x512xf32>, vector<28x512xf32> -> vector<28x512xf32>
    %c0_66 = arith.constant 0 : index
    %c0_67 = arith.constant 0 : index
    %52 = vector.load %arg12[%c0_66, %c0_67] : memref<28x512xf32, #tpu.memory_space<vmem>>, vector<28x512xf32>
    %53 = arith.addf %52, %51 : vector<28x512xf32>
    %c0_68 = arith.constant 0 : index
    %c0_69 = arith.constant 0 : index
    %54 = vector.load %arg12[%c0_68, %c0_69] : memref<28x512xf32, #tpu.memory_space<vmem>>, vector<28x512xf32>
    tpu.vector_store %arg12[%c0_68, %c0_69], %53 {strides = array<i32>} : memref<28x512xf32, #tpu.memory_space<vmem>>, vector<28x512xf32>,
    %c0_70 = arith.constant 0 : index
    %c2_71 = arith.constant 2 : index
    %c0_72 = arith.constant 0 : index
    %55 = vector.load %arg10[%c0_70, %c2_71, %c0_72] : memref<2x16x256xf32, #tpu.memory_space<vmem>>, vector<2x14x256xf32>
    %56 = vector.shape_cast %55 : vector<2x14x256xf32> to vector<28x256xf32>
    %c2_73 = arith.constant 2 : index
    %c0_74 = arith.constant 0 : index
    %c0_75 = arith.constant 0 : index
    %57 = vector.load %arg4[%c2_73, %c0_74, %c0_75] : memref<3x256x512xf32, #tpu.memory_space<vmem>>, vector<1x256x512xf32>
    %58 = vector.shape_cast %57 : vector<1x256x512xf32> to vector<256x512xf32>
    %cst_76 = arith.constant dense<0.000000e+00> : vector<28x512xf32>
    %59 = tpu.matmul %56, %58, %cst_76 {dimension_numbers = #tpu.dot_dimension_numbers<[1], [0], [0], [1], [0, 0, 1, 1], [], []>} : vector<28x256xf32>, vector<256x512xf32>, vector<28x512xf32> -> vector<28x512xf32>
    %c0_77 = arith.constant 0 : index
    %c0_78 = arith.constant 0 : index
    %60 = vector.load %arg12[%c0_77, %c0_78] : memref<28x512xf32, #tpu.memory_space<vmem>>, vector<28x512xf32>
    %61 = arith.addf %60, %59 : vector<28x512xf32>
    %c0_79 = arith.constant 0 : index
    %c0_80 = arith.constant 0 : index
    %62 = vector.load %arg12[%c0_79, %c0_80] : memref<28x512xf32, #tpu.memory_space<vmem>>, vector<28x512xf32>
    tpu.vector_store %arg12[%c0_79, %c0_80], %61 {strides = array<i32>} : memref<28x512xf32, #tpu.memory_space<vmem>>, vector<28x512xf32>,
    %c0_81 = arith.constant 0 : index
    %c0_82 = arith.constant 0 : index
    %63 = vector.load %arg12[%c0_81, %c0_82] : memref<28x512xf32, #tpu.memory_space<vmem>>, vector<28x512xf32>
    %c0_83 = arith.constant 0 : index
    %c0_84 = arith.constant 0 : index
    %64 = vector.load %arg5[%c0_83, %c0_84] : memref<1x512xf32, #tpu.memory_space<vmem>>, vector<1x512xf32>
    %65 = vector.broadcast %64 : vector<1x512xf32> to vector<28x512xf32>
    %66 = arith.addf %63, %65 : vector<28x512xf32>
    %cst_85 = arith.constant 0.000000e+00 : f32
    %67 = vector.broadcast %cst_85 : f32 to vector<28x512xf32>
    %68 = arith.maximumf %66, %67 : vector<28x512xf32>
    %69 = vector.extract_strided_slice %68 {offsets = [0, 0], sizes = [28, 256], strides = [1, 1]} : vector<28x512xf32> to vector<28x256xf32>
    %70 = vector.extract_strided_slice %68 {offsets = [0, 256], sizes = [28, 256], strides = [1, 1]} : vector<28x512xf32> to vector<28x256xf32>
    %71 = arith.maximumf %69, %70 : vector<28x256xf32>
    %72 = vector.shape_cast %71 : vector<28x256xf32> to vector<14x2x256xf32>
    %cst_86 = arith.constant dense<0xFF800000> : vector<14x256xf32>
    %73 = vector.multi_reduction <maximumf>, %72, %cst_86 [1] : vector<14x2x256xf32> to vector<14x256xf32>
    %74 = vector.shape_cast %73 : vector<14x256xf32> to vector<2x7x256xf32>
    %c0_87 = arith.constant 0 : index
    %c0_88 = arith.constant 0 : index
    %c0_89 = arith.constant 0 : index
    %75 = vector.load %arg13[%c0_87, %c0_88, %c0_89] : memref<2x7x256xf32, #tpu.memory_space<vmem>>, vector<2x7x256xf32>
    tpu.vector_store %arg13[%c0_87, %c0_88, %c0_89], %74 {strides = array<i32>} : memref<2x7x256xf32, #tpu.memory_space<vmem>>, vector<2x7x256xf32>,
    %c0_90 = arith.constant 0 : index
    %c0_91 = arith.constant 0 : index
    %c0_92 = arith.constant 0 : index
    %76 = vector.load %arg13[%c0_90, %c0_91, %c0_92] : memref<2x7x256xf32, #tpu.memory_space<vmem>>, vector<2x1x256xf32>
    %77 = vector.shape_cast %76 : vector<2x1x256xf32> to vector<2x256xf32>
    %c0_93 = arith.constant 0 : index
    %c0_94 = arith.constant 0 : index
    %c0_95 = arith.constant 0 : index
    %78 = vector.load %arg6[%c0_93, %c0_94, %c0_95] : memref<7x256x128xf32, #tpu.memory_space<vmem>>, vector<1x256x128xf32>
    %79 = vector.shape_cast %78 : vector<1x256x128xf32> to vector<256x128xf32>
    %cst_96 = arith.constant dense<0.000000e+00> : vector<2x128xf32>
    %80 = tpu.matmul %77, %79, %cst_96 {dimension_numbers = #tpu.dot_dimension_numbers<[1], [0], [0], [1], [0, 0, 1, 1], [], []>} : vector<2x256xf32>, vector<256x128xf32>, vector<2x128xf32> -> vector<2x128xf32>
    %c0_97 = arith.constant 0 : index
    %c1_98 = arith.constant 1 : index
    %c0_99 = arith.constant 0 : index
    %81 = vector.load %arg13[%c0_97, %c1_98, %c0_99] : memref<2x7x256xf32, #tpu.memory_space<vmem>>, vector<2x1x256xf32>
    %82 = vector.shape_cast %81 : vector<2x1x256xf32> to vector<2x256xf32>
    %c1_100 = arith.constant 1 : index
    %c0_101 = arith.constant 0 : index
    %c0_102 = arith.constant 0 : index
    %83 = vector.load %arg6[%c1_100, %c0_101, %c0_102] : memref<7x256x128xf32, #tpu.memory_space<vmem>>, vector<1x256x128xf32>
    %84 = vector.shape_cast %83 : vector<1x256x128xf32> to vector<256x128xf32>
    %cst_103 = arith.constant dense<0.000000e+00> : vector<2x128xf32>
    %85 = tpu.matmul %82, %84, %cst_103 {dimension_numbers = #tpu.dot_dimension_numbers<[1], [0], [0], [1], [0, 0, 1, 1], [], []>} : vector<2x256xf32>, vector<256x128xf32>, vector<2x128xf32> -> vector<2x128xf32>
    %86 = arith.addf %80, %85 : vector<2x128xf32>
    %c0_104 = arith.constant 0 : index
    %c2_105 = arith.constant 2 : index
    %c0_106 = arith.constant 0 : index
    %87 = vector.load %arg13[%c0_104, %c2_105, %c0_106] : memref<2x7x256xf32, #tpu.memory_space<vmem>>, vector<2x1x256xf32>
    %88 = vector.shape_cast %87 : vector<2x1x256xf32> to vector<2x256xf32>
    %c2_107 = arith.constant 2 : index
    %c0_108 = arith.constant 0 : index
    %c0_109 = arith.constant 0 : index
    %89 = vector.load %arg6[%c2_107, %c0_108, %c0_109] : memref<7x256x128xf32, #tpu.memory_space<vmem>>, vector<1x256x128xf32>
    %90 = vector.shape_cast %89 : vector<1x256x128xf32> to vector<256x128xf32>
    %cst_110 = arith.constant dense<0.000000e+00> : vector<2x128xf32>
    %91 = tpu.matmul %88, %90, %cst_110 {dimension_numbers = #tpu.dot_dimension_numbers<[1], [0], [0], [1], [0, 0, 1, 1], [], []>} : vector<2x256xf32>, vector<256x128xf32>, vector<2x128xf32> -> vector<2x128xf32>
    %92 = arith.addf %86, %91 : vector<2x128xf32>
    %c0_111 = arith.constant 0 : index
    %c3 = arith.constant 3 : index
    %c0_112 = arith.constant 0 : index
    %93 = vector.load %arg13[%c0_111, %c3, %c0_112] : memref<2x7x256xf32, #tpu.memory_space<vmem>>, vector<2x1x256xf32>
    %94 = vector.shape_cast %93 : vector<2x1x256xf32> to vector<2x256xf32>
    %c3_113 = arith.constant 3 : index
    %c0_114 = arith.constant 0 : index
    %c0_115 = arith.constant 0 : index
    %95 = vector.load %arg6[%c3_113, %c0_114, %c0_115] : memref<7x256x128xf32, #tpu.memory_space<vmem>>, vector<1x256x128xf32>
    %96 = vector.shape_cast %95 : vector<1x256x128xf32> to vector<256x128xf32>
    %cst_116 = arith.constant dense<0.000000e+00> : vector<2x128xf32>
    %97 = tpu.matmul %94, %96, %cst_116 {dimension_numbers = #tpu.dot_dimension_numbers<[1], [0], [0], [1], [0, 0, 1, 1], [], []>} : vector<2x256xf32>, vector<256x128xf32>, vector<2x128xf32> -> vector<2x128xf32>
    %98 = arith.addf %92, %97 : vector<2x128xf32>
    %c0_117 = arith.constant 0 : index
    %c4 = arith.constant 4 : index
    %c0_118 = arith.constant 0 : index
    %99 = vector.load %arg13[%c0_117, %c4, %c0_118] : memref<2x7x256xf32, #tpu.memory_space<vmem>>, vector<2x1x256xf32>
    %100 = vector.shape_cast %99 : vector<2x1x256xf32> to vector<2x256xf32>
    %c4_119 = arith.constant 4 : index
    %c0_120 = arith.constant 0 : index
    %c0_121 = arith.constant 0 : index
    %101 = vector.load %arg6[%c4_119, %c0_120, %c0_121] : memref<7x256x128xf32, #tpu.memory_space<vmem>>, vector<1x256x128xf32>
    %102 = vector.shape_cast %101 : vector<1x256x128xf32> to vector<256x128xf32>
    %cst_122 = arith.constant dense<0.000000e+00> : vector<2x128xf32>
    %103 = tpu.matmul %100, %102, %cst_122 {dimension_numbers = #tpu.dot_dimension_numbers<[1], [0], [0], [1], [0, 0, 1, 1], [], []>} : vector<2x256xf32>, vector<256x128xf32>, vector<2x128xf32> -> vector<2x128xf32>
    %104 = arith.addf %98, %103 : vector<2x128xf32>
    %c0_123 = arith.constant 0 : index
    %c5 = arith.constant 5 : index
    %c0_124 = arith.constant 0 : index
    %105 = vector.load %arg13[%c0_123, %c5, %c0_124] : memref<2x7x256xf32, #tpu.memory_space<vmem>>, vector<2x1x256xf32>
    %106 = vector.shape_cast %105 : vector<2x1x256xf32> to vector<2x256xf32>
    %c5_125 = arith.constant 5 : index
    %c0_126 = arith.constant 0 : index
    %c0_127 = arith.constant 0 : index
    %107 = vector.load %arg6[%c5_125, %c0_126, %c0_127] : memref<7x256x128xf32, #tpu.memory_space<vmem>>, vector<1x256x128xf32>
    %108 = vector.shape_cast %107 : vector<1x256x128xf32> to vector<256x128xf32>
    %cst_128 = arith.constant dense<0.000000e+00> : vector<2x128xf32>
    %109 = tpu.matmul %106, %108, %cst_128 {dimension_numbers = #tpu.dot_dimension_numbers<[1], [0], [0], [1], [0, 0, 1, 1], [], []>} : vector<2x256xf32>, vector<256x128xf32>, vector<2x128xf32> -> vector<2x128xf32>
    %110 = arith.addf %104, %109 : vector<2x128xf32>
    %c0_129 = arith.constant 0 : index
    %c6 = arith.constant 6 : index
    %c0_130 = arith.constant 0 : index
    %111 = vector.load %arg13[%c0_129, %c6, %c0_130] : memref<2x7x256xf32, #tpu.memory_space<vmem>>, vector<2x1x256xf32>
    %112 = vector.shape_cast %111 : vector<2x1x256xf32> to vector<2x256xf32>
    %c6_131 = arith.constant 6 : index
    %c0_132 = arith.constant 0 : index
    %c0_133 = arith.constant 0 : index
    %113 = vector.load %arg6[%c6_131, %c0_132, %c0_133] : memref<7x256x128xf32, #tpu.memory_space<vmem>>, vector<1x256x128xf32>
    %114 = vector.shape_cast %113 : vector<1x256x128xf32> to vector<256x128xf32>
    %cst_134 = arith.constant dense<0.000000e+00> : vector<2x128xf32>
    %115 = tpu.matmul %112, %114, %cst_134 {dimension_numbers = #tpu.dot_dimension_numbers<[1], [0], [0], [1], [0, 0, 1, 1], [], []>} : vector<2x256xf32>, vector<256x128xf32>, vector<2x128xf32> -> vector<2x128xf32>
    %116 = arith.addf %110, %115 : vector<2x128xf32>
    %c0_135 = arith.constant 0 : index
    %c0_136 = arith.constant 0 : index
    %117 = vector.load %arg7[%c0_135, %c0_136] : memref<1x128xf32, #tpu.memory_space<vmem>>, vector<1x128xf32>
    %118 = vector.broadcast %117 : vector<1x128xf32> to vector<2x128xf32>
    %119 = arith.addf %116, %118 : vector<2x128xf32>
    %c0_137 = arith.constant 0 : index
    %c0_138 = arith.constant 0 : index
    %120 = vector.load %arg8[%c0_137, %c0_138] : memref<2x128xf32, #tpu.memory_space<vmem>>, vector<2x128xf32>
    tpu.vector_store %arg8[%c0_137, %c0_138], %119 {strides = array<i32>} : memref<2x128xf32, #tpu.memory_space<vmem>>, vector<2x128xf32>,
    return
  }
  func.func @transform_0(%arg0: i32) -> (i32, i32, i32) {
    %c0_i32 = arith.constant 0 : i32
    %c0_i32_0 = arith.constant 0 : i32
    %c0_i32_1 = arith.constant 0 : i32
    return %arg0, %c0_i32, %c0_i32_0 : i32, i32, i32
  }
  func.func @transform_1(%arg0: i32) -> (i32, i32, i32) {
    %c0_i32 = arith.constant 0 : i32
    %c0_i32_0 = arith.constant 0 : i32
    %c0_i32_1 = arith.constant 0 : i32
    %c0_i32_2 = arith.constant 0 : i32
    return %c0_i32, %c0_i32_0, %c0_i32_1 : i32, i32, i32
  }
  func.func @transform_2(%arg0: i32) -> (i32, i32) {
    %c0_i32 = arith.constant 0 : i32
    %c0_i32_0 = arith.constant 0 : i32
    %c0_i32_1 = arith.constant 0 : i32
    return %c0_i32, %c0_i32_0 : i32, i32
  }
  func.func @transform_3(%arg0: i32) -> (i32, i32, i32) {
    %c0_i32 = arith.constant 0 : i32
    %c0_i32_0 = arith.constant 0 : i32
    %c0_i32_1 = arith.constant 0 : i32
    %c0_i32_2 = arith.constant 0 : i32
    return %c0_i32, %c0_i32_0, %c0_i32_1 : i32, i32, i32
  }
  func.func @transform_4(%arg0: i32) -> (i32, i32) {
    %c0_i32 = arith.constant 0 : i32
    %c0_i32_0 = arith.constant 0 : i32
    %c0_i32_1 = arith.constant 0 : i32
    return %c0_i32, %c0_i32_0 : i32, i32
  }
  func.func @transform_5(%arg0: i32) -> (i32, i32, i32) {
    %c0_i32 = arith.constant 0 : i32
    %c0_i32_0 = arith.constant 0 : i32
    %c0_i32_1 = arith.constant 0 : i32
    %c0_i32_2 = arith.constant 0 : i32
    return %c0_i32, %c0_i32_0, %c0_i32_1 : i32, i32, i32
  }
  func.func @transform_6(%arg0: i32) -> (i32, i32) {
    %c0_i32 = arith.constant 0 : i32
    %c0_i32_0 = arith.constant 0 : i32
    %c0_i32_1 = arith.constant 0 : i32
    return %c0_i32, %c0_i32_0 : i32, i32
  }
  func.func @transform_7(%arg0: i32) -> (i32, i32) {
    %c0_i32 = arith.constant 0 : i32
    %c0_i32_0 = arith.constant 0 : i32
    return %arg0, %c0_i32 : i32, i32
  }
}

</mosaic_0001>

<bundles_post_ra>
// kernel: tile.23
= control target key start
LH: loop header
LB: loop body
LE: loop exit
PB: predicated region body
PF: predicated region fallthrough
CT: control target
= control target key end

     0   :  { %s28_s0 = inlined_call_operand.vmem [shape: f32[16], index: 0, kind: input, shape index: {}]   ;;  %s29_s1 = inlined_call_operand.vmem [shape: f32[14,16], index: 1, kind: output, shape index: {}]  }
   0x1   :  { %v4_v0 = vld [vmem:[%s28_s0] ss:$0 sm:$0xff] }
   0x2   :  { %5 = vst [vmem:[%s29_s1] sm:$0xff] %v4_v0  ;;  %8 = vst [vmem:[%s29_s1 + $0x8] sm:$0xff] %v4_v0 }

// kernel: tile.24
= control target key start
LH: loop header
LB: loop body
LE: loop exit
PB: predicated region body
PF: predicated region fallthrough
CT: control target
= control target key end

     0   :  { %s19_s8 = smov 3  ;;  %s75_s9 = smov 112   ;;  %vm4_vm0 = vcmask 130048   ;;  %vm10_vm1 = vcmask 1048448   ;;  %vm16_vm2 = vcmask 917248   ;;  %vm23_vm3 = vcmask 786048   ;;  %s119_s0 = inlined_call_operand.vmem [shape: f32[14,16], index: 0, kind: input, shape index: {}]   ;;  %s120_s1 = inlined_call_operand.vmem [shape: f32[224], index: 1, kind: output, shape index: {}]  }
   0x1   :  { %v61_v0 = vld [vmem:[%s119_s0 + $0x7] sm:$0x1]   ;;  %v63_v1 = vld [vmem:[%s119_s0 + $0x5] ss:$8 sm:%s19_s8]   ;;  %s76_s12 = smov 80   ;;  %s26_s15 = smov 3 }
   0x2   :  { %8 = vrot.lane.b32.xlu0 %v61_v0, %s75_s9  ;;  %21 = vrot.lane.b32.xlu1 %v63_v1, %s76_s12  ;;  %v62_v2 = vld [vmem:[%s119_s0 + $0x6] sm:$0x1]   ;;  %s33_s18 = smov 3  ;;  %s40_s19 = smov 3  ;;  %vm30_vm4 = vcmask 654848   ;;  %vm37_vm5 = vcmask 523648  }
   0x3   :  { %v64_v3 = vld [vmem:[%s119_s0 + $0x4] ss:$8 sm:%s26_s15]   ;;  %s77_s20 = smov 96   ;;  %s78_s21 = smov 64   ;;  %v65_v4 = vld [vmem:[%s119_s0 + $0x3] ss:$8 sm:%s33_s18]  }
   0x4   :  { %s2_s24 = smov 3  ;;  %v66_v5 = vld [vmem:[%s119_s0 + $0x2] ss:$8 sm:%s40_s19]   ;;  %s47_s27 = smov 3  ;;  %vm44_vm6 = vcmask 392448   ;;  %vm51_vm7 = vcmask 261248  }
   0x5   :  { %v3_v6 = vld [vmem:[%s119_s0] ss:$8 sm:%s2_s24]   ;;  %s79_s30 = smov 48   ;;  %s80_s2 = smov 32   ;;  %v67_v7 = vld [vmem:[%s119_s0 + $0x1] ss:$8 sm:%s47_s27]  }
   0x6   :  { %14 = vrot.lane.b32.xlu0 %v62_v2, %s77_s20  ;;  %28 = vrot.lane.b32.xlu1 %v64_v3, %s78_s21  ;;  %5 = vst.msk [vmem:[#allocation0] sm:$0x3] %vm4_vm0, %v3_v6   ;;  %s81_s0 = smov 16  }
   0xa   :  { %35 = vrot.lane.b32.xlu0 %v65_v4, %s79_s30  ;;  %42 = vrot.lane.b32.xlu1 %v66_v5, %s80_s2 }
   0xe   :  { %49 = vrot.lane.b32.xlu0 %v67_v7, %s81_s0 }
  0x74   :  { %v9_v8 = vpop.permute.xlu0 %8   ;;  %v22_v9 = vpop.permute.xlu1 %21  }
  0x75   :  { %11 = vst.msk [vmem:[#allocation0] sm:$0x1] %vm10_vm1, %v9_v8  }
  0x78   :  { %v15_v10 = vpop.permute.xlu0 %14   ;;  %v29_v11 = vpop.permute.xlu1 %28  }
  0x79   :  { %17 = vst.msk [vmem:[#allocation0] sm:$0x1] %vm16_vm2, %v15_v10  }
  0x7a   :  { %24 = vst.msk [vmem:[#allocation0] sm:$0x3] %vm23_vm3, %v22_v9  }
  0x7b   :  { %31 = vst.msk [vmem:[#allocation0] sm:$0x3] %vm30_vm4, %v29_v11  }
  0x7c   :  { %v36_v12 = vpop.permute.xlu0 %35   ;;  %v43_v13 = vpop.permute.xlu1 %42  }
  0x7d   :  { %38 = vst.msk [vmem:[#allocation0] sm:$0x3] %vm37_vm5, %v36_v12  }
  0x7e   :  { %45 = vst.msk [vmem:[#allocation0] sm:$0x3] %vm44_vm6, %v43_v13  }
  0x80   :  { %v50_v14 = vpop.permute.xlu0 %49  }
  0x81   :  { %52 = vst.msk [vmem:[#allocation0] sm:$0x3] %vm51_vm7, %v50_v14  }
  0x88   :  { %v57_v15 = vld [vmem:[#allocation0] sm:$0x3] }
  0x89   :  { %60 = vst [vmem:[%s120_s1] sm:$0x3] %v57_v15 }

// kernel: tile.33
= control target key start
LH: loop header
LB: loop body
LE: loop exit
PB: predicated region body
PF: predicated region fallthrough
CT: control target
= control target key end

     0   :  { %s22_s0 = inlined_call_operand.vmem [shape: f32[32], index: 0, kind: input, shape index: {}]   ;;  %s23_s1 = inlined_call_operand.vmem [shape: f32[7,32], index: 1, kind: output, shape index: {}]  }
   0x1   :  { %v4_v0 = vld [vmem:[%s22_s0] ss:$0 sm:$0xff] }
   0x2   :  { %5 = vst [vmem:[%s23_s1] sm:$0xff] %v4_v0 }

// kernel: tile.34
= control target key start
LH: loop header
LB: loop body
LE: loop exit
PB: predicated region body
PF: predicated region fallthrough
CT: control target
= control target key end

     0   :  { %s13_s8 = smov 3  ;;  %s40_s9 = smov 96   ;;  %vm4_vm0 = vcmask 261120   ;;  %vm10_vm1 = vcmask 1048320   ;;  %vm17_vm2 = vcmask 785920   ;;  %vm24_vm3 = vcmask 523520   ;;  %s68_s0 = inlined_call_operand.vmem [shape: f32[7,32], index: 0, kind: input, shape index: {}]   ;;  %s69_s1 = inlined_call_operand.vmem [shape: f32[224], index: 1, kind: output, shape index: {}]  }
   0x1   :  { %v34_v0 = vld [vmem:[%s68_s0 + $0x3] sm:$0x1]   ;;  %s20_s10 = smov 3  ;;  %v35_v1 = vld [vmem:[%s68_s0 + $0x2] ss:$4 sm:%s13_s8]   ;;  %s2_s15 = smov 3 }
   0x2   :  { %8 = vrot.lane.b32.xlu0 %v34_v0, %s40_s9  ;;  %v36_v2 = vld [vmem:[%s68_s0 + $0x1] ss:$4 sm:%s20_s10]   ;;  %s41_s16 = smov 32  }
   0x3   :  { %22 = vrot.lane.b32.xlu1 %v36_v2, %s41_s16  ;;  %v3_v3 = vld [vmem:[%s68_s0] ss:$4 sm:%s2_s15]   ;;  %s42_s0 = smov 64  }
   0x4   :  { %5 = vst.msk [vmem:[#allocation0] sm:$0x3] %vm4_vm0, %v3_v3  }
   0x6   :  { %15 = vrot.lane.b32.xlu0 %v35_v1, %s42_s0 }
  0x74   :  { %v9_v4 = vpop.permute.xlu0 %8  }
  0x75   :  { %11 = vst.msk [vmem:[#allocation0] sm:$0x1] %vm10_vm1, %v9_v4   ;;  %v23_v5 = vpop.permute.xlu1 %22  }
  0x78   :  { %v16_v6 = vpop.permute.xlu0 %15  }
  0x79   :  { %18 = vst.msk [vmem:[#allocation0] sm:$0x3] %vm17_vm2, %v16_v6  }
  0x7a   :  { %25 = vst.msk [vmem:[#allocation0] sm:$0x3] %vm24_vm3, %v23_v5  }
  0x81   :  { %v30_v7 = vld [vmem:[#allocation0] sm:$0x3] }
  0x82   :  { %33 = vst [vmem:[%s69_s1] sm:$0x3] %v30_v7 }

// kernel: cnn_forward.1
= control target key start
LH: loop header
LB: loop body
LE: loop exit
PB: predicated region body
PF: predicated region fallthrough
CT: control target
= control target key end

     0   :  { %vm113_vm0 = vcmask 1043456   ;;  %vm27_vm1 = vcmask 228352   ;;  %vm31_vm2 = vcmask 226304   ;;  %v6111_v6 = vmov 0.0   ;;  %s9331_s0 = inlined_call_operand.vmem [shape: f32[2,28,28], index: 0, kind: input, shape index: {}]   ;;  %s9332_s1 = inlined_call_operand.vmem [shape: f32[3,28,512], index: 1, kind: input, shape index: {}]   ;;  %s9333_s2 = inlined_call_operand.vmem [shape: f32[1,512], index: 2, kind: input, shape index: {}]   ;;  %s9334_s3 = inlined_call_operand.vmem [shape: f32[3,256,512], index: 3, kind: input, shape index: {}]   ;;  %s9335_s4 = inlined_call_operand.vmem [shape: f32[1,512], index: 4, kind: input, shape index: {}]   ;;  %s9336_s5 = inlined_call_operand.vmem [shape: f32[7,256,128], index: 5, kind: input, shape index: {}]   ;;  %s9337_s6 = inlined_call_operand.vmem [shape: f32[1,128], index: 6, kind: input, shape index: {}]   ;;  %s9338_s7 = inlined_call_operand.hbm [shape: f32[2,128], index: 7, kind: output, shape index: {}]  }
   0x1   :  { %v89_v0 = vld [vmem:[%s9332_s1 + $0x68] sm:$0xf]  ;;  %v88_v1 = vld [vmem:[%s9332_s1 + $0x60] sm:$0xf]  ;;  %2041 = vst [vmem:[#allocation3 + $0x30] sm:$0xff] %v6111_v6  ;;  %2042 = vst [vmem:[#allocation3] sm:$0xff] %v6111_v6  ;;  %208 = vmatprep.mubr.f32.mxu1 %v6111_v6  ;;  %190 = vmatprep.mubr.f32.mxu0 %v6111_v6 }
   0x2   :  { %v85_v2 = vld [vmem:[%s9332_s1 + $0x48] sm:$0xff]  ;;  %6023 = vmatprep.subr.msk.mxu1 %vm113_vm0, %v89_v0  ;;  %5240 = vmatprep.subr.msk.mxu0 %vm113_vm0, %v89_v0  ;;  %v84_v3 = vld [vmem:[%s9332_s1 + $0x40] sm:$0xff]  ;;  %2043 = vst [vmem:[#allocation3 + $0x18] sm:$0xff] %v6111_v6  ;;  %2044 = vst [vmem:[#allocation3 + $0x10] sm:$0xff] %v6111_v6  ;;  %vm48_vm3 = vcmask 224256  }
   0x3   :  { %6027 = vmatpush1.msk.msra.mxu1 %vm113_vm0, %v88_v1  ;;  %5241 = vmatpush1.msk.msra.mxu0 %vm113_vm0, %v88_v1  ;;  %v81_v4 = vld [vmem:[%s9332_s1 + $0x28] sm:$0xff]  ;;  %v80_v5 = vld [vmem:[%s9332_s1 + $0x20] sm:$0xff]  ;;  %2045 = vst [vmem:[#allocation3 + $0x8] sm:$0xff] %v6111_v6  ;;  %2046 = vst [vmem:[#allocation3 + $0x20] sm:$0xff] %v6111_v6 }
   0x4   :  { %2047 = vst [vmem:[#allocation3 + $0x28] sm:$0xff] %v6111_v6  ;;  %2048 = vst [vmem:[#allocation3 + $0x38] sm:$0xff] %v6111_v6  ;;  %6024 = vmatprep.subr.mxu1 %v85_v2  ;;  %152 = vmatprep.subr.mxu0 %v85_v2  ;;  %v39_v7 = vld [vmem:[%s9331_s0 + $0x10] sm:$0xff]  ;;  %v40_v8 = vld [vmem:[%s9331_s0 + $0x18] sm:$0xf] }
   0x5   :  { %30 = vst.msk [vmem:[#allocation2 + $0x10] sm:$0xff] %vm27_vm1, %v6111_v6  ;;  %33 = vst.msk [vmem:[#allocation2 + $0x20] sm:$0xff] %vm27_vm1, %v6111_v6  ;;  %v41_v9 = vld [vmem:[%s9331_s0 + $0x20] sm:$0xff]  ;;  %6028 = vmatpush1.msra.mxu1 %v84_v3  ;;  %153 = vmatpush1.msra.mxu0 %v84_v3  ;;  %v77_v10 = vld [vmem:[%s9332_s1 + $0x8] sm:$0xff] }
   0x6   :  { %32 = vst.msk [vmem:[#allocation2 + $0x18] sm:$0x3f] %vm31_vm2, %v6111_v6  ;;  %36 = vst.msk [vmem:[#allocation2 + $0x38] sm:$0x3f] %vm31_vm2, %v6111_v6  ;;  %v37_v11 = vld [vmem:[%s9331_s0] sm:$0xff]  ;;  %6025 = vmatprep.subr.mxu1 %v81_v4  ;;  %154 = vmatprep.subr.mxu0 %v81_v4  ;;  %v42_v13 = vld [vmem:[%s9331_s0 + $0x28] sm:$0xff] }
   0x7   :  { %34 = vst.msk [vmem:[#allocation2 + $0x28] sm:$0xff] %vm27_vm1, %v6111_v6  ;;  %28 = vst.msk [vmem:[#allocation2] sm:$0xff] %vm27_vm1, %v6111_v6  ;;  %v76_v12 = vld [vmem:[%s9332_s1] sm:$0xff]  ;;  %v38_v14 = vld [vmem:[%s9331_s0 + $0x8] sm:$0xff]  ;;  %6029 = vmatpush1.msra.mxu1 %v80_v5  ;;  %155 = vmatpush1.msra.mxu0 %v80_v5 }
   0x8   :  { %29 = vst.msk [vmem:[#allocation2 + $0x8] sm:$0xff] %vm27_vm1, %v6111_v6  ;;  %35 = vst.msk [vmem:[#allocation2 + $0x30] sm:$0xff] %vm27_vm1, %v6111_v6  ;;  %v91_v15 = vld [vmem:[%s9332_s1 + $0x78] sm:$0xf]  ;;  %6026 = vmatprep.subr.mxu1 %v77_v10  ;;  %v5271_v16 = vld [vmem:[%s9332_s1 + $0xe8] sm:$0xf]  ;;  %156 = vmatprep.subr.mxu0 %v77_v10 }
   0x9   :  { %47 = vst.msk [vmem:[#allocation2 + $0x11] sm:$0xff] %vm27_vm1, %v39_v7  ;;  %50 = vst.msk [vmem:[#allocation2 + $0x21] sm:$0xff] %vm27_vm1, %v41_v9  ;;  %v43_v17 = vld [vmem:[%s9331_s0 + $0x30] sm:$0xff]  ;;  %6030 = vmatpush1.msra.mxu1 %v76_v12  ;;  %157 = vmatpush1.msra.mxu0 %v76_v12  ;;  %v44_v18 = vld [vmem:[%s9331_s0 + $0x38] sm:$0xf] }
   0xa   :  { %49 = vst.msk [vmem:[#allocation2 + $0x19] sm:$0xf] %vm48_vm3, %v40_v8  ;;  %5249 = vmatprep.subr.msk.mxu1 %vm113_vm0, %v91_v15  ;;  %5274 = vmatprep.subr.msk.mxu0 %vm113_vm0, %v5271_v16  ;;  %53 = vst.msk [vmem:[#allocation2 + $0x39] sm:$0xf] %vm48_vm3, %v44_v18  ;;  %v90_v22 = vld [vmem:[%s9332_s1 + $0x70] sm:$0xf] }
   0xb   :  { %45 = vst.msk [vmem:[#allocation2 + $0x1] sm:$0xff] %vm27_vm1, %v37_v11  ;;  %51 = vst.msk [vmem:[#allocation2 + $0x29] sm:$0xff] %vm27_vm1, %v42_v13  ;;  %v87_v26 = vld [vmem:[%s9332_s1 + $0x58] sm:$0xff]  ;;  %v86_v30 = vld [vmem:[%s9332_s1 + $0x50] sm:$0xff] }
   0xc   :  { %46 = vst.msk [vmem:[#allocation2 + $0x9] sm:$0xff] %vm27_vm1, %v38_v14  ;;  %52 = vst.msk [vmem:[#allocation2 + $0x31] sm:$0xff] %vm27_vm1, %v43_v17  ;;  %v83_v36 = vld [vmem:[%s9332_s1 + $0x38] sm:$0xff]  ;;  %v5270_v38 = vld [vmem:[%s9332_s1 + $0xe0] sm:$0xf] }
   0xd   :  { %v82_v39 = vld [vmem:[%s9332_s1 + $0x30] sm:$0xff]  ;;  %v5267_v42 = vld [vmem:[%s9332_s1 + $0xc8] sm:$0xff]  ;;  %v5266_v46 = vld [vmem:[%s9332_s1 + $0xc0] sm:$0xff] }
   0xe   :  { %v5263_v48 = vld [vmem:[%s9332_s1 + $0xa8] sm:$0xff]  ;;  %v79_v49 = vld [vmem:[%s9332_s1 + $0x18] sm:$0xff]  ;;  %v78_v52 = vld [vmem:[%s9332_s1 + $0x10] sm:$0xff] }
   0xf   :  { %v5262_v54 = vld [vmem:[%s9332_s1 + $0xa0] sm:$0xff]  ;;  %v5259_v55 = vld [vmem:[%s9332_s1 + $0x88] sm:$0xff]  ;;  %v5273_v59 = vld [vmem:[%s9332_s1 + $0xf8] sm:$0xf] }
  0x10   :  { %v58_v20 = vld [vmem:[#allocation2 + $0x20] sm:$0xff]  ;;  %v370_v60 = vld [vmem:[#allocation2 + $0x11] sm:$0xff] }
  0x11   :  { %v57_v19 = vld [vmem:[#allocation2 + $0x18] sm:$0xf]  ;;  %v73_v24 = vcombine.high %v58_v20, %v58_v20  ;;  %v5258_v56 = vld [vmem:[%s9332_s1 + $0x80] sm:$0xff] }
  0x12   :  { %v6249_v21 = vcombine.low %v57_v19, %v58_v20  ;;  %v54_v23 = vld [vmem:[#allocation2] sm:$0xff]  ;;  %v59_v27 = vld [vmem:[#allocation2 + $0x28] sm:$0xff] }
  0x13   :  { %v70_v25 = vcombine.high %v54_v23, %v54_v23  ;;  %v55_v28 = vld [vmem:[#allocation2 + $0x8] sm:$0xff]  ;;  %v6259_v29 = vcombine.low %v73_v24, %v59_v27  ;;  %v74_v32 = vcombine.high %v59_v27, %v59_v27  ;;  %v56_v33 = vld [vmem:[#allocation2 + $0x10] sm:$0xff]  ;;  %v61_v45 = vld [vmem:[#allocation2 + $0x38] sm:$0xf] }
  0x14   :  { %5245 = vmatmul.mubr.msk.f32.vlgmr.msra.gmra.mxu1 %vm27_vm1, %v6249_v21  ;;  %v71_v31 = vcombine.high %v55_v28, %v55_v28  ;;  %v60_v35 = vld [vmem:[#allocation2 + $0x30] sm:$0xff]  ;;  %v72_v40 = vcombine.high %v56_v33, %v56_v33  ;;  %v368_v44 = vld [vmem:[#allocation2 + $0x1] sm:$0xff] }
  0x15   :  { %5250 = vmatpush1.msk.msra.mxu1 %vm113_vm0, %v90_v22  ;;  %v92_v34 = vcombine.low %v54_v23, %v70_v25  ;;  %214 = vmatprep.mubr.f32.mxu1 %v6111_v6  ;;  %v6281_v41 = vcombine.low %v74_v32, %v60_v35  ;;  %v75_v43 = vcombine.high %v60_v35, %v60_v35  ;;  %v369_v53 = vld [vmem:[#allocation2 + $0x9] sm:$0xff] }
  0x16   :  { %259 = vmatprep.subr.mxu1 %v87_v26  ;;  %v6270_v37 = vcombine.low %v55_v28, %v71_v31  ;;  %v6293_v47 = vcombine.low %v56_v33, %v72_v40  ;;  %v384_v50 = vcombine.high %v368_v44, %v368_v44  ;;  %v385_v58 = vcombine.high %v369_v53, %v369_v53 }
  0x17   :  { %5242 = vmatmul.mubr.msk.f32.vlgmr.msra.gmra.mxu0 %vm27_vm1, %v92_v34  ;;  %260 = vmatpush1.msra.mxu1 %v86_v30  ;;  %v6304_v51 = vcombine.low %v75_v43, %v61_v45 }
  0x18   :  { %5246 = vmatmul.mubr.msk.f32.gmra.mxu1 %vm27_vm1, %v6259_v29  ;;  %196 = vmatprep.mubr.f32.mxu0 %v6111_v6  ;;  %v6321_v57 = vcombine.low %v368_v44, %v384_v50 }
  0x19   :  { %220 = vmatprep.mubr.f32.mxu1 %v6111_v6  ;;  %261 = vmatprep.subr.mxu1 %v83_v36 }
  0x1a   :  { %5275 = vmatpush1.msk.msra.mxu0 %vm113_vm0, %v5270_v38  ;;  %262 = vmatpush1.msra.mxu1 %v82_v39 }
  0x1b   :  { %5243 = vmatmul.mubr.msk.f32.gmra.mxu0 %vm27_vm1, %v6270_v37  ;;  %466 = vmatprep.subr.mxu0 %v5267_v42 }
  0x1c   :  { %5247 = vmatmul.mubr.msk.f32.gmra.mxu1 %vm27_vm1, %v6281_v41  ;;  %202 = vmatprep.mubr.f32.mxu0 %v6111_v6 }
  0x1d   :  { %467 = vmatpush1.msra.mxu0 %v5266_v46  ;;  %226 = vmatprep.mubr.f32.mxu1 %v6111_v6 }
  0x1e   :  { %468 = vmatprep.subr.mxu0 %v5263_v48  ;;  %263 = vmatprep.subr.mxu1 %v79_v49 }
  0x1f   :  { %5244 = vmatmul.mubr.msk.f32.gmra.mxu0 %vm27_vm1, %v6293_v47  ;;  %264 = vmatpush1.msra.mxu1 %v78_v52 }
  0x20   :  { %469 = vmatpush1.msra.mxu0 %v5262_v54  ;;  %5248 = vmatmul.mubr.msk.f32.gmra.mxu1 %vm27_vm1, %v6304_v51 }
  0x21   :  { %12 = vsyncpa [#allocation8], 0  ;;  %470 = vmatprep.subr.mxu0 %v5259_v55  ;;  %504 = vmatprep.mubr.f32.mxu0 %v6111_v6  ;;  %v5272_v61 = vld [vmem:[%s9332_s1 + $0xf0] sm:$0xf]  ;;  %v6336_v62 = vcombine.low %v369_v53, %v385_v58  ;;  %v386_v63 = vcombine.high %v370_v60, %v370_v60  ;;  %v5269_v0 = vld [vmem:[%s9332_s1 + $0xd8] sm:$0xff]  ;;  %vm1648_vm4 = vcmask 1041408  }
  0x22   :  { %471 = vmatpush1.msra.mxu0 %v5258_v56  ;;  %297 = vmatprep.mubr.f32.mxu1 %v6111_v6  ;;  %v5305_v1 = vld [vmem:[%s9332_s1 + $0x168] sm:$0xf]  ;;  %v5268_v2 = vld [vmem:[%s9332_s1 + $0xd0] sm:$0xff]  ;;  %v5265_v3 = vld [vmem:[%s9332_s1 + $0xb8] sm:$0xff]  ;;  %vm2105_vm5 = vcmask 1042434   ;;  %vm2107_vm6 = vcmask 1043459  }
  0x23   :  { %5276 = vmatmul.mubr.msk.f32.vlgmr.msra.gmra.mxu0 %vm27_vm1, %v6321_v57  ;;  %5283 = vmatprep.subr.msk.mxu1 %vm113_vm0, %v5273_v59  ;;  %v6357_v4 = vcombine.low %v370_v60, %v386_v63  ;;  %v5264_v5 = vld [vmem:[%s9332_s1 + $0xb0] sm:$0xff]  ;;  %v5304_v7 = vld [vmem:[%s9332_s1 + $0x160] sm:$0xf]  ;;  %v371_v8 = vld [vmem:[#allocation2 + $0x19] sm:$0xf]  ;;  %vm2109_vm7 = vcmask 1044484  }
  0x24   :  { %5251 = vmatmul.mubr.msk.f32.vlgmr.msra.gmra.mxu1 %vm27_vm1, %v92_v34  ;;  %510 = vmatprep.mubr.f32.mxu0 %v6111_v6  ;;  %v372_v9 = vld [vmem:[#allocation2 + $0x21] sm:$0xff]  ;;  %v5261_v10 = vld [vmem:[%s9332_s1 + $0x98] sm:$0xff]  ;;  %v5260_v14 = vld [vmem:[%s9332_s1 + $0x90] sm:$0xff]  ;;  %vm2111_vm8 = vcmask 1045509   ;;  %vm2113_vm9 = vcmask 1046534   ;;  %vm2115_vm10 = vcmask 1047559  }
  0x25   :  { %5284 = vmatpush1.msk.msra.mxu1 %vm113_vm0, %v5272_v61  ;;  %303 = vmatprep.mubr.f32.mxu1 %v6111_v6  ;;  %v5301_v11 = vld [vmem:[%s9332_s1 + $0x148] sm:$0xff]  ;;  %v6378_v12 = vcombine.low %v371_v8, %v372_v9  ;;  %v387_v13 = vcombine.high %v372_v9, %v372_v9  ;;  %v5300_v15 = vld [vmem:[%s9332_s1 + $0x140] sm:$0xff]  ;;  %v5307_v23 = vld [vmem:[%s9332_s1 + $0x178] sm:$0xf]  ;;  %vm2123_vm11 = vcmask 1041409   ;;  %vm2743_vm12 = vcmask 1040384  }
  0x26   :  { %573 = vmatprep.subr.mxu1 %v5269_v0  ;;  %5308 = vmatprep.subr.msk.mxu0 %vm113_vm0, %v5305_v1  ;;  %v373_v16 = vld [vmem:[#allocation2 + $0x29] sm:$0xff]  ;;  %v5296_v18 = vld [vmem:[%s9332_s1 + $0x120] sm:$0xff]  ;;  %v374_v24 = vld [vmem:[#allocation2 + $0x31] sm:$0xff] }
  0x27   :  { %5277 = vmatmul.mubr.msk.f32.gmra.mxu0 %vm27_vm1, %v6336_v62  ;;  %574 = vmatpush1.msra.mxu1 %v5268_v2  ;;  %v5297_v17 = vld [vmem:[%s9332_s1 + $0x128] sm:$0xff]  ;;  %v6398_v19 = vcombine.low %v387_v13, %v373_v16  ;;  %v388_v20 = vcombine.high %v373_v16, %v373_v16  ;;  %v5292_v25 = vld [vmem:[%s9332_s1 + $0x100] sm:$0xff]  ;;  %v389_v27 = vcombine.high %v374_v24, %v374_v24  ;;  %v740_v34 = vld [vmem:[#allocation2 + $0x12] sm:$0xff] }
  0x28   :  { %5252 = vmatmul.mubr.msk.f32.gmra.mxu1 %vm27_vm1, %v6270_v37  ;;  %516 = vmatprep.mubr.f32.mxu0 %v6111_v6  ;;  %v5293_v22 = vld [vmem:[%s9332_s1 + $0x108] sm:$0xff]  ;;  %v5306_v35 = vld [vmem:[%s9332_s1 + $0x170] sm:$0xf]  ;;  %v756_v37 = vcombine.high %v740_v34, %v740_v34  ;;  %v5303_v38 = vld [vmem:[%s9332_s1 + $0x158] sm:$0xff] }
  0x29   :  { %309 = vmatprep.mubr.f32.mxu1 %v6111_v6  ;;  %575 = vmatprep.subr.mxu1 %v5265_v3  ;;  %v6416_v26 = vcombine.low %v388_v20, %v374_v24  ;;  %v738_v28 = vld [vmem:[#allocation2 + $0x2] sm:$0xff]  ;;  %v739_v32 = vld [vmem:[#allocation2 + $0xa] sm:$0xff]  ;;  %v5299_v40 = vld [vmem:[%s9332_s1 + $0x138] sm:$0xff] }
  0x2a   :  { %576 = vmatpush1.msra.mxu1 %v5264_v5  ;;  %5309 = vmatpush1.msk.msra.mxu0 %vm113_vm0, %v5304_v7  ;;  %v754_v31 = vcombine.high %v738_v28, %v738_v28  ;;  %v755_v33 = vcombine.high %v739_v32, %v739_v32  ;;  %v5302_v39 = vld [vmem:[%s9332_s1 + $0x150] sm:$0xff]  ;;  %v741_v43 = vld [vmem:[#allocation2 + $0x1a] sm:$0xf]  ;;  %v742_v44 = vld [vmem:[#allocation2 + $0x22] sm:$0xff] }
  0x2b   :  { %5278 = vmatmul.mubr.msk.f32.gmra.mxu0 %vm27_vm1, %v6357_v4  ;;  %577 = vmatprep.subr.mxu1 %v5261_v10  ;;  %v5298_v42 = vld [vmem:[%s9332_s1 + $0x130] sm:$0xff]  ;;  %v5295_v45 = vld [vmem:[%s9332_s1 + $0x118] sm:$0xff]  ;;  %v757_v48 = vcombine.high %v742_v44, %v742_v44  ;;  %v2322_v59 = vld [vmem:[%s9334_s3 + $0x1e0] sm:$0xff] }
  0x2c   :  { %5253 = vmatmul.mubr.msk.f32.gmra.mxu1 %vm27_vm1, %v6293_v47  ;;  %522 = vmatprep.mubr.f32.mxu0 %v6111_v6  ;;  %v778_v36 = vcombine.low %v739_v32, %v755_v33  ;;  %v5294_v46 = vld [vmem:[%s9332_s1 + $0x110] sm:$0xff]  ;;  %v780_v47 = vcombine.low %v741_v43, %v742_v44  ;;  %v745_v55 = vld [vmem:[#allocation2 + $0x3a] sm:$0xf]  ;;  %v2319_v60 = vld [vmem:[%s9334_s3 + $0x1c8] sm:$0xff]  ;;  %s6114_s1 = smov [#allocation7]  }
  0x2d   :  { %315 = vmatprep.mubr.f32.mxu1 %v6111_v6  ;;  %836 = vmatprep.subr.mxu0 %v5301_v11  ;;  %v743_v49 = vld [vmem:[#allocation2 + $0x2a] sm:$0xff]  ;;  %v744_v52 = vld [vmem:[#allocation2 + $0x32] sm:$0xff]  ;;  %v2314_v2 = vld [vmem:[%s9334_s3 + $0x1a0] sm:$0xff]  ;;  %s5232_s0 = sshll.u32 %s6114_s1, 4  ;;  %s5233_s0 = int_to_ptr.vmem [resolvable:$true] %s5232_s0 }
  0x2e   :  { %578 = vmatpush1.msra.mxu1 %v5260_v14  ;;  %837 = vmatpush1.msra.mxu0 %v5300_v15  ;;  %v781_v50 = vcombine.low %v757_v48, %v743_v49  ;;  %v759_v54 = vcombine.high %v744_v52, %v744_v52  ;;  %v2325_v58 = vld [vmem:[%s9334_s3 + $0x1f8] sm:$0xff]  ;;  %v2320_v63 = vld [vmem:[%s9334_s3 + $0x1d0] sm:$0xff]  ;;  %v2315_v0 = vld [vmem:[%s9334_s3 + $0x1a8] sm:$0xff]  ;;  %s6089_s18 = scalar_lea.vmem %s5233_s0, 32  ;;  %p6094_p1 = scmp.lt.s32.totalorder %s5233_s0, %s5233_s0 }
  0x2f   :  { %5279 = vmatmul.mubr.msk.f32.gmra.mxu0 %vm27_vm1, %v6378_v12  ;;  %838 = vmatprep.subr.mxu0 %v5297_v17  ;;  %v2321_v61 = vld [vmem:[%s9334_s3 + $0x1d8] sm:$0xff]  ;;  %v2316_v3 = vld [vmem:[%s9334_s3 + $0x1b0] sm:$0xff]  ;;  %v2310_v7 = vld [vmem:[%s9334_s3 + $0x180] sm:$0xff]  ;;  %p6090_p0 = scmp.ne.s32.totalorder %s5233_s0, %s6089_s18  ;;  %p6095_p2 = scmp.lt.s32.totalorder %s6089_s18, %s6089_s18 }
  0x30   :  { %5254 = vmatmul.mubr.msk.f32.gmra.mxu1 %vm27_vm1, %v6249_v21  ;;  %528 = vmatprep.mubr.f32.mxu0 %v6111_v6  ;;  %v375_v21 = vld [vmem:[#allocation2 + $0x39] sm:$0xf]  ;;  %v783_v56 = vcombine.low %v759_v54, %v745_v55  ;;  %v2312_v8 = vld [vmem:[%s9334_s3 + $0x190] sm:$0xff]  ;;  %v2307_v9 = vld [vmem:[%s9334_s3 + $0x168] sm:$0xff] }
  0x31   :  { %321 = vmatprep.mubr.f32.mxu1 %v6111_v6  ;;  %839 = vmatpush1.msra.mxu0 %v5296_v18  ;;  %v6424_v30 = vcombine.low %v389_v27, %v375_v21  ;;  %v2317_v1 = vld [vmem:[%s9334_s3 + $0x1b8] sm:$0xff]  ;;  %v2306_v11 = vld [vmem:[%s9334_s3 + $0x160] sm:$0xff]  ;;  %v2303_v13 = vld [vmem:[%s9334_s3 + $0x148] sm:$0xff]  ;;  %p6096_p3 = por %p6095_p2, %p6094_p1 }
  0x32   :  { %840 = vmatprep.subr.mxu0 %v5293_v22  ;;  %5317 = vmatprep.subr.msk.mxu1 %vm113_vm0, %v5307_v23  ;;  %v2313_v5 = vld [vmem:[%s9334_s3 + $0x198] sm:$0xff]  ;;  %v2302_v15 = vld [vmem:[%s9334_s3 + $0x140] sm:$0xff]  ;;  %v2304_v16 = vld [vmem:[%s9334_s3 + $0x150] sm:$0xff] }
  0x33   :  { %5280 = vmatmul.mubr.msk.f32.gmra.mxu0 %vm27_vm1, %v6398_v19  ;;  %v2309_v10 = vld [vmem:[%s9334_s3 + $0x178] sm:$0xff]  ;;  %v2299_v17 = vld [vmem:[%s9334_s3 + $0x128] sm:$0xff]  ;;  %v2300_v20 = vld [vmem:[%s9334_s3 + $0x130] sm:$0xff]  ;;  %p6097_p4 = pnand %p6096_p3, %p6090_p0 }
  0x34   :  { %5255 = vmatmul.mubr.msk.f32.gmra.mxu1 %vm27_vm1, %v6259_v29  ;;  %534 = vmatprep.mubr.f32.mxu0 %v6111_v6  ;;  %v777_v29 = vcombine.low %v738_v28, %v754_v31  ;;  %v2305_v14 = vld [vmem:[%s9334_s3 + $0x158] sm:$0xff]  ;;  %v2295_v22 = vld [vmem:[%s9334_s3 + $0x108] sm:$0xff]  ;;  %v2294_v24 = vld [vmem:[%s9334_s3 + $0x100] sm:$0xff] }
  0x35   :  { %327 = vmatprep.mubr.f32.mxu1 %v6111_v6  ;;  %841 = vmatpush1.msra.mxu0 %v5292_v25  ;;  %v2301_v18 = vld [vmem:[%s9334_s3 + $0x138] sm:$0xff]  ;;  %v2296_v25 = vld [vmem:[%s9334_s3 + $0x110] sm:$0xff]  ;;  %v2290_v21 = vld [vmem:[%s9334_s3 + $0xe0] sm:$0xff] }
  0x36   :  { %v2297_v23 = vld [vmem:[%s9334_s3 + $0x118] sm:$0xff]  ;;  %v2292_v28 = vld [vmem:[%s9334_s3 + $0xf0] sm:$0xff]  ;;  %v2283_v44 = vld [vmem:[%s9334_s3 + $0xa8] sm:$0xff] }
  0x37   :  { %5281 = vmatmul.mubr.msk.f32.gmra.mxu0 %vm27_vm1, %v6416_v26  ;;  %v2293_v27 = vld [vmem:[%s9334_s3 + $0xf8] sm:$0xff]  ;;  %v2284_v48 = vld [vmem:[%s9334_s3 + $0xb0] sm:$0xff]  ;;  %vm7548_vm13 = vmor %vm2743_vm12, %vm2105_vm5 }
  0x38   :  { %5256 = vmatmul.mubr.msk.f32.gmra.mxu1 %vm27_vm1, %v6281_v41  ;;  %540 = vmatprep.mubr.f32.mxu0 %v6111_v6  ;;  %v779_v41 = vcombine.low %v740_v34, %v756_v37  ;;  %vm7576_vm14 = vmor %vm7548_vm13, %vm2109_vm7 }
  0x39   :  { %333 = vmatprep.mubr.f32.mxu1 %v6111_v6  ;;  %vm7604_vm15 = vmor %vm7576_vm14, %vm2113_vm9 }
  0x3b   :  { %5282 = vmatmul.mubr.msk.f32.gmra.mxu0 %vm27_vm1, %v6424_v30 }
  0x3c   :  { %5257 = vmatmul.mubr.msk.f32.gmra.mxu1 %vm27_vm1, %v6304_v51  ;;  %874 = vmatprep.mubr.f32.mxu0 %v6111_v6  ;;  %v758_v51 = vcombine.high %v743_v49, %v743_v49 }
  0x3d   :  { %611 = vmatprep.mubr.f32.mxu1 %v6111_v6 }
  0x3e   :  { %v782_v53 = vcombine.low %v758_v51, %v744_v52 }
  0x3f   :  { %5310 = vmatmul.mubr.msk.f32.vlgmr.msra.gmra.mxu0 %vm27_vm1, %v777_v29 }
  0x40   :  { %5285 = vmatmul.mubr.msk.f32.vlgmr.msra.gmra.mxu1 %vm27_vm1, %v6321_v57  ;;  %880 = vmatprep.mubr.f32.mxu0 %v6111_v6  ;;  %v2323_v57 = vld [vmem:[%s9334_s3 + $0x1e8] sm:$0xff] }
  0x41   :  { %5318 = vmatpush1.msk.msra.mxu1 %vm113_vm0, %v5306_v35  ;;  %617 = vmatprep.mubr.f32.mxu1 %v6111_v6 }
  0x42   :  { %943 = vmatprep.subr.mxu1 %v5303_v38  ;;  %2461 = vmatprep.subr.mxu0 %v2323_v57  ;;  %v2287_v38 = vld [vmem:[%s9334_s3 + $0xc8] sm:$0xff] }
  0x43   :  { %5311 = vmatmul.mubr.msk.f32.gmra.mxu0 %vm27_vm1, %v778_v36  ;;  %944 = vmatpush1.msra.mxu1 %v5302_v39  ;;  %v2289_v39 = vld [vmem:[%s9334_s3 + $0xd8] sm:$0xff] }
  0x44   :  { %5286 = vmatmul.mubr.msk.f32.gmra.mxu1 %vm27_vm1, %v6336_v62  ;;  %886 = vmatprep.mubr.f32.mxu0 %v6111_v6  ;;  %v2318_v62 = vld [vmem:[%s9334_s3 + $0x1c0] sm:$0xff] }
  0x45   :  { %623 = vmatprep.mubr.f32.mxu1 %v6111_v6  ;;  %945 = vmatprep.subr.mxu1 %v5299_v40 }
  0x46   :  { %946 = vmatpush1.msra.mxu1 %v5298_v42  ;;  %2462 = vmatpush1.msra.mxu0 %v2322_v59  ;;  %v2288_v42 = vld [vmem:[%s9334_s3 + $0xd0] sm:$0xff] }
  0x47   :  { %5312 = vmatmul.mubr.msk.f32.gmra.mxu0 %vm27_vm1, %v779_v41  ;;  %947 = vmatprep.subr.mxu1 %v5295_v45  ;;  %v2285_v45 = vld [vmem:[%s9334_s3 + $0xb8] sm:$0xff] }
  0x48   :  { %5287 = vmatmul.mubr.msk.f32.gmra.mxu1 %vm27_vm1, %v6357_v4  ;;  %892 = vmatprep.mubr.f32.mxu0 %v6111_v6  ;;  %v2311_v4 = vld [vmem:[%s9334_s3 + $0x188] sm:$0xff] }
  0x49   :  { %629 = vmatprep.mubr.f32.mxu1 %v6111_v6  ;;  %948 = vmatpush1.msra.mxu1 %v5294_v46 }
  0x4a   :  { %2550 = vmatprep.subr.mxu1 %v2325_v58  ;;  %2463 = vmatprep.subr.mxu0 %v2319_v60 }
  0x4b   :  { %5313 = vmatmul.mubr.msk.f32.gmra.mxu0 %vm27_vm1, %v780_v47 }
  0x4c   :  { %5288 = vmatmul.mubr.msk.f32.gmra.mxu1 %vm27_vm1, %v6378_v12  ;;  %898 = vmatprep.mubr.f32.mxu0 %v6111_v6  ;;  %v2308_v12 = vld [vmem:[%s9334_s3 + $0x170] sm:$0xff] }
  0x4d   :  { %635 = vmatprep.mubr.f32.mxu1 %v6111_v6  ;;  %2464 = vmatpush1.msra.mxu0 %v2318_v62 }
  0x4e   :  { %2465 = vmatprep.subr.mxu0 %v2315_v0 }
  0x4f   :  { %5314 = vmatmul.mubr.msk.f32.gmra.mxu0 %vm27_vm1, %v781_v50 }
  0x50   :  { %5289 = vmatmul.mubr.msk.f32.gmra.mxu1 %vm27_vm1, %v6398_v19  ;;  %904 = vmatprep.mubr.f32.mxu0 %v6111_v6  ;;  %v2298_v19 = vld [vmem:[%s9334_s3 + $0x120] sm:$0xff] }
  0x51   :  { %641 = vmatprep.mubr.f32.mxu1 %v6111_v6  ;;  %2466 = vmatpush1.msra.mxu0 %v2314_v2  ;;  %v2279_v2 = vld [vmem:[%s9334_s3 + $0x88] sm:$0xff] }
  0x52   :  { %2467 = vmatprep.subr.mxu0 %v2311_v4 }
  0x53   :  { %5315 = vmatmul.mubr.msk.f32.gmra.mxu0 %vm27_vm1, %v782_v53 }
  0x54   :  { %5290 = vmatmul.mubr.msk.f32.gmra.mxu1 %vm27_vm1, %v6416_v26  ;;  %910 = vmatprep.mubr.f32.mxu0 %v6111_v6  ;;  %v2291_v26 = vld [vmem:[%s9334_s3 + $0xe8] sm:$0xff] }
  0x55   :  { %647 = vmatprep.mubr.f32.mxu1 %v6111_v6  ;;  %2468 = vmatpush1.msra.mxu0 %v2310_v7  ;;  %v2280_v7 = vld [vmem:[%s9334_s3 + $0x90] sm:$0xff] }
  0x56   :  { %2469 = vmatprep.subr.mxu0 %v2307_v9 }
  0x57   :  { %5316 = vmatmul.mubr.msk.f32.gmra.mxu0 %vm27_vm1, %v783_v56 }
  0x58   :  { %5291 = vmatmul.mubr.msk.f32.gmra.mxu1 %vm27_vm1, %v6424_v30  ;;  %2470 = vmatpush1.msra.mxu0 %v2306_v11 }
  0x59   :  { %981 = vmatprep.mubr.f32.mxu1 %v6111_v6  ;;  %2471 = vmatprep.subr.mxu0 %v2303_v13  ;;  %v2275_v13 = vld [vmem:[%s9334_s3 + $0x68] sm:$0xff] }
  0x5a   :  { %2472 = vmatpush1.msra.mxu0 %v2302_v15 }
  0x5b   :  { %2473 = vmatprep.subr.mxu0 %v2299_v17  ;;  %v2274_v17 = vld [vmem:[%s9334_s3 + $0x60] sm:$0xff] }
  0x5c   :  { %5319 = vmatmul.mubr.msk.f32.vlgmr.msra.gmra.mxu1 %vm27_vm1, %v777_v29  ;;  %2474 = vmatpush1.msra.mxu0 %v2298_v19 }
  0x5d   :  { %987 = vmatprep.mubr.f32.mxu1 %v6111_v6  ;;  %2475 = vmatprep.subr.mxu0 %v2295_v22 }
  0x5e   :  { %2476 = vmatpush1.msra.mxu0 %v2294_v24 }
  0x5f   :  { %2477 = vmatprep.subr.mxu0 %v2291_v26 }
  0x60   :  { %5320 = vmatmul.mubr.msk.f32.gmra.mxu1 %vm27_vm1, %v778_v36  ;;  %2478 = vmatpush1.msra.mxu0 %v2290_v21 }
  0x61   :  { %993 = vmatprep.mubr.f32.mxu1 %v6111_v6  ;;  %2479 = vmatprep.subr.mxu0 %v2287_v38 }
  0x64   :  { %5321 = vmatmul.mubr.msk.f32.gmra.mxu1 %vm27_vm1, %v779_v41  ;;  %v2286_v41 = vld [vmem:[%s9334_s3 + $0xc0] sm:$0xff] }
  0x65   :  { %999 = vmatprep.mubr.f32.mxu1 %v6111_v6  ;;  %2480 = vmatpush1.msra.mxu0 %v2286_v41  ;;  %v1138_v41 = vlaneseq }
  0x66   :  { %2481 = vmatprep.subr.mxu0 %v2283_v44 }
  0x68   :  { %5322 = vmatmul.mubr.msk.f32.gmra.mxu1 %vm27_vm1, %v780_v47  ;;  %v2282_v47 = vld [vmem:[%s9334_s3 + $0xa0] sm:$0xff] }
  0x69   :  { %1005 = vmatprep.mubr.f32.mxu1 %v6111_v6  ;;  %2482 = vmatpush1.msra.mxu0 %v2282_v47 }
  0x6a   :  { %2483 = vmatprep.subr.mxu0 %v2279_v2  ;;  %v2273_v2 = vld [vmem:[%s9334_s3 + $0x58] sm:$0xff] }
  0x6c   :  { %5323 = vmatmul.mubr.msk.f32.gmra.mxu1 %vm27_vm1, %v781_v50 }
  0x6d   :  { %1011 = vmatprep.mubr.f32.mxu1 %v6111_v6 }
  0x70   :  { %5324 = vmatmul.mubr.msk.f32.gmra.mxu1 %vm27_vm1, %v782_v53 }
  0x71   :  { %1017 = vmatprep.mubr.f32.mxu1 %v6111_v6  ;;  %v2324_v6 = vld [vmem:[%s9334_s3 + $0x1f0] sm:$0xff] }
  0x72   :  { %2551 = vmatpush1.msra.mxu1 %v2324_v6 }
  0x73   :  { %2552 = vmatprep.subr.mxu1 %v2321_v61 }
  0x74   :  { %5325 = vmatmul.mubr.msk.f32.gmra.mxu1 %vm27_vm1, %v783_v56 }
  0x75   :  { %2553 = vmatpush1.msra.mxu1 %v2320_v63 }
  0x76   :  { %2554 = vmatprep.subr.mxu1 %v2317_v1 }
  0x77   :  { %2555 = vmatpush1.msra.mxu1 %v2316_v3  ;;  %v2281_v3 = vld [vmem:[%s9334_s3 + $0x98] sm:$0xff] }
  0x78   :  { %2556 = vmatprep.subr.mxu1 %v2313_v5  ;;  %v2278_v5 = vld [vmem:[%s9334_s3 + $0x80] sm:$0xff] }
  0x79   :  { %2557 = vmatpush1.msra.mxu1 %v2312_v8  ;;  %2484 = vmatpush1.msra.mxu0 %v2278_v5  ;;  %v2272_v5 = vld [vmem:[%s9334_s3 + $0x50] sm:$0xff] }
  0x7a   :  { %2558 = vmatprep.subr.mxu1 %v2309_v10  ;;  %2485 = vmatprep.subr.mxu0 %v2275_v13 }
  0x7b   :  { %2559 = vmatpush1.msra.mxu1 %v2308_v12  ;;  %2486 = vmatpush1.msra.mxu0 %v2274_v17  ;;  %v2267_v17 = vld [vmem:[%s9334_s3 + $0x28] sm:$0xff] }
  0x7c   :  { %2560 = vmatprep.subr.mxu1 %v2305_v14  ;;  %v2277_v14 = vld [vmem:[%s9334_s3 + $0x78] sm:$0xff] }
  0x7d   :  { %2561 = vmatpush1.msra.mxu1 %v2304_v16 }
  0x7e   :  { %2562 = vmatprep.subr.mxu1 %v2301_v18  ;;  %v2276_v18 = vld [vmem:[%s9334_s3 + $0x70] sm:$0xff] }
  0x7f   :  { %2563 = vmatpush1.msra.mxu1 %v2300_v20 }
  0x80   :  { %2564 = vmatprep.subr.mxu1 %v2297_v23 }
  0x81   :  { %2565 = vmatpush1.msra.mxu1 %v2296_v25 }
  0x82   :  { %2566 = vmatprep.subr.mxu1 %v2293_v27 }
  0x83   :  { %2567 = vmatpush1.msra.mxu1 %v2292_v28 }
  0x84   :  { %2568 = vmatprep.subr.mxu1 %v2289_v39 }
  0x85   :  { %2569 = vmatpush1.msra.mxu1 %v2288_v42 }
  0x86   :  { %2570 = vmatprep.subr.mxu1 %v2285_v45 }
  0x87   :  { %2571 = vmatpush1.msra.mxu1 %v2284_v48 }
  0x88   :  { %2572 = vmatprep.subr.mxu1 %v2281_v3 }
  0x89   :  { %2573 = vmatpush1.msra.mxu1 %v2280_v7 }
  0x8a   :  { %2574 = vmatprep.subr.mxu1 %v2277_v14 }
  0x8b   :  { %2575 = vmatpush1.msra.mxu1 %v2276_v18  ;;  %v2269_v18 = vld [vmem:[%s9334_s3 + $0x38] sm:$0xff] }
  0x8c   :  { %2576 = vmatprep.subr.mxu1 %v2273_v2 }
  0x8d   :  { %2577 = vmatpush1.msra.mxu1 %v2272_v5 }
  0x8e   :  { %2578 = vmatprep.subr.mxu1 %v2269_v18 }
  0xd4   :  { %v210_v30 = vpop.f32.mrf.mxu1 }
  0xd6   :  { %v6613_v31 = vpop.f32.mrf.mxu1 }
  0xd7   :  { %v6615_v32 = vpop.f32.mrf.mxu0 }
  0xd8   :  { %v216_v29 = vpop.f32.mrf.mxu1 }
  0xd9   :  { %v6617_v33 = vpop.f32.mrf.mxu0 }
  0xda   :  { %v218_v34 = vpop.f32.mrf.mxu1 }
  0xdb   :  { %v6619_v35 = vpop.f32.mrf.mxu0 }
  0xdc   :  { %v6621_v36 = vpop.f32.mrf.mxu1 }
  0xdd   :  { %v6623_v37 = vpop.f32.mrf.mxu0 }
  0xde   :  { %v6631_v40 = vpop.f32.mrf.mxu1 }
  0xdf   :  { %v204_v43 = vpop.f32.mrf.mxu0 }
  0xe0   :  { %v228_v46 = vpop.f32.mrf.mxu1 }
  0xe1   :  { %v6651_v49 = vpop.f32.mrf.mxu0 }
  0xe2   :  { %v230_v50 = vpop.f32.mrf.mxu1 }
  0xe3   :  { %v6653_v51 = vpop.f32.mrf.mxu0 }
  0xe4   :  { %v6655_v52 = vpop.f32.mrf.mxu1 }
  0xe5   :  { %v6657_v53 = vpop.f32.mrf.mxu0 }
  0xe6   :  { %v6659_v54 = vpop.f32.mrf.mxu1 }
  0xe7   :  { %v6661_v55 = vpop.f32.mrf.mxu0 }
  0xe8   :  { %v6663_v56 = vpop.f32.mrf.mxu1 }
  0xe9   :  { %v6665_v57 = vpop.f32.mrf.mxu0 }
  0xea   :  { %v6667_v58 = vpop.f32.mrf.mxu1 }
  0xeb   :  { %v518_v59 = vpop.f32.mrf.mxu0 }
  0xec   :  { %v6669_v6 = vadd.f32 %v518_v59, %v204_v43  ;;  %v311_v60 = vpop.f32.mrf.mxu1 }
  0xed   :  { %v6671_v61 = vpop.f32.mrf.mxu0 }
  0xee   :  { %v6673_v62 = vpop.f32.mrf.mxu1 }
  0xef   :  { %v524_v63 = vpop.f32.mrf.mxu0 }
  0xf0   :  { %v6675_v0 = vadd.f32 %v524_v63, %v210_v30  ;;  %v6677_v1 = vpop.f32.mrf.mxu1  ;;  %v2271_v63 = vld [vmem:[%s9334_s3 + $0x48] sm:$0xff] }
  0xf1   :  { %v6685_v4 = vpop.f32.mrf.mxu0  ;;  %2487 = vmatprep.subr.mxu0 %v2271_v63 }
  0xf2   :  { %v6693_v8 = vpop.f32.mrf.mxu1 }
  0xf3   :  { %v530_v9 = vpop.f32.mrf.mxu0 }
  0xf4   :  { %v6695_v10 = vadd.f32 %v530_v9, %v216_v29  ;;  %v6697_v11 = vpop.f32.mrf.mxu1 }
  0xf5   :  { %v532_v12 = vpop.f32.mrf.mxu0 }
  0xf6   :  { %v6705_v15 = vadd.f32 %v532_v12, %v218_v34  ;;  %v6707_v16 = vpop.f32.mrf.mxu1  ;;  %v1136_v12 = vld [vmem:[%s9333_s2] sm:$0xf] }
  0xf7   :  { %v536_v19 = vpop.f32.mrf.mxu0 }
  0xf8   :  { %v6716_v20 = vadd.f32 %v536_v19, %v6621_v36  ;;  %v6718_v22 = vpop.f32.mrf.mxu1 }
  0xf9   :  { %v538_v23 = vpop.f32.mrf.mxu0 }
  0xfa   :  { %v6721_v24 = vadd.f32 %v538_v23, %v6631_v40  ;;  %v6723_v25 = vpop.f32.mrf.mxu1 }
  0xfb   :  { %v542_v26 = vpop.f32.mrf.mxu0 }
  0xfc   :  { %v6725_v27 = vadd.f32 %v542_v26, %v228_v46  ;;  %v6727_v21 = vpop.f32.mrf.mxu1  ;;  %v6751_v46 = vshrl.u32 %v1138_v41, 7  ;;  %v2268_v26 = vld [vmem:[%s9334_s3 + $0x30] sm:$0xff] }
  0xfd   :  { %v544_v28 = vpop.f32.mrf.mxu0  ;;  %2579 = vmatpush1.msra.mxu1 %v2268_v26 }
  0xfe   :  { %v6729_v30 = vadd.f32 %v544_v28, %v230_v50  ;;  %v6731_v29 = vpop.f32.mrf.mxu1  ;;  %v9340_v7 = vsub.s32 0, %v6751_v46  ;;  %v9339_v19 = vsub.s32 1, %v6751_v46 }
  0xff   :  { %v6733_v34 = vpop.f32.mrf.mxu0 }
 0x100   :  { %v6735_v36 = vpop.f32.mrf.mxu1  ;;  %v6799_v41 = vrot.slane %v1136_v12, %v9340_v7  ;;  %v6807_v5 = vrot.slane %v1136_v12, %v9339_v19  ;;  %v683_v7 = vadd.f32 %v6657_v53, %v6617_v33  ;;  %v686_v33 = vadd.f32 %v6661_v55, %v6619_v35 }
 0x101   :  { %v6737_v38 = vpop.f32.mrf.mxu0  ;;  %v695_v35 = vadd.f32 %v6685_v4, %v6613_v31 }
 0x102   :  { %v6739_v39 = vpop.f32.mrf.mxu1  ;;  %v1053_v53 = vadd.f32 %v6737_v38, %v683_v7 }
 0x103   :  { %v6741_v40 = vpop.f32.mrf.mxu0  ;;  %v685_v4 = vadd.f32 %v6739_v39, %v6659_v54 }
 0x104   :  { %v6743_v42 = vpop.f32.mrf.mxu1  ;;  %v1056_v55 = vadd.f32 %v6741_v40, %v686_v33  ;;  %v6876_v31 = vadd.f32 %v6807_v5, %v1053_v53 }
 0x105   :  { %v6745_v43 = vpop.f32.mrf.mxu0 }
 0x106   :  { %v6747_v44 = vpop.f32.mrf.mxu1 }
 0x107   :  { %v6749_v45 = vpop.f32.mrf.mxu0 }
 0x108   :  { %v625_v47 = vpop.f32.mrf.mxu1 }
 0x109   :  { %v6753_v48 = vadd.f32 %v625_v47, %v311_v60  ;;  %v6755_v50 = vpop.f32.mrf.mxu0  ;;  %v2270_v60 = vld [vmem:[%s9334_s3 + $0x40] sm:$0xff] }
 0x10a   :  { %v6757_v59 = vpop.f32.mrf.mxu1  ;;  %2488 = vmatpush1.msra.mxu0 %v2270_v60 }
 0x10b   :  { %v6765_v3 = vpop.f32.mrf.mxu0  ;;  %2489 = vmatprep.subr.mxu0 %v2267_v17 }
 0x10c   :  { %v631_v9 = vpop.f32.mrf.mxu1 }
 0x10d   :  { %v6778_v13 = vadd.f32 %v631_v9, %v6677_v1  ;;  %v6780_v14 = vpop.f32.mrf.mxu0  ;;  %v2266_v1 = vld [vmem:[%s9334_s3 + $0x20] sm:$0xff] }
 0x10e   :  { %v6789_v23 = vpop.f32.mrf.mxu1  ;;  %2490 = vmatpush1.msra.mxu0 %v2266_v1 }
 0x10f   :  { %v900_v28 = vpop.f32.mrf.mxu0 }
 0x110   :  { %v1068_v47 = vadd.f32 %v900_v28, %v6695_v10  ;;  %v637_v63 = vpop.f32.mrf.mxu1 }
 0x111   :  { %v6803_v2 = vadd.f32 %v637_v63, %v6697_v11  ;;  %v902_v60 = vpop.f32.mrf.mxu0 }
 0x112   :  { %v6810_v9 = vadd.f32 %v6799_v41, %v1068_v47  ;;  %v1069_v17 = vadd.f32 %v902_v60, %v6705_v15  ;;  %v639_v18 = vpop.f32.mrf.mxu1  ;;  %v682_v47 = vadd.f32 %v6653_v51, %v6615_v32  ;;  %v9341_v51 = vsub.s32 2, %v6751_v46 }
 0x113   :  { %v6814_v1 = vadd.f32 %v639_v18, %v6707_v16  ;;  %v906_v26 = vpop.f32.mrf.mxu0  ;;  %v6112_v16 = vmov 1983009808  }
 0x114   :  { %v6819_v28 = vadd.f32 %v6807_v5, %v1069_v17  ;;  %v1072_v63 = vadd.f32 %v906_v26, %v6716_v20  ;;  %v643_v19 = vpop.f32.mrf.mxu1  ;;  %v1245_v18 = vunpack.c.l.s4 %v6112_v16  ;;  %v1052_v20 = vadd.f32 %v6733_v34, %v682_v47 }
 0x115   :  { %v6825_v15 = vadd.f32 %v643_v19, %v6718_v22  ;;  %v908_v60 = vpop.f32.mrf.mxu0  ;;  %v6839_v22 = vrot.slane %v1136_v12, %v9341_v51  ;;  %v9342_v19 = vsub.s32 3, %v6751_v46 }
 0x116   :  { %v6830_v11 = vadd.f32 %v6799_v41, %v1072_v63  ;;  %v1073_v17 = vadd.f32 %v908_v60, %v6721_v24  ;;  %v645_v10 = vpop.f32.mrf.mxu1  ;;  %v691_v63 = vadd.f32 %v6671_v61, %v6651_v49  ;;  %v1246_v60 = vunpack.c.0.s8 %v1245_v18 }
 0x117   :  { %v6835_v26 = vadd.f32 %v645_v10, %v6723_v25  ;;  %v912_v32 = vpop.f32.mrf.mxu0  ;;  %v6843_v16 = vrot.slane %v1136_v12, %v9342_v19  ;;  %v687_v10 = vadd.f32 %v6665_v57, %v6623_v37  ;;  %v6867_v37 = vadd.f32 %v6799_v41, %v1052_v20 }
 0x118   :  { %v6849_v24 = vadd.f32 %v6807_v5, %v1073_v17  ;;  %v1076_v25 = vadd.f32 %v912_v32, %v6725_v27  ;;  %v649_v34 = vpop.f32.mrf.mxu1  ;;  %v684_v49 = vadd.f32 %v6735_v36, %v6655_v52  ;;  %v2263_v52 = vld [vmem:[%s9334_s3 + $0x8] sm:$0xff]  ;;  %v688_v36 = vadd.f32 %v6743_v42, %v6663_v56  ;;  %v2389_v17 = vld [vmem:[%s9334_s3 + $0x3f8] sm:$0xff] }
 0x119   :  { %v6857_v12 = vadd.f32 %v649_v34, %v6727_v21  ;;  %v914_v47 = vpop.f32.mrf.mxu0  ;;  %v1057_v57 = vadd.f32 %v6745_v43, %v687_v10  ;;  %v1060_v21 = vadd.f32 %v6749_v45, %v6669_v6  ;;  %v1061_v54 = vadd.f32 %v6755_v50, %v691_v63  ;;  %2491 = vmatprep.subr.mxu0 %v2263_v52  ;;  %v2262_v6 = vld [vmem:[%s9334_s3] sm:$0xff]  ;;  %v2264_v43 = vld [vmem:[%s9334_s3 + $0x10] sm:$0xff]  ;;  %v2387_v50 = vld [vmem:[%s9334_s3 + $0x3e8] sm:$0xff] }
 0x11a   :  { %v6863_v38 = vadd.f32 %v6799_v41, %v1076_v25  ;;  %v1077_v27 = vadd.f32 %v914_v47, %v6729_v30  ;;  %v651_v7 = vpop.f32.mrf.mxu1  ;;  %v6901_v45 = vadd.f32 %v6799_v41, %v1056_v55  ;;  %v1064_v18 = vadd.f32 %v6765_v3, %v6675_v0  ;;  %2492 = vmatpush1.msra.mxu0 %v2262_v6  ;;  %v2386_v0 = vld [vmem:[%s9334_s3 + $0x3e0] sm:$0xff]  ;;  %v2388_v3 = vld [vmem:[%s9334_s3 + $0x3f0] sm:$0xff]  ;;  %v2383_v34 = vld [vmem:[%s9334_s3 + $0x3c8] sm:$0xff] }
 0x11b   :  { %v6873_v61 = vadd.f32 %v651_v7, %v6731_v29  ;;  %v2265_v29 = vld [vmem:[%s9334_s3 + $0x18] sm:$0xff]  ;;  %v1065_v56 = vadd.f32 %v6780_v14, %v695_v35  ;;  %v6913_v20 = vadd.f32 %v6807_v5, %v1057_v57  ;;  %2493 = vmatprep.subr.mxu0 %v2387_v50  ;;  %v1186_v14 = vmax.f32 %v6867_v37, 0.0  ;;  %v2384_v35 = vld [vmem:[%s9334_s3 + $0x3d0] sm:$0xff]  ;;  %v2379_v57 = vld [vmem:[%s9334_s3 + $0x3a8] sm:$0xff] }
 0x11c   :  { %v6883_v30 = vadd.f32 %v6807_v5, %v1077_v27  ;;  %v983_v40 = vpop.f32.mrf.mxu1  ;;  %2580 = vmatprep.subr.mxu1 %v2265_v29  ;;  %v689_v19 = vadd.f32 %v6747_v44, %v6667_v58  ;;  %v6926_v33 = vadd.f32 %v6799_v41, %v1060_v21  ;;  %v6929_v53 = vsub.s32 %v1246_v60, %v6751_v46  ;;  %v2385_v10 = vld [vmem:[%s9334_s3 + $0x3d8] sm:$0xff]  ;;  %v2382_v60 = vld [vmem:[%s9334_s3 + $0x3c0] sm:$0xff]  ;;  %v2380_v52 = vld [vmem:[%s9334_s3 + $0x3b0] sm:$0xff] }
 0x11d   :  { %v1054_v39 = vadd.f32 %v983_v40, %v684_v49  ;;  %2581 = vmatpush1.msra.mxu1 %v2264_v43  ;;  %2494 = vmatpush2.msra.mxu0 %v2386_v0  ;;  %v6938_v63 = vadd.f32 %v6807_v5, %v1061_v54  ;;  %v1187_v55 = vmax.f32 %v6876_v31, 0.0  ;;  %v1190_v27 = vmax.f32 %v6901_v45, 0.0  ;;  %v2375_v43 = vld [vmem:[%s9334_s3 + $0x388] sm:$0xff]  ;;  %v2373_v0 = vld [vmem:[%s9334_s3 + $0x378] sm:$0xff] }
 0x11e   :  { %v985_v42 = vpop.f32.mrf.mxu1  ;;  %2582 = vmatprep.subr.mxu1 %v2389_v17  ;;  %2495 = vmatprep.subr.mxu0 %v2383_v34  ;;  %v6950_v7 = vadd.f32 %v6799_v41, %v1064_v18  ;;  %v6953_v37 = vadd.f32 %v6807_v5, %v1065_v56  ;;  %v1191_v31 = vmax.f32 %v6913_v20, 0.0  ;;  %v2378_v5 = vld [vmem:[%s9334_s3 + $0x3a0] sm:$0xff]  ;;  %v1194_v29 = vmax.f32 %v6926_v33, 0.0  ;;  %v2377_v18 = vld [vmem:[%s9334_s3 + $0x398] sm:$0xff] }
 0x11f   :  { %v1160_v32 = vadd.f32 %v6839_v22, %v1054_v39  ;;  %v1055_v51 = vadd.f32 %v985_v42, %v685_v4  ;;  %2583 = vmatpush2.msra.mxu1 %v2388_v3  ;;  %2496 = vmatpush2.msra.mxu0 %v2382_v60  ;;  %v2381_v4 = vld [vmem:[%s9334_s3 + $0x3b8] sm:$0xff]  ;;  %v6974_v54 = vadd.f32 %v6789_v23, %v6693_v8  ;;  %v1195_v56 = vmax.f32 %v6938_v63, 0.0  ;;  %v2376_v23 = vld [vmem:[%s9334_s3 + $0x390] sm:$0xff]  ;;  %v2370_v34 = vld [vmem:[%s9334_s3 + $0x360] sm:$0xff] }
 0x120   :  { %v989_v25 = vpop.f32.mrf.mxu1  ;;  %2584 = vmatprep.subr.mxu1 %v2385_v10  ;;  %2497 = vmatprep.subr.mxu0 %v2379_v57  ;;  %v1198_v50 = vmax.f32 %v6950_v7, 0.0  ;;  %v2372_v10 = vld [vmem:[%s9334_s3 + $0x370] sm:$0xff] }
 0x121   :  { %v1188_v58 = vmax.f32 %v1160_v32, 0.0  ;;  %v1161_v44 = vadd.f32 %v6843_v16, %v1055_v51  ;;  %v1058_v47 = vadd.f32 %v989_v25, %v688_v36  ;;  %2585 = vmatpush2.msra.mxu1 %v2384_v35  ;;  %v693_v36 = vadd.f32 %v6757_v59, %v6673_v62  ;;  %2498 = vmatpush2.msra.mxu0 %v2378_v5  ;;  %v2374_v59 = vld [vmem:[%s9334_s3 + $0x380] sm:$0xff]  ;;  %v2368_v5 = vld [vmem:[%s9334_s3 + $0x350] sm:$0xff] }
 0x122   :  { %v991_v49 = vpop.f32.mrf.mxu1  ;;  %2586 = vmatprep.subr.mxu1 %v2381_v4  ;;  %2499 = vmatprep.subr.mxu0 %v2375_v43  ;;  %v2365_v43 = vld [vmem:[%s9334_s3 + $0x338] sm:$0xff] }
 0x123   :  { %v1189_v21 = vmax.f32 %v1161_v44, 0.0  ;;  %v1164_v41 = vadd.f32 %v6839_v22, %v1058_v47  ;;  %v1059_v40 = vadd.f32 %v991_v49, %v689_v19  ;;  %v1214_v39 = vmax.f32 %v1186_v14, %v1188_v58  ;;  %2587 = vmatpush2.msra.mxu1 %v2380_v52  ;;  %2500 = vmatpush2.msra.mxu0 %v2374_v59  ;;  %v2369_v49 = vld [vmem:[%s9334_s3 + $0x358] sm:$0xff] }
 0x124   :  { %v995_v6 = vpop.f32.mrf.mxu1  ;;  %2588 = vmatprep.subr.mxu1 %v2377_v18 }
 0x125   :  { %v1215_v42 = vmax.f32 %v1187_v55, %v1189_v21  ;;  %v1165_v62 = vadd.f32 %v6843_v16, %v1059_v40  ;;  %v1062_v8 = vadd.f32 %v995_v6, %v6753_v48  ;;  %v1192_v32 = vmax.f32 %v1164_v41, 0.0  ;;  %2589 = vmatpush2.msra.mxu1 %v2376_v23  ;;  %v2371_v48 = vld [vmem:[%s9334_s3 + $0x368] sm:$0xff]  ;;  %v2366_v40 = vld [vmem:[%s9334_s3 + $0x340] sm:$0xff] }
 0x126   :  { %v997_v51 = vpop.f32.mrf.mxu1  ;;  %2501 = vmatprep.subr.mxu0 %v2371_v48  ;;  %2590 = vmatprep.subr.mxu1 %v2373_v0  ;;  %v2367_v55 = vld [vmem:[%s9334_s3 + $0x348] sm:$0xff]  ;;  %v2361_v48 = vld [vmem:[%s9334_s3 + $0x318] sm:$0xff] }
 0x127   :  { %v1242_v14 = vcombine.low %v1214_v39, %v1215_v42  ;;  %v1243_v19 = vcombine.high %v1214_v39, %v1215_v42  ;;  %v1193_v25 = vmax.f32 %v1165_v62, 0.0  ;;  %v1168_v47 = vadd.f32 %v6839_v22, %v1062_v8  ;;  %2502 = vmatpush2.msra.mxu0 %v2370_v34  ;;  %2591 = vmatpush2.msra.mxu1 %v2372_v10  ;;  %v2364_v62 = vld [vmem:[%s9334_s3 + $0x330] sm:$0xff] }
 0x128   :  { %v1063_v60 = vadd.f32 %v997_v51, %v693_v36  ;;  %v1001_v35 = vpop.f32.mrf.mxu1  ;;  %2503 = vmatprep.subr.mxu0 %v2367_v55  ;;  %v1216_v52 = vmax.f32 %v1190_v27, %v1192_v32  ;;  %2592 = vmatprep.subr.mxu1 %v2369_v49  ;;  %v2359_v51 = vld [vmem:[%s9334_s3 + $0x308] sm:$0xff]  ;;  %v2357_v55 = vld [vmem:[%s9334_s3 + $0x2f8] sm:$0xff] }
 0x129   :  { %v1250_v4 = vrot.slane %v1242_v14, %v6929_v53  ;;  %v1257_v21 = vrot.slane %v1243_v19, %v6929_v53  ;;  %v1217_v41 = vmax.f32 %v1191_v31, %v1193_v25  ;;  %v1196_v36 = vmax.f32 %v1168_v47, 0.0  ;;  %2504 = vmatpush2.msra.mxu0 %v2366_v40  ;;  %v2363_v31 = vld [vmem:[%s9334_s3 + $0x328] sm:$0xff]  ;;  %2593 = vmatpush2.msra.mxu1 %v2368_v5  ;;  %v2360_v25 = vld [vmem:[%s9334_s3 + $0x310] sm:$0xff]  ;;  %v2354_v40 = vld [vmem:[%s9334_s3 + $0x2e0] sm:$0xff] }
 0x12a   :  { %v7028_v39 = vadd.f32 %v6843_v16, %v1063_v60  ;;  %v7031_v6 = vadd.f32 %v1001_v35, %v6778_v13  ;;  %v2362_v13 = vld [vmem:[%s9334_s3 + $0x320] sm:$0xff]  ;;  %2505 = vmatprep.subr.mxu0 %v2363_v31  ;;  %2594 = vmatprep.subr.mxu1 %v2365_v43  ;;  %v2355_v35 = vld [vmem:[%s9334_s3 + $0x2e8] sm:$0xff]  ;;  %v2356_v5 = vld [vmem:[%s9334_s3 + $0x2f0] sm:$0xff] }
 0x12b   :  { %v1258_v18 = vcombine.high %v1250_v4, %v1250_v4  ;;  %v1259_v45 = vcombine.high %v1257_v21, %v1257_v21  ;;  %v1374_v27 = vrot.slane %v1250_v4, %v6929_v53  ;;  %v1390_v42 = vrot.slane %v1257_v21, %v6929_v53  ;;  %2506 = vmatpush2.msra.mxu0 %v2362_v13 }
 0x12c   :  { %v1260_v8 = vcombine.low %v1216_v52, %v1217_v41  ;;  %v1261_v59 = vcombine.high %v1216_v52, %v1217_v41  ;;  %v7049_v23 = vmax.f32 %v1194_v29, %v1196_v36  ;;  %v1197_v32 = vmax.f32 %v7028_v39, 0.0  ;;  %v2358_v29 = vld [vmem:[%s9334_s3 + $0x300] sm:$0xff]  ;;  %2595 = vmatpush2.msra.mxu1 %v2364_v62  ;;  %2507 = vmatprep.subr.mxu0 %v2359_v51 }
 0x12d   :  { %v1375_v0 = vcombine.high %v1374_v27, %v1374_v27  ;;  %v1382_v14 = vrot.slane %v1258_v18, %v6929_v53  ;;  %v1391_v19 = vcombine.high %v1390_v42, %v1390_v42  ;;  %v1398_v33 = vrot.slane %v1259_v45, %v6929_v53  ;;  %2596 = vmatprep.subr.mxu1 %v2361_v48  ;;  %v2351_v18 = vld [vmem:[%s9334_s3 + $0x2c8] sm:$0xff]  ;;  %v2353_v45 = vld [vmem:[%s9334_s3 + $0x2d8] sm:$0xff] }
 0x12e   :  { %v1649_v34 = vsel %vm1648_vm4, %v1374_v27, -inf  ;;  %v1677_v10 = vsel %vm1648_vm4, %v1390_v42, -inf  ;;  %v7069_v47 = vrot.slane %v1260_v8, %v6929_v53  ;;  %v7072_v60 = vrot.slane %v1261_v59, %v6929_v53  ;;  %2508 = vmatpush2.msra.mxu0 %v2358_v29  ;;  %2597 = vmatpush2.msra.mxu1 %v2360_v25  ;;  %v2350_v8 = vld [vmem:[%s9334_s3 + $0x2c0] sm:$0xff]  ;;  %v2352_v59 = vld [vmem:[%s9334_s3 + $0x2d0] sm:$0xff]  ;;  %v2349_v29 = vld [vmem:[%s9334_s3 + $0x2b8] sm:$0xff] }
 0x12f   :  { %v1383_v49 = vcombine.high %v1382_v14, %v1382_v14  ;;  %v1399_v4 = vcombine.high %v1398_v33, %v1398_v33  ;;  %v1650_v21 = vrot.slane %v1649_v34, 4  ;;  %v1656_v41 = vsel %vm1648_vm4, %v1375_v0, -inf  ;;  %2509 = vmatprep.subr.mxu0 %v2355_v35  ;;  %2598 = vmatprep.subr.mxu1 %v2357_v55 }
 0x130   :  { %v1657_v52 = vrot.slane %v1656_v41, 4  ;;  %v1663_v36 = vsel %vm1648_vm4, %v1382_v14, -inf  ;;  %v1678_v31 = vrot.slane %v1677_v10, 4  ;;  %v1684_v43 = vsel %vm1648_vm4, %v1391_v19, -inf  ;;  %2510 = vmatpush2.msra.mxu0 %v2354_v40  ;;  %2599 = vmatpush2.msra.mxu1 %v2356_v5  ;;  %v2347_v19 = vld [vmem:[%s9334_s3 + $0x2a8] sm:$0xff] }
 0x131   :  { %v1651_v27 = vmax.f32 %v1649_v34, %v1650_v21  ;;  %v1664_v42 = vrot.slane %v1663_v36, 4  ;;  %v1670_v13 = vsel %vm1648_vm4, %v1383_v49, -inf  ;;  %v1685_v62 = vrot.slane %v1684_v43, 4  ;;  %2511 = vmatprep.subr.mxu0 %v2351_v18  ;;  %2600 = vmatprep.subr.mxu1 %v2353_v45  ;;  %v2343_v5 = vld [vmem:[%s9334_s3 + $0x288] sm:$0xff]  ;;  %v2344_v45 = vld [vmem:[%s9334_s3 + $0x290] sm:$0xff] }
 0x132   :  { %v1658_v51 = vmax.f32 %v1656_v41, %v1657_v52  ;;  %v1671_v48 = vrot.slane %v1670_v13, 4  ;;  %v1679_v0 = vmax.f32 %v1677_v10, %v1678_v31  ;;  %v1691_v14 = vsel %vm1648_vm4, %v1398_v33, -inf  ;;  %2512 = vmatpush2.msra.mxu0 %v2350_v8  ;;  %v2346_v33 = vld [vmem:[%s9334_s3 + $0x2a0] sm:$0xff]  ;;  %v2348_v10 = vld [vmem:[%s9334_s3 + $0x2b0] sm:$0xff]  ;;  %2601 = vmatpush2.msra.mxu1 %v2352_v59  ;;  %v2345_v52 = vld [vmem:[%s9334_s3 + $0x298] sm:$0xff] }
 0x133   :  { %v1652_v25 = vrot.slane %v1651_v27, 2  ;;  %v1665_v34 = vmax.f32 %v1663_v36, %v1664_v42  ;;  %v1686_v35 = vmax.f32 %v1684_v43, %v1685_v62  ;;  %v1692_v55 = vrot.slane %v1691_v14, 4  ;;  %2513 = vmatprep.subr.mxu0 %v2347_v19  ;;  %2602 = vmatprep.subr.mxu1 %v2349_v29  ;;  %v2341_v59 = vld [vmem:[%s9334_s3 + $0x278] sm:$0xff] }
 0x134   :  { %v1659_v49 = vrot.slane %v1658_v51, 2  ;;  %v1672_v21 = vmax.f32 %v1670_v13, %v1671_v48  ;;  %v1680_v41 = vrot.slane %v1679_v0, 2  ;;  %v1698_v40 = vsel %vm1648_vm4, %v1399_v4, -inf  ;;  %2514 = vmatpush2.msra.mxu0 %v2346_v33  ;;  %v2342_v4 = vld [vmem:[%s9334_s3 + $0x280] sm:$0xff]  ;;  %2603 = vmatpush2.msra.mxu1 %v2348_v10 }
 0x135   :  { %v1653_v36 = vmax.f32 %v1651_v27, %v1652_v25  ;;  %v1666_v31 = vrot.slane %v1665_v34, 2  ;;  %v1687_v43 = vrot.slane %v1686_v35, 2  ;;  %v1693_v18 = vmax.f32 %v1691_v14, %v1692_v55  ;;  %2515 = vmatprep.subr.mxu0 %v2343_v5  ;;  %v2339_v27 = vld [vmem:[%s9334_s3 + $0x268] sm:$0xff]  ;;  %2604 = vmatprep.subr.mxu1 %v2345_v52 }
 0x136   :  { %v1660_v42 = vmax.f32 %v1658_v51, %v1659_v49  ;;  %v1673_v13 = vrot.slane %v1672_v21, 2  ;;  %v1681_v62 = vmax.f32 %v1679_v0, %v1680_v41  ;;  %v1699_v8 = vrot.slane %v1698_v40, 4  ;;  %2516 = vmatpush2.msra.mxu0 %v2342_v4  ;;  %v2338_v51 = vld [vmem:[%s9334_s3 + $0x260] sm:$0xff]  ;;  %v2340_v0 = vld [vmem:[%s9334_s3 + $0x270] sm:$0xff]  ;;  %2605 = vmatpush2.msra.mxu1 %v2344_v45 }
 0x137   :  { %v1654_v48 = vrot.slane %v1653_v36, 1  ;;  %v1667_v14 = vmax.f32 %v1665_v34, %v1666_v31  ;;  %v1688_v19 = vmax.f32 %v1686_v35, %v1687_v43  ;;  %v1694_v29 = vrot.slane %v1693_v18, 2  ;;  %2517 = vmatprep.subr.mxu0 %v2339_v27  ;;  %v2335_v34 = vld [vmem:[%s9334_s3 + $0x248] sm:$0xff]  ;;  %v2337_v35 = vld [vmem:[%s9334_s3 + $0x258] sm:$0xff]  ;;  %2606 = vmatprep.subr.mxu1 %v2341_v59 }
 0x138   :  { %v1661_v25 = vrot.slane %v1660_v42, 1  ;;  %v1674_v55 = vmax.f32 %v1672_v21, %v1673_v13  ;;  %v1682_v33 = vrot.slane %v1681_v62, 1  ;;  %v1700_v10 = vmax.f32 %v1698_v40, %v1699_v8  ;;  %2518 = vmatpush2.msra.mxu0 %v2338_v51  ;;  %v2334_v21 = vld [vmem:[%s9334_s3 + $0x240] sm:$0xff]  ;;  %v2336_v40 = vld [vmem:[%s9334_s3 + $0x250] sm:$0xff]  ;;  %2607 = vmatpush2.msra.mxu1 %v2340_v0 }
 0x139   :  { %v1655_v49 = vmax.f32 %v1653_v36, %v1654_v48  ;;  %v1668_v41 = vrot.slane %v1667_v14, 1  ;;  %v1689_v5 = vrot.slane %v1688_v19, 1  ;;  %v1695_v52 = vmax.f32 %v1693_v18, %v1694_v29  ;;  %2519 = vmatprep.subr.mxu0 %v2335_v34  ;;  %v2331_v36 = vld [vmem:[%s9334_s3 + $0x228] sm:$0xff]  ;;  %2608 = vmatprep.subr.mxu1 %v2337_v35  ;;  %v2332_v29 = vld [vmem:[%s9334_s3 + $0x230] sm:$0xff] }
 0x13a   :  { %v1662_v31 = vmax.f32 %v1660_v42, %v1661_v25  ;;  %v1675_v43 = vrot.slane %v1674_v55, 1  ;;  %v1683_v4 = vmax.f32 %v1681_v62, %v1682_v33  ;;  %v1701_v45 = vrot.slane %v1700_v10, 2  ;;  %2520 = vmatpush2.msra.mxu0 %v2334_v21  ;;  %v2333_v42 = vld [vmem:[%s9334_s3 + $0x238] sm:$0xff]  ;;  %v2330_v62 = vld [vmem:[%s9334_s3 + $0x220] sm:$0xff]  ;;  %2609 = vmatpush2.msra.mxu1 %v2336_v40  ;;  %v2327_v33 = vld [vmem:[%s9334_s3 + $0x208] sm:$0xff] }
 0x13b   :  { %v1669_v18 = vmax.f32 %v1667_v14, %v1668_v41  ;;  %v1690_v13 = vmax.f32 %v1688_v19, %v1689_v5  ;;  %v1696_v8 = vrot.slane %v1695_v52, 1  ;;  %v1276_v27 = vcombine.high %v7069_v47, %v7069_v47  ;;  %2521 = vmatprep.subr.mxu0 %v2331_v36  ;;  %2610 = vmatprep.subr.mxu1 %v2333_v42  ;;  %v2328_v41 = vld [vmem:[%s9334_s3 + $0x210] sm:$0xff] }
 0x13c   :  { %v1676_v59 = vmax.f32 %v1674_v55, %v1675_v43  ;;  %v1702_v48 = vmax.f32 %v1700_v10, %v1701_v45  ;;  %v1277_v14 = vcombine.high %v7072_v60, %v7072_v60  ;;  %v1406_v19 = vrot.slane %v7069_v47, %v6929_v53  ;;  %v2329_v47 = vld [vmem:[%s9334_s3 + $0x218] sm:$0xff]  ;;  %2522 = vmatpush2.msra.mxu0 %v2330_v62 }
 0x13d   :  { %v1697_v51 = vmax.f32 %v1695_v52, %v1696_v8  ;;  %v2106_v0 = vsel %vm2105_vm5, %v1669_v18, %v1655_v49  ;;  %v1414_v25 = vrot.slane %v1276_v27, %v6929_v53  ;;  %v1422_v55 = vrot.slane %v7072_v60, %v6929_v53  ;;  %v2326_v60 = vld [vmem:[%s9334_s3 + $0x200] sm:$0xff]  ;;  %2611 = vmatpush2.msra.mxu1 %v2332_v29  ;;  %v5391_v43 = vld [vmem:[%s9334_s3 + $0x5f8] sm:$0xff]  ;;  %v7201_v8 = vpop.f32.mrf.mxu1 }
 0x13e   :  { %v1703_v10 = vrot.slane %v1702_v48, 1  ;;  %v2108_v34 = vsel %vm2107_vm6, %v1683_v4, %v2106_v0  ;;  %v2117_v35 = vsel %vm2105_vm5, %v1676_v59, %v1662_v31  ;;  %v1407_v49 = vcombine.high %v1406_v19, %v1406_v19  ;;  %v5389_v31 = vld [vmem:[%s9334_s3 + $0x5e8] sm:$0xff]  ;;  %2523 = vmatprep.subr.mxu0 %v2327_v33  ;;  %2612 = vmatprep.subr.mxu1 %v2329_v47 }
 0x13f   :  { %v7189_v5 = vsel %vm2109_vm7, %v1697_v51, %v2108_v34  ;;  %v2118_v52 = vsel %vm2107_vm6, %v1690_v13, %v2117_v35  ;;  %v1415_v21 = vcombine.high %v1414_v25, %v1414_v25  ;;  %v1423_v40 = vcombine.high %v1422_v55, %v1422_v55  ;;  %2524 = vmatpush2.msra.mxu0 %v2326_v60  ;;  %v1007_v35 = vpop.f32.mrf.mxu1 }
 0x140   :  { %v1704_v4 = vmax.f32 %v1702_v48, %v1703_v10  ;;  %v1430_v45 = vrot.slane %v1277_v14, %v6929_v53  ;;  %v1705_v36 = vsel %vm1648_vm4, %v1406_v19, -inf  ;;  %v1712_v18 = vsel %vm1648_vm4, %v1407_v49, -inf  ;;  %2613 = vmatpush2.msra.mxu1 %v2328_v41  ;;  %2991 = vmatprep.subr.mxu0 %v5389_v31 }
 0x141   :  { %v1706_v13 = vrot.slane %v1705_v36, 4  ;;  %v1713_v27 = vrot.slane %v1712_v18, 4  ;;  %v1719_v42 = vsel %vm1648_vm4, %v1414_v25, -inf  ;;  %v1726_v62 = vsel %vm1648_vm4, %v1415_v21, -inf  ;;  %3080 = vmatprep.subr.mxu1 %v5391_v43 }
 0x142   :  { %v2119_v59 = vsel %vm2109_vm7, %v1704_v4, %v2118_v52  ;;  %v1431_v48 = vcombine.high %v1430_v45, %v1430_v45  ;;  %v1720_v14 = vrot.slane %v1719_v42, 4  ;;  %v1727_v29 = vrot.slane %v1726_v62, 4 }
 0x143   :  { %v1707_v19 = vmax.f32 %v1705_v36, %v1706_v13  ;;  %v1714_v51 = vmax.f32 %v1712_v18, %v1713_v27  ;;  %v1733_v0 = vsel %vm1648_vm4, %v1422_v55, -inf  ;;  %v1740_v33 = vsel %vm1648_vm4, %v1423_v40, -inf }
 0x144   :  { %v1721_v25 = vmax.f32 %v1719_v42, %v1720_v14  ;;  %v1728_v47 = vmax.f32 %v1726_v62, %v1727_v29  ;;  %v1734_v10 = vrot.slane %v1733_v0, 4  ;;  %v1741_v34 = vrot.slane %v1740_v33, 4  ;;  %v1009_v14 = vpop.f32.mrf.mxu1 }
 0x145   :  { %v1708_v49 = vrot.slane %v1707_v19, 2  ;;  %v1715_v60 = vrot.slane %v1714_v51, 2  ;;  %v1747_v41 = vsel %vm1648_vm4, %v1430_v45, -inf  ;;  %v1754_v52 = vsel %vm1648_vm4, %v1431_v48, -inf }
 0x146   :  { %v1722_v21 = vrot.slane %v1721_v25, 2  ;;  %v1729_v31 = vrot.slane %v1728_v47, 2  ;;  %v1735_v43 = vmax.f32 %v1733_v0, %v1734_v10  ;;  %v1742_v4 = vmax.f32 %v1740_v33, %v1741_v34 }
 0x147   :  { %v1709_v55 = vmax.f32 %v1707_v19, %v1708_v49  ;;  %v1716_v36 = vmax.f32 %v1714_v51, %v1715_v60  ;;  %v1748_v40 = vrot.slane %v1747_v41, 4  ;;  %v1755_v18 = vrot.slane %v1754_v52, 4 }
 0x148   :  { %v1723_v13 = vmax.f32 %v1721_v25, %v1722_v21  ;;  %v1730_v27 = vmax.f32 %v1728_v47, %v1729_v31  ;;  %v1736_v42 = vrot.slane %v1735_v43, 2  ;;  %v1743_v62 = vrot.slane %v1742_v4, 2  ;;  %v1013_v47 = vpop.f32.mrf.mxu1 }
 0x149   :  { %v1710_v29 = vrot.slane %v1709_v55, 1  ;;  %v1717_v57 = vrot.slane %v1716_v36, 1  ;;  %v1749_v44 = vmax.f32 %v1747_v41, %v1748_v40  ;;  %v1756_v45 = vmax.f32 %v1754_v52, %v1755_v18 }
 0x14a   :  { %v1724_v58 = vrot.slane %v1723_v13, 1  ;;  %v1731_v48 = vrot.slane %v1730_v27, 1  ;;  %v1737_v3 = vmax.f32 %v1735_v43, %v1736_v42  ;;  %v1744_v20 = vmax.f32 %v1742_v4, %v1743_v62 }
 0x14b   :  { %v1711_v17 = vmax.f32 %v1709_v55, %v1710_v29  ;;  %v1718_v0 = vmax.f32 %v1716_v36, %v1717_v57  ;;  %v1750_v33 = vrot.slane %v1749_v44, 2  ;;  %v1757_v19 = vrot.slane %v1756_v45, 2 }
 0x14c   :  { %v1725_v51 = vmax.f32 %v1723_v13, %v1724_v58  ;;  %v1732_v10 = vmax.f32 %v1730_v27, %v1731_v48  ;;  %v1738_v34 = vrot.slane %v1737_v3, 1  ;;  %v1745_v25 = vrot.slane %v1744_v20, 1 }
 0x14d   :  { %v1751_v49 = vmax.f32 %v1749_v44, %v1750_v33  ;;  %v1758_v60 = vmax.f32 %v1756_v45, %v1757_v19  ;;  %v2112_v21 = vsel %vm2111_vm8, %v1711_v17, %v7189_v5  ;;  %v2120_v41 = vsel %vm2111_vm8, %v1718_v0, %v2119_v59  ;;  %v1015_v59 = vpop.f32.mrf.mxu1 }
 0x14e   :  { %v1739_v52 = vmax.f32 %v1737_v3, %v1738_v34  ;;  %v1746_v31 = vmax.f32 %v1744_v20, %v1745_v25  ;;  %v2114_v43 = vsel %vm2113_vm9, %v1725_v51, %v2112_v21  ;;  %v2121_v57 = vsel %vm2113_vm9, %v1732_v10, %v2120_v41 }
 0x14f   :  { %v1752_v4 = vrot.slane %v1751_v49, 1  ;;  %v1759_v55 = vrot.slane %v1758_v60, 1  ;;  %v1219_v58 = vmax.f32 %v1195_v56, %v1197_v32  ;;  %v1172_v44 = vadd.f32 %v6839_v22, %v7031_v6 }
 0x150   :  { %v2116_v17 = vsel %vm2115_vm10, %v1739_v52, %v2114_v43  ;;  %v2122_v5 = vsel %vm2115_vm10, %v1746_v31, %v2121_v57  ;;  %v1067_v20 = vadd.f32 %v7201_v8, %v6974_v54  ;;  %v1070_v3 = vadd.f32 %v1007_v35, %v6803_v2 }
 0x151   :  { %v7226_v36 = vmax.f32 %v1751_v49, %v1752_v4  ;;  %v7228_v40 = vmax.f32 %v1758_v60, %v1759_v55  ;;  %2168 = vst [vmem:[#allocation3 + $0x30] sm:$0xfe] %v2116_v17  ;;  %2169 = vst [vmem:[#allocation3] sm:$0xfe] %v2122_v5  ;;  %v1278_v63 = vcombine.low %v7049_v23, %v1219_v58  ;;  %v1200_v39 = vmax.f32 %v1172_v44, 0.0 }
 0x152   :  { %v1279_v56 = vcombine.high %v7049_v23, %v1219_v58  ;;  %v1173_v6 = vadd.f32 %v6843_v16, %v1067_v20  ;;  %v1176_v32 = vadd.f32 %v6839_v22, %v1070_v3  ;;  %v1071_v54 = vadd.f32 %v1009_v14, %v6814_v1 }
 0x153   :  { %v1286_v2 = vrot.slane %v1278_v63, %v6929_v53  ;;  %v1074_v35 = vadd.f32 %v1013_v47, %v6825_v15  ;;  %v7239_v18 = vadd.f32 %v1015_v59, %v6835_v26  ;;  %v7243_v13 = vmax.f32 %v1198_v50, %v1200_v39 }
 0x154   :  { %v1293_v8 = vrot.slane %v1279_v56, %v6929_v53  ;;  %v1201_v23 = vmax.f32 %v1173_v6, 0.0  ;;  %v1204_v27 = vmax.f32 %v1176_v32, 0.0  ;;  %v7246_v42 = vadd.f32 %v6843_v16, %v1071_v54 }
 0x155   :  { %v1294_v62 = vcombine.high %v1286_v2, %v1286_v2  ;;  %v1438_v14 = vrot.slane %v1286_v2, %v6929_v53  ;;  %v9343_v15 = vmax.f32 %v6953_v37, 0.0  ;;  %v9344_v26 = vmax.f32 %v6810_v9, 0.0 }
 0x156   :  { %v1295_v1 = vcombine.high %v1293_v8, %v1293_v8  ;;  %v1454_v29 = vrot.slane %v1293_v8, %v6929_v53  ;;  %v1205_v50 = vmax.f32 %v7246_v42, 0.0  ;;  %v7260_v48 = vadd.f32 %v6839_v22, %v1074_v35 }
 0x157   :  { %v7252_v45 = vmax.f32 %v9343_v15, %v1201_v23  ;;  %v7256_v7 = vmax.f32 %v9344_v26, %v1204_v27  ;;  %v1439_v0 = vcombine.high %v1438_v14, %v1438_v14  ;;  %v1446_v33 = vrot.slane %v1294_v62, %v6929_v53 }
 0x158   :  { %v1455_v19 = vcombine.high %v1454_v29, %v1454_v29  ;;  %v1462_v51 = vrot.slane %v1295_v1, %v6929_v53  ;;  %v1761_v10 = vsel %vm1648_vm4, %v1438_v14, -inf  ;;  %v1789_v37 = vsel %vm1648_vm4, %v1454_v29, -inf }
 0x159   :  { %v1296_v9 = vcombine.low %v7243_v13, %v7252_v45  ;;  %v1297_v34 = vcombine.high %v7243_v13, %v7252_v45  ;;  %v1447_v25 = vcombine.high %v1446_v33, %v1446_v33  ;;  %v1762_v49 = vrot.slane %v1761_v10, 4 }
 0x15a   :  { %v1463_v47 = vcombine.high %v1462_v51, %v1462_v51  ;;  %v1768_v60 = vsel %vm1648_vm4, %v1439_v0, -inf  ;;  %v1775_v41 = vsel %vm1648_vm4, %v1446_v33, -inf  ;;  %v1790_v52 = vrot.slane %v1789_v37, 4 }
 0x15b   :  { %v1769_v21 = vrot.slane %v1768_v60, 4  ;;  %v1796_v31 = vsel %vm1648_vm4, %v1455_v19, -inf  ;;  %v1763_v43 = vmax.f32 %v1761_v10, %v1762_v49  ;;  %v1776_v57 = vrot.slane %v1775_v41, 4 }
 0x15c   :  { %v1782_v4 = vsel %vm1648_vm4, %v1447_v25, -inf  ;;  %v1797_v55 = vrot.slane %v1796_v31, 4  ;;  %v1791_v17 = vmax.f32 %v1789_v37, %v1790_v52  ;;  %v1803_v5 = vsel %vm1648_vm4, %v1462_v51, -inf }
 0x15d   :  { %v1770_v58 = vmax.f32 %v1768_v60, %v1769_v21  ;;  %v1783_v44 = vrot.slane %v1782_v4, 4  ;;  %v1764_v20 = vrot.slane %v1763_v43, 2  ;;  %v1777_v3 = vmax.f32 %v1775_v41, %v1776_v57 }
 0x15e   :  { %v1798_v59 = vmax.f32 %v1796_v31, %v1797_v55  ;;  %v1804_v63 = vrot.slane %v1803_v5, 4  ;;  %v1792_v6 = vrot.slane %v1791_v17, 2  ;;  %v1810_v32 = vsel %vm1648_vm4, %v1463_v47, -inf }
 0x15f   :  { %v1771_v56 = vrot.slane %v1770_v58, 2  ;;  %v1784_v39 = vmax.f32 %v1782_v4, %v1783_v44  ;;  %v1765_v54 = vmax.f32 %v1763_v43, %v1764_v20  ;;  %v1778_v2 = vrot.slane %v1777_v3, 2 }
 0x160   :  { %v1799_v8 = vrot.slane %v1798_v59, 2  ;;  %v1805_v35 = vmax.f32 %v1803_v5, %v1804_v63  ;;  %v1793_v27 = vmax.f32 %v1791_v17, %v1792_v6  ;;  %v1811_v62 = vrot.slane %v1810_v32, 4 }
 0x161   :  { %v1772_v13 = vmax.f32 %v1770_v58, %v1771_v56  ;;  %v1785_v23 = vrot.slane %v1784_v39, 2  ;;  %v1766_v1 = vrot.slane %v1765_v54, 1  ;;  %v1779_v14 = vmax.f32 %v1777_v3, %v1778_v2 }
 0x162   :  { %v1800_v29 = vmax.f32 %v1798_v59, %v1799_v8  ;;  %v1806_v15 = vrot.slane %v1805_v35, 2  ;;  %v1794_v0 = vrot.slane %v1793_v27, 1  ;;  %v1812_v33 = vmax.f32 %v1810_v32, %v1811_v62 }
 0x163   :  { %v1773_v45 = vrot.slane %v1772_v13, 1  ;;  %v1786_v26 = vmax.f32 %v1784_v39, %v1785_v23  ;;  %v1767_v19 = vmax.f32 %v1765_v54, %v1766_v1  ;;  %v1780_v51 = vrot.slane %v1779_v14, 1 }
 0x164   :  { %v1801_v10 = vrot.slane %v1800_v29, 1  ;;  %v1807_v37 = vmax.f32 %v1805_v35, %v1806_v15  ;;  %v1795_v49 = vmax.f32 %v1793_v27, %v1794_v0  ;;  %v1813_v60 = vrot.slane %v1812_v33, 2 }
 0x165   :  { %v1774_v25 = vmax.f32 %v1772_v13, %v1773_v45  ;;  %v1787_v47 = vrot.slane %v1786_v26, 1  ;;  %v1781_v21 = vmax.f32 %v1779_v14, %v1780_v51  ;;  %v2124_v31 = vsel %vm2123_vm11, %v1767_v19, %v7226_v36 }
 0x166   :  { %v1802_v41 = vmax.f32 %v1800_v29, %v1801_v10  ;;  %v1808_v52 = vrot.slane %v1807_v37, 1  ;;  %v1814_v57 = vmax.f32 %v1812_v33, %v1813_v60  ;;  %v1304_v55 = vrot.slane %v1296_v9, %v6929_v53 }
 0x167   :  { %v1788_v43 = vmax.f32 %v1786_v26, %v1787_v47  ;;  %v2130_v4 = vsel %vm2123_vm11, %v1774_v25, %v7228_v40  ;;  %v2125_v44 = vsel %vm2105_vm5, %v1781_v21, %v2124_v31  ;;  %v1311_v17 = vrot.slane %v1297_v34, %v6929_v53 }
 0x168   :  { %v1809_v58 = vmax.f32 %v1807_v37, %v1808_v52  ;;  %v9345_v5 = vmax.f32 %v6819_v28, 0.0  ;;  %v1815_v3 = vrot.slane %v1814_v57, 1  ;;  %v2126_v36 = vsel %vm2107_vm6, %v1795_v49, %v2125_v44 }
 0x169   :  { %v2131_v59 = vsel %vm2105_vm5, %v1788_v43, %v2130_v4  ;;  %v1312_v63 = vcombine.high %v1304_v55, %v1304_v55  ;;  %v1313_v56 = vcombine.high %v1311_v17, %v1311_v17  ;;  %v1470_v34 = vrot.slane %v1304_v55, %v6929_v53 }
 0x16a   :  { %v7287_v20 = vmax.f32 %v9345_v5, %v1205_v50  ;;  %v7292_v40 = vsel %vm2109_vm7, %v1809_v58, %v2126_v36  ;;  %v2132_v9 = vsel %vm2107_vm6, %v1802_v41, %v2131_v59  ;;  %v1816_v39 = vmax.f32 %v1814_v57, %v1815_v3 }
 0x16b   :  { %v1478_v42 = vrot.slane %v1312_v63, %v6929_v53  ;;  %v1486_v28 = vrot.slane %v1311_v17, %v6929_v53  ;;  %v1471_v6 = vcombine.high %v1470_v34, %v1470_v34  ;;  %v1494_v32 = vrot.slane %v1313_v56, %v6929_v53 }
 0x16c   :  { %v1314_v50 = vcombine.low %v7256_v7, %v7287_v20  ;;  %v1817_v54 = vsel %vm1648_vm4, %v1470_v34, -inf  ;;  %v1315_v2 = vcombine.high %v7256_v7, %v7287_v20  ;;  %v2133_v8 = vsel %vm2109_vm7, %v1816_v39, %v2132_v9 }
 0x16d   :  { %v1479_v35 = vcombine.high %v1478_v42, %v1478_v42  ;;  %v1487_v13 = vcombine.high %v1486_v28, %v1486_v28  ;;  %v1818_v23 = vrot.slane %v1817_v54, 4  ;;  %v1495_v27 = vcombine.high %v1494_v32, %v1494_v32 }
 0x16e   :  { %v1824_v62 = vsel %vm1648_vm4, %v1471_v6, -inf  ;;  %v1831_v1 = vsel %vm1648_vm4, %v1478_v42, -inf  ;;  %v1845_v14 = vsel %vm1648_vm4, %v1486_v28, -inf  ;;  %v1859_v51 = vsel %vm1648_vm4, %v1494_v32, -inf }
 0x16f   :  { %v1819_v29 = vmax.f32 %v1817_v54, %v1818_v23  ;;  %v1825_v15 = vrot.slane %v1824_v62, 4  ;;  %v1832_v45 = vrot.slane %v1831_v1, 4  ;;  %v1838_v26 = vsel %vm1648_vm4, %v1479_v35, -inf }
 0x170   :  { %v1839_v0 = vrot.slane %v1838_v26, 4  ;;  %v1846_v33 = vrot.slane %v1845_v14, 4  ;;  %v1852_v19 = vsel %vm1648_vm4, %v1487_v13, -inf  ;;  %v1860_v21 = vrot.slane %v1859_v51, 4 }
 0x171   :  { %v1820_v10 = vrot.slane %v1819_v29, 2  ;;  %v1826_v37 = vmax.f32 %v1824_v62, %v1825_v15  ;;  %v1833_v25 = vmax.f32 %v1831_v1, %v1832_v45  ;;  %v1853_v47 = vrot.slane %v1852_v19, 4 }
 0x172   :  { %v1840_v49 = vmax.f32 %v1838_v26, %v1839_v0  ;;  %v1847_v60 = vmax.f32 %v1845_v14, %v1846_v33  ;;  %v1866_v41 = vsel %vm1648_vm4, %v1495_v27, -inf  ;;  %v1861_v58 = vmax.f32 %v1859_v51, %v1860_v21 }
 0x173   :  { %v1821_v52 = vmax.f32 %v1819_v29, %v1820_v10  ;;  %v1827_v31 = vrot.slane %v1826_v37, 2  ;;  %v1834_v43 = vrot.slane %v1833_v25, 2  ;;  %v1854_v57 = vmax.f32 %v1852_v19, %v1853_v47 }
 0x174   :  { %v1841_v4 = vrot.slane %v1840_v49, 2  ;;  %v1848_v55 = vrot.slane %v1847_v60, 2  ;;  %v1867_v44 = vrot.slane %v1866_v41, 4  ;;  %v1862_v9 = vrot.slane %v1861_v58, 2 }
 0x175   :  { %v1822_v17 = vrot.slane %v1821_v52, 1  ;;  %v1828_v5 = vmax.f32 %v1826_v37, %v1827_v31  ;;  %v1835_v3 = vmax.f32 %v1833_v25, %v1834_v43  ;;  %v1855_v36 = vrot.slane %v1854_v57, 2 }
 0x176   :  { %v1842_v59 = vmax.f32 %v1840_v49, %v1841_v4  ;;  %v1849_v63 = vmax.f32 %v1847_v60, %v1848_v55  ;;  %v1868_v56 = vmax.f32 %v1866_v41, %v1867_v44  ;;  %v1863_v54 = vmax.f32 %v1861_v58, %v1862_v9 }
 0x177   :  { %v1823_v34 = vmax.f32 %v1821_v52, %v1822_v17  ;;  %v1829_v39 = vrot.slane %v1828_v5, 1  ;;  %v1836_v42 = vrot.slane %v1835_v3, 1  ;;  %v1856_v28 = vmax.f32 %v1854_v57, %v1855_v36 }
 0x178   :  { %v1843_v6 = vrot.slane %v1842_v59, 1  ;;  %v1850_v32 = vrot.slane %v1849_v63, 1  ;;  %v1869_v35 = vrot.slane %v1868_v56, 2  ;;  %v1864_v29 = vrot.slane %v1863_v54, 1 }
 0x179   :  { %v1830_v13 = vmax.f32 %v1828_v5, %v1829_v39  ;;  %v1837_v23 = vmax.f32 %v1835_v3, %v1836_v42  ;;  %v1857_v27 = vrot.slane %v1856_v28, 1  ;;  %v2128_v62 = vsel %vm2111_vm8, %v1823_v34, %v7292_v40 }
 0x17a   :  { %v1844_v1 = vmax.f32 %v1842_v59, %v1843_v6  ;;  %v1851_v14 = vmax.f32 %v1849_v63, %v1850_v32  ;;  %v1870_v15 = vmax.f32 %v1868_v56, %v1869_v35  ;;  %v1322_v33 = vrot.slane %v1314_v50, %v6929_v53 }
 0x17b   :  { %v1858_v45 = vmax.f32 %v1856_v28, %v1857_v27  ;;  %v2129_v26 = vsel %vm2113_vm9, %v1837_v23, %v2128_v62  ;;  %v2134_v0 = vsel %vm2111_vm8, %v1830_v13, %v2133_v8  ;;  %v1865_v19 = vmax.f32 %v1863_v54, %v1864_v29 }
 0x17c   :  { %v1871_v51 = vrot.slane %v1870_v15, 1  ;;  %v2135_v10 = vsel %vm2113_vm9, %v1844_v1, %v2134_v0  ;;  %2170 = vst [vmem:[#allocation3 + $0x18] sm:$0x7f] %v2129_v26  ;;  %v1329_v40 = vrot.slane %v1315_v2, %v6929_v53  ;;  %v1330_v37 = vcombine.high %v1322_v33, %v1322_v33 }
 0x17d   :  { %2171 = vst [vmem:[#allocation3 + $0x10] sm:$0x7f] %v2135_v10  ;;  %v1502_v25 = vrot.slane %v1322_v33, %v6929_v53  ;;  %v1208_v8 = vmax.f32 %v7260_v48, 0.0  ;;  %v7329_v47 = vadd.f32 %v6843_v16, %v7239_v18  ;;  %v2136_v49 = vsel %vm2105_vm5, %v1865_v19, %v1851_v14  ;;  %v1019_v10 = vpop.f32.mrf.mxu1 }
 0x17e   :  { %v1872_v50 = vmax.f32 %v1870_v15, %v1871_v51  ;;  %v1331_v60 = vcombine.high %v1329_v40, %v1329_v40  ;;  %v1518_v21 = vrot.slane %v1329_v40, %v6929_v53  ;;  %v1510_v7 = vrot.slane %v1330_v37, %v6929_v53 }
 0x17f   :  { %v1503_v41 = vcombine.high %v1502_v25, %v1502_v25  ;;  %v1873_v20 = vsel %vm1648_vm4, %v1502_v25, -inf  ;;  %v9346_v2 = vmax.f32 %v6830_v11, 0.0 }
 0x180   :  { %v2142_v48 = vsel %vm2105_vm5, %v1872_v50, %v1858_v45  ;;  %v1519_v31 = vcombine.high %v1518_v21, %v1518_v21  ;;  %v1526_v18 = vrot.slane %v1331_v60, %v6929_v53  ;;  %v1874_v43 = vrot.slane %v1873_v20, 4 }
 0x181   :  { %v7337_v52 = vmax.f32 %v9346_v2, %v1208_v8  ;;  %v1511_v57 = vcombine.high %v1510_v7, %v1510_v7  ;;  %v1880_v4 = vsel %vm1648_vm4, %v1503_v41, -inf  ;;  %v1887_v55 = vsel %vm1648_vm4, %v1510_v7, -inf }
 0x182   :  { %v1901_v58 = vsel %vm1648_vm4, %v1518_v21, -inf  ;;  %v1527_v44 = vcombine.high %v1526_v18, %v1526_v18  ;;  %v1875_v17 = vmax.f32 %v1873_v20, %v1874_v43  ;;  %v1881_v5 = vrot.slane %v1880_v4, 4 }
 0x183   :  { %v1888_v3 = vrot.slane %v1887_v55, 4  ;;  %v1894_v11 = vsel %vm1648_vm4, %v1511_v57, -inf  ;;  %v1902_v36 = vrot.slane %v1901_v58, 4  ;;  %v1908_v59 = vsel %vm1648_vm4, %v1519_v31, -inf }
 0x184   :  { %v1915_v63 = vsel %vm1648_vm4, %v1526_v18, -inf  ;;  %v1876_v9 = vrot.slane %v1875_v17, 2  ;;  %v1882_v56 = vmax.f32 %v1880_v4, %v1881_v5  ;;  %v1895_v39 = vrot.slane %v1894_v11, 4 }
 0x185   :  { %v1889_v34 = vmax.f32 %v1887_v55, %v1888_v3  ;;  %v1903_v42 = vmax.f32 %v1901_v58, %v1902_v36  ;;  %v1909_v28 = vrot.slane %v1908_v59, 4  ;;  %v1916_v6 = vrot.slane %v1915_v63, 4  ;;  %v1021_v55 = vpop.f32.mrf.mxu1  ;;  %v6053_v58 = vld [vmem:[#allocation3 + $0x30] ss:$-48 sps:$4 sm:$0xff]  }
 0x186   :  { %v1922_v32 = vsel %vm1648_vm4, %v1527_v44, -inf  ;;  %v1877_v54 = vmax.f32 %v1875_v17, %v1876_v9  ;;  %v1883_v35 = vrot.slane %v1882_v56, 2  ;;  %v1896_v23 = vmax.f32 %v1894_v11, %v1895_v39  ;;  %v6055_v9 = vld [vmem:[#allocation3 + $0x34] ss:$-48 sps:$4 sm:$0xff]  }
 0x187   :  { %v1890_v13 = vrot.slane %v1889_v34, 2  ;;  %v1904_v27 = vrot.slane %v1903_v42, 2  ;;  %v1910_v62 = vmax.f32 %v1908_v59, %v1909_v28  ;;  %v1917_v1 = vmax.f32 %v1915_v63, %v1916_v6 }
 0x188   :  { %v1923_v14 = vrot.slane %v1922_v32, 4  ;;  %v1878_v29 = vrot.slane %v1877_v54, 1  ;;  %v1884_v15 = vmax.f32 %v1882_v56, %v1883_v35  ;;  %v1897_v26 = vrot.slane %v1896_v23, 2 }
 0x189   :  { %v1891_v45 = vmax.f32 %v1889_v34, %v1890_v13  ;;  %v1905_v0 = vmax.f32 %v1903_v42, %v1904_v27  ;;  %v1911_v33 = vrot.slane %v1910_v62, 2  ;;  %v1918_v19 = vrot.slane %v1917_v1, 2 }
 0x18a   :  { %v1924_v51 = vmax.f32 %v1922_v32, %v1923_v14  ;;  %v1879_v40 = vmax.f32 %v1877_v54, %v1878_v29  ;;  %v1885_v37 = vrot.slane %v1884_v15, 1  ;;  %v1898_v8 = vmax.f32 %v1896_v23, %v1897_v26 }
 0x18b   :  { %v1892_v25 = vrot.slane %v1891_v45, 1  ;;  %v1906_v50 = vrot.slane %v1905_v0, 1  ;;  %v1912_v60 = vmax.f32 %v1910_v62, %v1911_v33  ;;  %v1919_v21 = vmax.f32 %v1917_v1, %v1918_v19 }
 0x18c   :  { %v1925_v41 = vrot.slane %v1924_v51, 2  ;;  %v1886_v7 = vmax.f32 %v1884_v15, %v1885_v37  ;;  %v1899_v2 = vrot.slane %v1898_v8, 1  ;;  %v2137_v31 = vsel %vm2107_vm6, %v1879_v40, %v2136_v49  ;;  %v6056_v49 = vld [vmem:[#allocation3 + $0x18] ss:$-8 sps:$4 sm:$0xff]  }
 0x18d   :  { %v1893_v20 = vmax.f32 %v1891_v45, %v1892_v25  ;;  %v1907_v18 = vmax.f32 %v1905_v0, %v1906_v50  ;;  %v1913_v43 = vrot.slane %v1912_v60, 1  ;;  %v1920_v57 = vrot.slane %v1919_v21, 1 }
 0x18e   :  { %v1926_v4 = vmax.f32 %v1924_v51, %v1925_v41  ;;  %v1900_v44 = vmax.f32 %v1898_v8, %v1899_v2  ;;  %v2143_v5 = vsel %vm2107_vm6, %v1886_v7, %v2142_v48  ;;  %v1209_v3 = vmax.f32 %v7329_v47, 0.0 }
 0x18f   :  { %v2138_v17 = vsel %vm2109_vm7, %v1893_v20, %v2137_v31  ;;  %v1914_v11 = vmax.f32 %v1912_v60, %v1913_v43  ;;  %v1921_v36 = vmax.f32 %v1919_v21, %v1920_v57  ;;  %v9347_v34 = vmax.f32 %v6849_v24, 0.0 }
 0x190   :  { %v1927_v59 = vrot.slane %v1926_v4, 1  ;;  %v2139_v63 = vsel %vm2111_vm8, %v1907_v18, %v2138_v17  ;;  %v2144_v56 = vsel %vm2109_vm7, %v1900_v44, %v2143_v5  ;;  %v1078_v42 = vadd.f32 %v1019_v10, %v6857_v12 }
 0x191   :  { %v1225_v39 = vmax.f32 %v9347_v34, %v1209_v3  ;;  %v1079_v28 = vadd.f32 %v1021_v55, %v6873_v61  ;;  %v7359_v48 = vsel %vm2113_vm9, %v1921_v36, %v2139_v63  ;;  %v2145_v47 = vsel %vm2111_vm8, %v1914_v11, %v2144_v56 }
 0x192   :  { %v1928_v6 = vmax.f32 %v1926_v4, %v1927_v59  ;;  %v2200_v32 = vrot.slane %v6053_v58, %v6929_v53  ;;  %v1184_v13 = vadd.f32 %v6839_v22, %v1078_v42  ;;  %v2207_v61 = vrot.slane %v6055_v9, %v6929_v53 }
 0x193   :  { %v1332_v54 = vcombine.low %v7337_v52, %v1225_v39  ;;  %v1333_v35 = vcombine.high %v7337_v52, %v1225_v39  ;;  %v1185_v24 = vadd.f32 %v6843_v16, %v1079_v28  ;;  %v7372_v27 = vrot.slane %v6056_v49, %v6929_v53 }
 0x194   :  { %v7368_v12 = vsel %vm2113_vm9, %v1928_v6, %v2145_v47  ;;  %v2208_v23 = vcombine.high %v2200_v32, %v2200_v32  ;;  %v1212_v14 = vmax.f32 %v1184_v13, 0.0  ;;  %v1211_v52 = vmax.f32 %v6883_v30, 0.0 }
 0x195   :  { %v1340_v62 = vrot.slane %v1332_v54, %v6929_v53  ;;  %v1347_v1 = vrot.slane %v1333_v35, %v6929_v53  ;;  %v1213_v29 = vmax.f32 %v1185_v24, 0.0  ;;  %v2209_v22 = vcombine.high %v2207_v61, %v2207_v61 }
 0x196   :  { %v2390_v15 = vcombine.low %v2200_v32, %v2208_v23  ;;  %v2226_v16 = vcombine.high %v7372_v27, %v7372_v27  ;;  %v9348_v19 = vmax.f32 %v6863_v38, 0.0 }
 0x197   :  { %v1348_v45 = vcombine.high %v1340_v62, %v1340_v62  ;;  %v1349_v26 = vcombine.high %v1347_v1, %v1347_v1  ;;  %v1534_v0 = vrot.slane %v1340_v62, %v6929_v53  ;;  %v1550_v33 = vrot.slane %v1347_v1, %v6929_v53 }
 0x198   :  { %v7383_v51 = vmax.f32 %v9348_v19, %v1212_v14  ;;  %v7385_v10 = vmax.f32 %v1211_v52, %v1213_v29  ;;  %v7387_v40 = vcombine.low %v2207_v61, %v2209_v22  ;;  %v7390_v30 = vrot.slane %v2390_v15, %v6929_v53 }
 0x199   :  { %v1535_v37 = vcombine.high %v1534_v0, %v1534_v0  ;;  %v1542_v25 = vrot.slane %v1348_v45, %v6929_v53  ;;  %v1551_v8 = vcombine.high %v1550_v33, %v1550_v33  ;;  %v1558_v50 = vrot.slane %v1349_v26, %v6929_v53 }
 0x19a   :  { %v1929_v60 = vsel %vm1648_vm4, %v1534_v0, -inf  ;;  %v1957_v21 = vsel %vm1648_vm4, %v1550_v33, -inf  ;;  %v1350_v38 = vcombine.low %v7383_v51, %v7385_v10  ;;  %v1351_v41 = vcombine.high %v7383_v51, %v7385_v10 }
 0x19b   :  { %v1543_v7 = vcombine.high %v1542_v25, %v1542_v25  ;;  %v1559_v20 = vcombine.high %v1558_v50, %v1558_v50  ;;  %v1930_v2 = vrot.slane %v1929_v60, 4  ;;  %v1936_v31 = vsel %vm1648_vm4, %v1535_v37, -inf }
 0x19c   :  { %v1937_v18 = vrot.slane %v1936_v31, 4  ;;  %v1943_v43 = vsel %vm1648_vm4, %v1542_v25, -inf  ;;  %v1958_v57 = vrot.slane %v1957_v21, 4  ;;  %v1964_v4 = vsel %vm1648_vm4, %v1551_v8, -inf }
 0x19d   :  { %v1931_v55 = vmax.f32 %v1929_v60, %v1930_v2  ;;  %v1944_v58 = vrot.slane %v1943_v43, 4  ;;  %v1950_v44 = vsel %vm1648_vm4, %v1543_v7, -inf  ;;  %v1965_v17 = vrot.slane %v1964_v4, 4 }
 0x19e   :  { %v1938_v5 = vmax.f32 %v1936_v31, %v1937_v18  ;;  %v1951_v3 = vrot.slane %v1950_v44, 4  ;;  %v1959_v11 = vmax.f32 %v1957_v21, %v1958_v57  ;;  %v1971_v36 = vsel %vm1648_vm4, %v1558_v50, -inf }
 0x19f   :  { %v1932_v59 = vrot.slane %v1931_v55, 2  ;;  %v1945_v63 = vmax.f32 %v1943_v43, %v1944_v58  ;;  %v1966_v9 = vmax.f32 %v1964_v4, %v1965_v17  ;;  %v1972_v49 = vrot.slane %v1971_v36, 4 }
 0x1a0   :  { %v1939_v56 = vrot.slane %v1938_v5, 2  ;;  %v1952_v34 = vmax.f32 %v1950_v44, %v1951_v3  ;;  %v1960_v39 = vrot.slane %v1959_v11, 2  ;;  %v1978_v42 = vsel %vm1648_vm4, %v1559_v20, -inf }
 0x1a1   :  { %v1933_v28 = vmax.f32 %v1931_v55, %v1932_v59  ;;  %v1946_v6 = vrot.slane %v1945_v63, 2  ;;  %v1967_v47 = vrot.slane %v1966_v9, 2  ;;  %v1973_v32 = vmax.f32 %v1971_v36, %v1972_v49 }
 0x1a2   :  { %v1940_v54 = vmax.f32 %v1938_v5, %v1939_v56  ;;  %v1953_v35 = vrot.slane %v1952_v34, 2  ;;  %v1961_v13 = vmax.f32 %v1959_v11, %v1960_v39  ;;  %v1979_v24 = vrot.slane %v1978_v42, 4 }
 0x1a3   :  { %v1934_v61 = vrot.slane %v1933_v28, 1  ;;  %v1947_v23 = vmax.f32 %v1945_v63, %v1946_v6  ;;  %v1968_v62 = vmax.f32 %v1966_v9, %v1967_v47  ;;  %v1974_v1 = vrot.slane %v1973_v32, 2 }
 0x1a4   :  { %v1941_v14 = vrot.slane %v1940_v54, 1  ;;  %v1954_v29 = vmax.f32 %v1952_v34, %v1953_v35  ;;  %v1962_v52 = vrot.slane %v1961_v13, 1  ;;  %v1980_v22 = vmax.f32 %v1978_v42, %v1979_v24 }
 0x1a5   :  { %v1935_v15 = vmax.f32 %v1933_v28, %v1934_v61  ;;  %v1948_v45 = vrot.slane %v1947_v23, 1  ;;  %v1969_v26 = vrot.slane %v1968_v62, 1  ;;  %v1975_v0 = vmax.f32 %v1973_v32, %v1974_v1 }
 0x1a6   :  { %v1942_v33 = vmax.f32 %v1940_v54, %v1941_v14  ;;  %v1955_v19 = vrot.slane %v1954_v29, 1  ;;  %v1963_v51 = vmax.f32 %v1961_v13, %v1962_v52  ;;  %v1981_v10 = vrot.slane %v1980_v22, 2 }
 0x1a7   :  { %v1949_v37 = vmax.f32 %v1947_v23, %v1948_v45  ;;  %v1970_v25 = vmax.f32 %v1968_v62, %v1969_v26  ;;  %v1976_v8 = vrot.slane %v1975_v0, 1  ;;  %v2141_v50 = vsel %vm2115_vm10, %v1935_v15, %v7359_v48 }
 0x1a8   :  { %v1956_v60 = vmax.f32 %v1954_v29, %v1955_v19  ;;  %v1982_v21 = vmax.f32 %v1980_v22, %v1981_v10  ;;  %v2147_v7 = vsel %vm2115_vm10, %v1942_v33, %v7368_v12  ;;  %2172 = vst [vmem:[#allocation3 + $0x8] sm:$0xfe] %v2141_v50  ;;  %v1358_v20 = vrot.slane %v1350_v38, %v6929_v53 }
 0x1a9   :  { %v1977_v2 = vmax.f32 %v1975_v0, %v1976_v8  ;;  %v2148_v31 = vsel %vm2123_vm11, %v1963_v51, %v1949_v37  ;;  %2173 = vst [vmem:[#allocation3 + $0x20] sm:$0xfe] %v2147_v7  ;;  %v1365_v18 = vrot.slane %v1351_v41, %v6929_v53  ;;  %v7415_v43 = vrot.slane %v7387_v40, %v6929_v53 }
 0x1aa   :  { %v1983_v57 = vrot.slane %v1982_v21, 1  ;;  %v2154_v48 = vsel %vm2123_vm11, %v1970_v25, %v1956_v60  ;;  %v1366_v4 = vcombine.high %v1358_v20, %v1358_v20  ;;  %v1566_v55 = vrot.slane %v1358_v20, %v6929_v53 }
 0x1ab   :  { %v2149_v12 = vsel %vm2105_vm5, %v1977_v2, %v2148_v31  ;;  %v1367_v58 = vcombine.high %v1365_v18, %v1365_v18  ;;  %v1582_v38 = vrot.slane %v1365_v18, %v6929_v53  ;;  %v7423_v44 = vcombine.low %v7390_v30, %v7415_v43 }
 0x1ac   :  { %v1984_v41 = vmax.f32 %v1982_v21, %v1983_v57  ;;  %v1567_v17 = vcombine.high %v1566_v55, %v1566_v55  ;;  %v1574_v40 = vrot.slane %v1366_v4, %v6929_v53  ;;  %v1985_v5 = vsel %vm1648_vm4, %v1566_v55, -inf }
 0x1ad   :  { %v1583_v3 = vcombine.high %v1582_v38, %v1582_v38  ;;  %v1590_v11 = vrot.slane %v1367_v58, %v6929_v53  ;;  %v1986_v36 = vrot.slane %v1985_v5, 4  ;;  %v2013_v59 = vsel %vm1648_vm4, %v1582_v38, -inf }
 0x1ae   :  { %v2155_v63 = vsel %vm2105_vm5, %v1984_v41, %v2154_v48  ;;  %v1575_v9 = vcombine.high %v1574_v40, %v1574_v40  ;;  %v1992_v49 = vsel %vm1648_vm4, %v1567_v17, -inf  ;;  %v1999_v56 = vsel %vm1648_vm4, %v1574_v40, -inf  ;;  %v6058_v41 = vld [vmem:[#allocation3 + $0x1c] ss:$-8 sps:$4 sm:$0x33]  }
 0x1af   :  { %v1591_v34 = vcombine.high %v1590_v11, %v1590_v11  ;;  %v1987_v39 = vmax.f32 %v1985_v5, %v1986_v36  ;;  %v1993_v42 = vrot.slane %v1992_v49, 4  ;;  %v2000_v28 = vrot.slane %v1999_v56, 4 }
 0x1b0   :  { %v2006_v6 = vsel %vm1648_vm4, %v1575_v9, -inf  ;;  %v2014_v47 = vrot.slane %v2013_v59, 4  ;;  %v2020_v32 = vsel %vm1648_vm4, %v1583_v3, -inf  ;;  %v2027_v54 = vsel %vm1648_vm4, %v1590_v11, -inf  ;;  %v6059_v17 = vld [vmem:[#allocation3 + $0x8] ss:$24 sps:$4 sm:$0xff]  }
 0x1b1   :  { %v1988_v35 = vrot.slane %v1987_v39, 2  ;;  %v1994_v13 = vmax.f32 %v1992_v49, %v1993_v42  ;;  %v2001_v24 = vmax.f32 %v1999_v56, %v2000_v28  ;;  %v2007_v61 = vrot.slane %v2006_v6, 4  ;;  %v5390_v28 = vld [vmem:[%s9334_s3 + $0x5f0] sm:$0xff] }
 0x1b2   :  { %v2015_v23 = vmax.f32 %v2013_v59, %v2014_v47  ;;  %v2021_v62 = vrot.slane %v2020_v32, 4  ;;  %v2028_v1 = vrot.slane %v2027_v54, 4  ;;  %v2034_v14 = vsel %vm1648_vm4, %v1591_v34, -inf }
 0x1b3   :  { %v1989_v29 = vmax.f32 %v1987_v39, %v1988_v35  ;;  %v1995_v52 = vrot.slane %v1994_v13, 2  ;;  %v2002_v22 = vrot.slane %v2001_v24, 2  ;;  %v2008_v15 = vmax.f32 %v2006_v6, %v2007_v61  ;;  %v6065_v61 = vld [vmem:[#allocation3 + $0x30] ss:$-48 sps:$4 sm:$0xee]  }
 0x1b4   :  { %v2016_v45 = vrot.slane %v2015_v23, 2  ;;  %v2022_v26 = vmax.f32 %v2020_v32, %v2021_v62  ;;  %v2029_v0 = vmax.f32 %v2027_v54, %v2028_v1  ;;  %v2035_v33 = vrot.slane %v2034_v14, 4  ;;  %v5381_v62 = vld [vmem:[%s9334_s3 + $0x5a8] sm:$0xff]  ;;  %v5383_v1 = vld [vmem:[%s9334_s3 + $0x5b8] sm:$0xff] }
 0x1b5   :  { %v1990_v19 = vrot.slane %v1989_v29, 1  ;;  %v1996_v51 = vmax.f32 %v1994_v13, %v1995_v52  ;;  %v2003_v10 = vmax.f32 %v2001_v24, %v2002_v22  ;;  %v2009_v37 = vrot.slane %v2008_v15, 2  ;;  %v5386_v24 = vld [vmem:[%s9334_s3 + $0x5d0] sm:$0xff] }
 0x1b6   :  { %v2017_v25 = vmax.f32 %v2015_v23, %v2016_v45  ;;  %v2023_v8 = vrot.slane %v2022_v26, 2  ;;  %v2030_v50 = vrot.slane %v2029_v0, 2  ;;  %v2036_v60 = vmax.f32 %v2034_v14, %v2035_v33  ;;  %v6067_v23 = vld [vmem:[#allocation3 + $0x34] ss:$-48 sps:$4 sm:$0xff]   ;;  %v5379_v45 = vld [vmem:[%s9334_s3 + $0x598] sm:$0xff] }
 0x1b7   :  { %v1991_v21 = vmax.f32 %v1989_v29, %v1990_v19  ;;  %v1997_v7 = vrot.slane %v1996_v51, 1  ;;  %v2004_v20 = vrot.slane %v2003_v10, 1  ;;  %v2010_v2 = vmax.f32 %v2008_v15, %v2009_v37  ;;  %v5380_v29 = vld [vmem:[%s9334_s3 + $0x5a0] sm:$0xff]  ;;  %v5382_v52 = vld [vmem:[%s9334_s3 + $0x5b0] sm:$0xff]  ;;  %v5377_v15 = vld [vmem:[%s9334_s3 + $0x588] sm:$0xff] }
 0x1b8   :  { %v2018_v31 = vrot.slane %v2017_v25, 1  ;;  %v2024_v18 = vmax.f32 %v2022_v26, %v2023_v8  ;;  %v2031_v57 = vmax.f32 %v2029_v0, %v2030_v50  ;;  %v2037_v48 = vrot.slane %v2036_v60, 2  ;;  %v6061_v26 = vld [vmem:[#allocation3 + $0xc] ss:$24 sps:$4 sm:$0xff]   ;;  %v6068_v50 = vld [vmem:[#allocation3 + $0x18] ss:$-8 sps:$4 sm:$0xff]  }
 0x1b9   :  { %v1998_v4 = vmax.f32 %v1996_v51, %v1997_v7  ;;  %v2005_v55 = vmax.f32 %v2003_v10, %v2004_v20  ;;  %v2011_v58 = vrot.slane %v2010_v2, 1  ;;  %v2150_v38 = vsel %vm2107_vm6, %v1991_v21, %v2149_v12  ;;  %v5388_v12 = vld [vmem:[%s9334_s3 + $0x5e0] sm:$0xff]  ;;  %v5373_v51 = vld [vmem:[%s9334_s3 + $0x568] sm:$0xff]  ;;  %v5375_v10 = vld [vmem:[%s9334_s3 + $0x578] sm:$0xff] }
 0x1ba   :  { %v2019_v40 = vmax.f32 %v2017_v25, %v2018_v31  ;;  %v2025_v5 = vrot.slane %v2024_v18, 1  ;;  %v2032_v3 = vrot.slane %v2031_v57, 1  ;;  %v2038_v11 = vmax.f32 %v2036_v60, %v2037_v48  ;;  %v5376_v0 = vld [vmem:[%s9334_s3 + $0x580] sm:$0xff]  ;;  %v5374_v25 = vld [vmem:[%s9334_s3 + $0x570] sm:$0xff]  ;;  %v5369_v60 = vld [vmem:[%s9334_s3 + $0x548] sm:$0xff] }
 0x1bb   :  { %v2012_v36 = vmax.f32 %v2010_v2, %v2011_v58  ;;  %v2151_v59 = vsel %vm2109_vm7, %v2005_v55, %v2150_v38  ;;  %v2156_v9 = vsel %vm2107_vm6, %v1998_v4, %v2155_v63  ;;  %v2407_v49 = vcombine.high %v7390_v30, %v7415_v43  ;;  %v5385_v30 = vld [vmem:[%s9334_s3 + $0x5c8] sm:$0xff]  ;;  %v5387_v43 = vld [vmem:[%s9334_s3 + $0x5d8] sm:$0xff]  ;;  %v5384_v63 = vld [vmem:[%s9334_s3 + $0x5c0] sm:$0xff] }
 0x1bc   :  { %v2026_v56 = vmax.f32 %v2024_v18, %v2025_v5  ;;  %v2033_v34 = vmax.f32 %v2031_v57, %v2032_v3  ;;  %v2039_v39 = vrot.slane %v2038_v11, 1  ;;  %v2152_v42 = vsel %vm2111_vm8, %v2019_v40, %v2151_v59  ;;  %v5372_v37 = vld [vmem:[%s9334_s3 + $0x560] sm:$0xff]  ;;  %v5371_v21 = vld [vmem:[%s9334_s3 + $0x558] sm:$0xff]  ;;  %v5370_v31 = vld [vmem:[%s9334_s3 + $0x550] sm:$0xff] }
 0x1bd   :  { %v2157_v6 = vsel %vm2109_vm7, %v2012_v36, %v2156_v9  ;;  %2525 = vmatprep.mubr.f32.mxu0 %v2407_v49  ;;  %2614 = vmatprep.mubr.f32.mxu1 %v2407_v49  ;;  %v2225_v47 = vrot.slane %v6058_v41, %v6929_v53  ;;  %v7460_v32 = vrot.slane %v6059_v17, %v6929_v53  ;;  %v5368_v7 = vld [vmem:[%s9334_s3 + $0x540] sm:$0xff]  ;;  %v5365_v4 = vld [vmem:[%s9334_s3 + $0x528] sm:$0xff]  ;;  %v5367_v55 = vld [vmem:[%s9334_s3 + $0x538] sm:$0xff] }
 0x1be   :  { %v2040_v54 = vmax.f32 %v2038_v11, %v2039_v39  ;;  %v2153_v35 = vsel %vm2113_vm9, %v2033_v34, %v2152_v42  ;;  %v2158_v13 = vsel %vm2111_vm8, %v2026_v56, %v2157_v6  ;;  %2526 = vmatmul.mubr.f32.vlgmr.msra.gmra.mxu0 %v7423_v44  ;;  %2615 = vmatmul.mubr.f32.vlgmr.msra.gmra.mxu1 %v7423_v44  ;;  %v5364_v11 = vld [vmem:[%s9334_s3 + $0x520] sm:$0xff]  ;;  %v5366_v36 = vld [vmem:[%s9334_s3 + $0x530] sm:$0xff]  ;;  %v5361_v34 = vld [vmem:[%s9334_s3 + $0x508] sm:$0xff] }
 0x1bf   :  { %2174 = vst [vmem:[#allocation3 + $0x28] sm:$0x7f] %v2153_v35  ;;  %2992 = vmatpush1.msra.mxu0 %v5388_v12  ;;  %3081 = vmatpush1.msra.mxu1 %v5390_v28  ;;  %v2409_v14 = vcombine.low %v2225_v47, %v7460_v32  ;;  %v2408_v22 = vcombine.low %v7372_v27, %v2226_v16  ;;  %v5378_v27 = vld [vmem:[%s9334_s3 + $0x590] sm:$0xff]  ;;  %v5363_v39 = vld [vmem:[%s9334_s3 + $0x518] sm:$0xff]  ;;  %v5360_v42 = vld [vmem:[%s9334_s3 + $0x500] sm:$0xff] }
 0x1c0   :  { %v2159_v44 = vsel %vm2113_vm9, %v2040_v54, %v2158_v13  ;;  %2993 = vmatprep.subr.mxu0 %v5385_v30  ;;  %3082 = vmatprep.subr.mxu1 %v5387_v43  ;;  %v7501_v33 = vrot.slane %v6065_v61, %v6929_v53  ;;  %v7504_v19 = vrot.slane %v6067_v23, %v6929_v53  ;;  %v5362_v12 = vld [vmem:[%s9334_s3 + $0x510] sm:$0xff]  ;;  %v5357_v47 = vld [vmem:[%s9334_s3 + $0x4e8] sm:$0xff]  ;;  %v5356_v54 = vld [vmem:[%s9334_s3 + $0x4e0] sm:$0xff] }
 0x1c1   :  { %2175 = vst [vmem:[#allocation3 + $0x38] sm:$0x7f] %v2159_v44  ;;  %2994 = vmatpush1.msra.mxu0 %v5384_v63  ;;  %3083 = vmatpush1.msra.mxu1 %v5386_v24  ;;  %v2423_v16 = vrot.slane %v2409_v14, %v6929_v53  ;;  %v2416_v8 = vrot.slane %v2408_v22, %v6929_v53  ;;  %v5358_v24 = vld [vmem:[%s9334_s3 + $0x4f0] sm:$0xff]  ;;  %v5353_v14 = vld [vmem:[%s9334_s3 + $0x4c8] sm:$0xff]  ;;  %v5355_v44 = vld [vmem:[%s9334_s3 + $0x4d8] sm:$0xff] }
 0x1c2   :  { %2995 = vmatprep.subr.mxu0 %v5381_v62  ;;  %3084 = vmatprep.subr.mxu1 %v5383_v1  ;;  %v2242_v20 = vrot.slane %v6061_v26, %v6929_v53  ;;  %v2243_v2 = vcombine.high %v7460_v32, %v7460_v32  ;;  %v2687_v57 = vcombine.high %v7501_v33, %v7501_v33  ;;  %v2752_v3 = vrot.slane %v7504_v19, 7  ;;  %v5359_v32 = vld [vmem:[%s9334_s3 + $0x4f8] sm:$0xff]  ;;  %v5354_v26 = vld [vmem:[%s9334_s3 + $0x4d0] sm:$0xff]  ;;  %v5448_v43 = vld [vmem:[%s9334_s3 + $0x7c0] sm:$0xff] }
 0x1c3   :  { %2996 = vmatpush1.msra.mxu0 %v5380_v29  ;;  %3085 = vmatpush1.msra.mxu1 %v5382_v52  ;;  %v2425_v18 = vcombine.high %v2416_v8, %v2423_v16  ;;  %v2688_v48 = vcombine.high %v7504_v19, %v7504_v19  ;;  %v2424_v58 = vcombine.low %v2416_v8, %v2423_v16  ;;  %v5348_v8 = vld [vmem:[%s9334_s3 + $0x4a0] sm:$0xff]  ;;  %v5338_v5 = vld [vmem:[%s9334_s3 + $0x450] sm:$0xff] }
 0x1c4   :  { %2997 = vmatprep.subr.mxu0 %v5377_v15  ;;  %3086 = vmatprep.subr.mxu1 %v5379_v45  ;;  %v7545_v41 = vrot.slane %v6068_v50, %v6929_v53  ;;  %v2426_v40 = vcombine.low %v2243_v2, %v2242_v20  ;;  %v2244_v59 = vcombine.high %v2242_v20, %v2242_v20  ;;  %v2749_v49 = vrot.slane %v2687_v57, 7  ;;  %v5352_v45 = vld [vmem:[%s9334_s3 + $0x4c0] sm:$0xff]  ;;  %v5350_v50 = vld [vmem:[%s9334_s3 + $0x4b0] sm:$0xff]  ;;  %v5343_v57 = vld [vmem:[%s9334_s3 + $0x478] sm:$0xff] }
 0x1c5   :  { %2998 = vmatpush1.msra.mxu0 %v5376_v0  ;;  %3087 = vmatpush1.msra.mxu1 %v5378_v27  ;;  %v2755_v56 = vrot.slane %v2688_v48, 7  ;;  %v2754_v13 = vrot.slane %v2752_v3, 2  ;;  %v5326_v27 = vrot.slane %v7501_v33, 9  ;;  %v5344_v20 = vld [vmem:[%s9334_s3 + $0x480] sm:$0xff]  ;;  %v5346_v2 = vld [vmem:[%s9334_s3 + $0x490] sm:$0xff] }
 0x1c6   :  { %2999 = vmatprep.subr.mxu0 %v5373_v51  ;;  %3088 = vmatprep.subr.mxu1 %v5375_v10  ;;  %v2758_v63 = vrot.slane %v7545_v41, 7  ;;  %v2434_v35 = vrot.slane %v2426_v40, %v6929_v53  ;;  %v2751_v62 = vrot.slane %v2749_v49, 2  ;;  %v5349_v51 = vld [vmem:[%s9334_s3 + $0x4a8] sm:$0xff]  ;;  %v5351_v10 = vld [vmem:[%s9334_s3 + $0x4b8] sm:$0xff]  ;;  %v5336_v40 = vld [vmem:[%s9334_s3 + $0x440] sm:$0xff] }
 0x1c7   :  { %3000 = vmatpush1.msra.mxu0 %v5372_v37  ;;  %3089 = vmatpush1.msra.mxu1 %v5374_v25  ;;  %v2757_v1 = vrot.slane %v2755_v56, 2  ;;  %v2756_v19 = vsel %vm7604_vm15, %v2754_v13, %v2755_v56  ;;  %v2750_v33 = vsel %vm7604_vm15, %v5326_v27, %v2749_v49  ;;  %v5331_v49 = vld [vmem:[%s9334_s3 + $0x418] sm:$0xff]  ;;  %v5328_v56 = vld [vmem:[%s9334_s3 + $0x400] sm:$0xff]  ;;  %v5446_v13 = vld [vmem:[%s9334_s3 + $0x7b0] sm:$0xff] }
 0x1c8   :  { %3001 = vmatprep.subr.mxu0 %v5369_v60  ;;  %3090 = vmatprep.subr.mxu1 %v5371_v21  ;;  %v6062_v38 = vld [vmem:[#allocation3 + $0x28] ss:$16 sps:$4 sm:$0xff]   ;;  %v6064_v17 = vld [vmem:[#allocation3 + $0x2c] ss:$16 sps:$4 sm:$0x33]   ;;  %v2753_v16 = vsel %vm7604_vm15, %v2751_v62, %v2752_v3  ;;  %v5442_v62 = vld [vmem:[%s9334_s3 + $0x790] sm:$0xff] }
 0x1c9   :  { %3002 = vmatpush1.msra.mxu0 %v5368_v7  ;;  %3091 = vmatpush1.msra.mxu1 %v5370_v31  ;;  %v2253_v9 = vrot.slane %v6062_v38, %v6929_v53  ;;  %v2260_v30 = vrot.slane %v6064_v17, %v6929_v53  ;;  %v2759_v15 = vsel %vm7604_vm15, %v2757_v1, %v2758_v63  ;;  %v5345_v21 = vld [vmem:[%s9334_s3 + $0x488] sm:$0xff]  ;;  %v5347_v7 = vld [vmem:[%s9334_s3 + $0x498] sm:$0xff]  ;;  %v5434_v27 = vld [vmem:[%s9334_s3 + $0x750] sm:$0xff] }
 0x1ca   :  { %2531 = vmatprep.mubr.f32.mxu0 %v2425_v18  ;;  %2620 = vmatprep.mubr.f32.mxu1 %v2425_v18  ;;  %v2921_v25 = vcombine.low %v2756_v19, %v2759_v15  ;;  %v2920_v60 = vcombine.low %v2750_v33, %v2753_v16  ;;  %v5341_v18 = vld [vmem:[%s9334_s3 + $0x468] sm:$0xff]  ;;  %v5339_v17 = vld [vmem:[%s9334_s3 + $0x458] sm:$0xff] }
 0x1cb   :  { %3003 = vmatprep.subr.mxu0 %v5365_v4  ;;  %3092 = vmatprep.subr.mxu1 %v5367_v55  ;;  %v2261_v28 = vcombine.high %v2253_v9, %v2253_v9  ;;  %v2427_v6 = vcombine.low %v2244_v59, %v2253_v9  ;;  %v5340_v4 = vld [vmem:[%s9334_s3 + $0x460] sm:$0xff]  ;;  %v5337_v38 = vld [vmem:[%s9334_s3 + $0x448] sm:$0xff]  ;;  %v5334_v59 = vld [vmem:[%s9334_s3 + $0x430] sm:$0xff] }
 0x1cc   :  { %2532 = vmatmul.mubr.f32.gmra.mxu0 %v2424_v58  ;;  %2621 = vmatmul.mubr.f32.gmra.mxu1 %v2424_v58  ;;  %v7651_v31 = vrot.slane %v2921_v25, %v6929_v53  ;;  %v7660_v48 = vrot.slane %v2920_v60, %v6929_v53  ;;  %v5342_v58 = vld [vmem:[%s9334_s3 + $0x470] sm:$0xff]  ;;  %v5333_v3 = vld [vmem:[%s9334_s3 + $0x428] sm:$0xff]  ;;  %v5431_v19 = vld [vmem:[%s9334_s3 + $0x738] sm:$0xff] }
 0x1cd   :  { %3004 = vmatpush1.msra.mxu0 %v5364_v11  ;;  %3093 = vmatpush1.msra.mxu1 %v5366_v36  ;;  %v2441_v61 = vrot.slane %v2427_v6, %v6929_v53  ;;  %v2444_v23 = vcombine.low %v2261_v28, %v2260_v30  ;;  %v5335_v11 = vld [vmem:[%s9334_s3 + $0x438] sm:$0xff]  ;;  %v5332_v36 = vld [vmem:[%s9334_s3 + $0x420] sm:$0xff]  ;;  %v5329_v9 = vld [vmem:[%s9334_s3 + $0x408] sm:$0xff] }
 0x1ce   :  { %3005 = vmatprep.subr.mxu0 %v5361_v34  ;;  %3094 = vmatprep.subr.mxu1 %v5363_v39  ;;  %v2937_v55 = vcombine.high %v7660_v48, %v7651_v31  ;;  %v5330_v34 = vld [vmem:[%s9334_s3 + $0x410] sm:$0xff]  ;;  %v5453_v39 = vld [vmem:[%s9334_s3 + $0x7e8] sm:$0xff]  ;;  %v5451_v30 = vld [vmem:[%s9334_s3 + $0x7d8] sm:$0xff] }
 0x1cf   :  { %3006 = vmatpush1.msra.mxu0 %v5360_v42  ;;  %3095 = vmatpush1.msra.mxu1 %v5362_v12  ;;  %v2443_v52 = vcombine.high %v2434_v35, %v2441_v61  ;;  %v2451_v22 = vrot.slane %v2444_v23, %v6929_v53  ;;  %v2442_v0 = vcombine.low %v2434_v35, %v2441_v61  ;;  %v5455_v42 = vld [vmem:[%s9334_s3 + $0x7f8] sm:$0xff]  ;;  %v5452_v12 = vld [vmem:[%s9334_s3 + $0x7e0] sm:$0xff]  ;;  %v5454_v28 = vld [vmem:[%s9334_s3 + $0x7f0] sm:$0xff] }
 0x1d0   :  { %3007 = vmatprep.subr.mxu0 %v5357_v47  ;;  %3096 = vmatprep.subr.mxu1 %v5359_v32  ;;  %v5449_v6 = vld [vmem:[%s9334_s3 + $0x7c8] sm:$0xff]  ;;  %v5450_v47 = vld [vmem:[%s9334_s3 + $0x7d0] sm:$0xff]  ;;  %v5444_v35 = vld [vmem:[%s9334_s3 + $0x7a0] sm:$0xff] }
 0x1d1   :  { %3008 = vmatpush1.msra.mxu0 %v5356_v54  ;;  %3097 = vmatpush1.msra.mxu1 %v5358_v24  ;;  %v2452_v37 = vcombine.high %v2451_v22, %v2451_v22  ;;  %v5445_v32 = vld [vmem:[%s9334_s3 + $0x7a8] sm:$0xff]  ;;  %v5447_v54 = vld [vmem:[%s9334_s3 + $0x7b8] sm:$0xff]  ;;  %v5440_v23 = vld [vmem:[%s9334_s3 + $0x780] sm:$0xff] }
 0x1d2   :  { %3009 = vmatprep.subr.mxu0 %v5353_v14  ;;  %3098 = vmatprep.subr.mxu1 %v5355_v44  ;;  %v5441_v24 = vld [vmem:[%s9334_s3 + $0x788] sm:$0xff]  ;;  %v5443_v61 = vld [vmem:[%s9334_s3 + $0x798] sm:$0xff] }
 0x1d3   :  { %2537 = vmatprep.mubr.f32.mxu0 %v2443_v52  ;;  %2626 = vmatprep.mubr.f32.mxu1 %v2443_v52  ;;  %v5437_v1 = vld [vmem:[%s9334_s3 + $0x768] sm:$0xff]  ;;  %v5439_v14 = vld [vmem:[%s9334_s3 + $0x778] sm:$0xff]  ;;  %v5436_v52 = vld [vmem:[%s9334_s3 + $0x760] sm:$0xff] }
 0x1d4   :  { %3010 = vmatpush1.msra.mxu0 %v5352_v45  ;;  %3099 = vmatpush1.msra.mxu1 %v5354_v26  ;;  %v6071_v44 = vld [vmem:[#allocation3 + $0x8] ss:$24 sps:$4 sm:$0xee]   ;;  %v6070_v15 = vld [vmem:[#allocation3 + $0x1c] ss:$-8 sps:$4 sm:$0x77]  }
 0x1d5   :  { %2538 = vmatmul.mubr.f32.gmra.mxu0 %v2442_v0  ;;  %2627 = vmatmul.mubr.f32.gmra.mxu1 %v2442_v0  ;;  %v5433_v45 = vld [vmem:[%s9334_s3 + $0x748] sm:$0xff]  ;;  %v5435_v26 = vld [vmem:[%s9334_s3 + $0x758] sm:$0xff]  ;;  %v5432_v0 = vld [vmem:[%s9334_s3 + $0x740] sm:$0xff]  ;;  %v7797_v33 = vrot.slane %v6070_v15, %v6929_v53 }
 0x1d6   :  { %3011 = vmatprep.subr.mxu0 %v5349_v51  ;;  %3100 = vmatprep.subr.mxu1 %v5351_v10  ;;  %v5429_v16 = vld [vmem:[%s9334_s3 + $0x728] sm:$0xff]  ;;  %v7785_v51 = vrot.slane %v6071_v44, %v6929_v53  ;;  %v5428_v10 = vld [vmem:[%s9334_s3 + $0x720] sm:$0xff]  ;;  %v5406_v44 = vld [vmem:[%s9334_s3 + $0x670] sm:$0xff] }
 0x1d7   :  { %2543 = vmatprep.mubr.f32.mxu0 %v2452_v37  ;;  %2632 = vmatprep.mubr.f32.mxu1 %v2452_v37  ;;  %v5430_v37 = vld [vmem:[%s9334_s3 + $0x730] sm:$0xff]  ;;  %v5425_v25 = vld [vmem:[%s9334_s3 + $0x708] sm:$0xff]  ;;  %v5403_v15 = vld [vmem:[%s9334_s3 + $0x658] sm:$0xff] }
 0x1d8   :  { %3012 = vmatpush1.msra.mxu0 %v5348_v8  ;;  %3101 = vmatpush1.msra.mxu1 %v5350_v50  ;;  %v2705_v8 = vcombine.high %v7545_v41, %v7545_v41  ;;  %v5427_v50 = vld [vmem:[%s9334_s3 + $0x718] sm:$0xff]  ;;  %v6073_v60 = vld [vmem:[#allocation3 + $0xc] ss:$24 sps:$4 sm:$0xff]  }
 0x1d9   :  { %3013 = vmatprep.subr.mxu0 %v5345_v21  ;;  %3102 = vmatprep.subr.mxu1 %v5347_v7  ;;  %v6074_v21 = vld [vmem:[#allocation3 + $0x28] ss:$16 sps:$4 sm:$0xff]   ;;  %v5424_v7 = vld [vmem:[%s9334_s3 + $0x700] sm:$0xff] }
 0x1da   :  { %3014 = vmatpush1.msra.mxu0 %v5344_v20  ;;  %3103 = vmatpush1.msra.mxu1 %v5346_v2  ;;  %v5426_v20 = vld [vmem:[%s9334_s3 + $0x710] sm:$0xff]  ;;  %v5421_v2 = vld [vmem:[%s9334_s3 + $0x6e8] sm:$0xff] }
 0x1db   :  { %2544 = vmatmul.mubr.f32.gmra.mxu0 %v2451_v22  ;;  %2633 = vmatmul.mubr.f32.gmra.mxu1 %v2451_v22  ;;  %v5438_v22 = vld [vmem:[%s9334_s3 + $0x770] sm:$0xff] }
 0x1dc   :  { %3015 = vmatprep.subr.mxu0 %v5341_v18  ;;  %3104 = vmatprep.subr.mxu1 %v5343_v57  ;;  %v5423_v18 = vld [vmem:[%s9334_s3 + $0x6f8] sm:$0xff]  ;;  %v2723_v57 = vcombine.high %v7785_v51, %v7785_v51 }
 0x1dd   :  { %3016 = vmatpush1.msra.mxu0 %v5340_v4  ;;  %3055 = vmatprep.mubr.f32.mxu0 %v2937_v55  ;;  %v5420_v4 = vld [vmem:[%s9334_s3 + $0x6e0] sm:$0xff] }
 0x1de   :  { %3105 = vmatpush1.msra.mxu1 %v5342_v58  ;;  %3144 = vmatprep.mubr.f32.mxu1 %v2937_v55  ;;  %v5422_v55 = vld [vmem:[%s9334_s3 + $0x6f0] sm:$0xff]  ;;  %v2706_v58 = vcombine.high %v7797_v33, %v7797_v33 }
 0x1df   :  { %3017 = vmatprep.subr.mxu0 %v5337_v38  ;;  %3106 = vmatprep.subr.mxu1 %v5339_v17  ;;  %v7826_v38 = vrot.slane %v2705_v8, 7  ;;  %v2764_v17 = vrot.slane %v7797_v33, 7  ;;  %v5396_v8 = vld [vmem:[%s9334_s3 + $0x620] sm:$0xff] }
 0x1e0   :  { %3018 = vmatpush1.msra.mxu0 %v5336_v40  ;;  %3107 = vmatpush1.msra.mxu1 %v5338_v5  ;;  %v5417_v40 = vld [vmem:[%s9334_s3 + $0x6c8] sm:$0xff]  ;;  %v5419_v5 = vld [vmem:[%s9334_s3 + $0x6d8] sm:$0xff] }
 0x1e1   :  { %3019 = vmatprep.subr.mxu0 %v5333_v3  ;;  %3108 = vmatprep.subr.mxu1 %v5335_v11  ;;  %v7836_v3 = vrot.slane %v6073_v60, %v6929_v53  ;;  %v7839_v11 = vrot.slane %v6074_v21, %v6929_v53 }
 0x1e2   :  { %3020 = vmatpush1.msra.mxu0 %v5332_v36  ;;  %3109 = vmatpush1.msra.mxu1 %v5334_v59  ;;  %v5416_v36 = vld [vmem:[%s9334_s3 + $0x6c0] sm:$0xff]  ;;  %v5418_v59 = vld [vmem:[%s9334_s3 + $0x6d0] sm:$0xff] }
 0x1e3   :  { %3021 = vmatprep.subr.mxu0 %v5329_v9  ;;  %3110 = vmatprep.subr.mxu1 %v5331_v49  ;;  %v5413_v9 = vld [vmem:[%s9334_s3 + $0x6a8] sm:$0xff]  ;;  %v5415_v49 = vld [vmem:[%s9334_s3 + $0x6b8] sm:$0xff] }
 0x1e4   :  { %3022 = vmatpush1.msra.mxu0 %v5328_v56  ;;  %3111 = vmatpush1.msra.mxu1 %v5330_v34  ;;  %v7853_v56 = vrot.slane %v2723_v57, 7  ;;  %v5412_v34 = vld [vmem:[%s9334_s3 + $0x6a0] sm:$0xff] }
 0x1e5   :  { %3023 = vmatprep.subr.mxu0 %v5453_v39  ;;  %3112 = vmatprep.subr.mxu1 %v5455_v42  ;;  %v5414_v39 = vld [vmem:[%s9334_s3 + $0x6b0] sm:$0xff]  ;;  %v5409_v42 = vld [vmem:[%s9334_s3 + $0x688] sm:$0xff] }
 0x1e6   :  { %3024 = vmatpush2.msra.mxu0 %v5452_v12  ;;  %3113 = vmatpush2.msra.mxu1 %v5454_v28  ;;  %v2763_v12 = vrot.slane %v7826_v38, 2  ;;  %v2766_v28 = vrot.slane %v2764_v17, 2  ;;  %v2773_v33 = vrot.slane %v7853_v56, 2 }
 0x1e7   :  { %3025 = vmatprep.subr.mxu0 %v5449_v6  ;;  %3114 = vmatprep.subr.mxu1 %v5451_v30  ;;  %v2767_v6 = vrot.slane %v2706_v58, 7  ;;  %v5411_v30 = vld [vmem:[%s9334_s3 + $0x698] sm:$0xff]  ;;  %v5394_v58 = vld [vmem:[%s9334_s3 + $0x610] sm:$0xff] }
 0x1e8   :  { %3026 = vmatpush2.msra.mxu0 %v5448_v43  ;;  %3115 = vmatpush2.msra.mxu1 %v5450_v47  ;;  %v5327_v43 = vrot.slane %v7785_v51, 9  ;;  %v2724_v47 = vcombine.high %v7836_v3, %v7836_v3 }
 0x1e9   :  { %3027 = vmatprep.subr.mxu0 %v5445_v32  ;;  %3116 = vmatprep.subr.mxu1 %v5447_v54  ;;  %v6076_v32 = vld [vmem:[#allocation3 + $0x2c] ss:$16 sps:$4 sm:$0x77]   ;;  %v2741_v54 = vcombine.high %v7839_v11, %v7839_v11  ;;  %v2768_v41 = vsel %vm7604_vm15, %v2766_v28, %v2767_v6  ;;  %v6079_v28 = vld [vmem:[#allocation3 + $0x34] ss:$-48 sps:$4 sm:$0xff]  }
 0x1ea   :  { %3028 = vmatpush2.msra.mxu0 %v5444_v35  ;;  %3117 = vmatpush2.msra.mxu1 %v5446_v13  ;;  %v2780_v35 = vrot.slane %v7839_v11, 7  ;;  %v5408_v13 = vld [vmem:[%s9334_s3 + $0x680] sm:$0xff]  ;;  %v5517_v11 = vld [vmem:[%s9334_s3 + $0x9e8] sm:$0xff] }
 0x1eb   :  { %3029 = vmatprep.subr.mxu0 %v5441_v24  ;;  %3118 = vmatprep.subr.mxu1 %v5443_v61  ;;  %v5410_v24 = vld [vmem:[%s9334_s3 + $0x690] sm:$0xff]  ;;  %v5405_v61 = vld [vmem:[%s9334_s3 + $0x668] sm:$0xff] }
 0x1ec   :  { %3030 = vmatpush2.msra.mxu0 %v5440_v23  ;;  %3119 = vmatpush2.msra.mxu1 %v5442_v62  ;;  %v5407_v23 = vld [vmem:[%s9334_s3 + $0x678] sm:$0xff]  ;;  %v2760_v62 = vrot.slane %v2758_v63, 2  ;;  %v2774_v63 = vrot.slane %v7836_v3, 7  ;;  %v2936_v3 = vcombine.low %v7660_v48, %v7651_v31  ;;  %v6077_v48 = vld [vmem:[#allocation3 + $0x30] ss:$-48 sps:$4 sm:$0xcc]  }
 0x1ed   :  { %3031 = vmatprep.subr.mxu0 %v5437_v1  ;;  %3120 = vmatprep.subr.mxu1 %v5439_v14  ;;  %v2772_v1 = vsel %vm7604_vm15, %v5327_v43, %v7853_v56  ;;  %v5404_v14 = vld [vmem:[%s9334_s3 + $0x660] sm:$0xff]  ;;  %v5513_v6 = vld [vmem:[%s9334_s3 + $0x9c8] sm:$0xff] }
 0x1ee   :  { %3032 = vmatpush2.msra.mxu0 %v5436_v52  ;;  %3121 = vmatpush2.msra.mxu1 %v5438_v22  ;;  %v2765_v52 = vsel %vm7604_vm15, %v2763_v12, %v2764_v17  ;;  %v5401_v22 = vld [vmem:[%s9334_s3 + $0x648] sm:$0xff]  ;;  %v2939_v51 = vcombine.low %v2768_v41, %v2772_v1  ;;  %v2776_v21 = vrot.slane %v2774_v63, 2  ;;  %v2775_v17 = vsel %vm7604_vm15, %v2773_v33, %v2774_v63  ;;  %v5510_v41 = vld [vmem:[%s9334_s3 + $0x9b0] sm:$0xff]  ;;  %v5500_v33 = vld [vmem:[%s9334_s3 + $0x960] sm:$0xff] }
 0x1ef   :  { %3033 = vmatprep.subr.mxu0 %v5433_v45  ;;  %3122 = vmatprep.subr.mxu1 %v5435_v26  ;;  %v2777_v45 = vrot.slane %v2724_v47, 7  ;;  %v2782_v26 = vrot.slane %v2780_v35, 2  ;;  %v5512_v47 = vld [vmem:[%s9334_s3 + $0x9c0] sm:$0xff] }
 0x1f0   :  { %3034 = vmatpush2.msra.mxu0 %v5432_v0  ;;  %3123 = vmatpush2.msra.mxu1 %v5434_v27  ;;  %v7908_v0 = vrot.slane %v2741_v54, 7  ;;  %v2740_v27 = vrot.slane %v6076_v32, %v6929_v53  ;;  %v5514_v32 = vld [vmem:[%s9334_s3 + $0x9d0] sm:$0xff] }
 0x1f1   :  { %3035 = vmatprep.subr.mxu0 %v5429_v16  ;;  %3124 = vmatprep.subr.mxu1 %v5431_v19  ;;  %v5400_v16 = vld [vmem:[%s9334_s3 + $0x640] sm:$0xff]  ;;  %v5402_v19 = vld [vmem:[%s9334_s3 + $0x650] sm:$0xff] }
 0x1f2   :  { %3036 = vmatpush2.msra.mxu0 %v5428_v10  ;;  %3125 = vmatpush2.msra.mxu1 %v5430_v37  ;;  %v5397_v10 = vld [vmem:[%s9334_s3 + $0x628] sm:$0xff]  ;;  %v5399_v37 = vld [vmem:[%s9334_s3 + $0x638] sm:$0xff]  ;;  %v2742_v57 = vcombine.high %v2740_v27, %v2740_v27 }
 0x1f3   :  { %3037 = vmatprep.subr.mxu0 %v5425_v25  ;;  %3126 = vmatprep.subr.mxu1 %v5427_v50  ;;  %v2762_v25 = vsel %vm7604_vm15, %v2760_v62, %v7826_v38  ;;  %v5398_v50 = vld [vmem:[%s9334_s3 + $0x630] sm:$0xff]  ;;  %v2953_v38 = vrot.slane %v2939_v51, %v6929_v53  ;;  %v5511_v62 = vld [vmem:[%s9334_s3 + $0x9b8] sm:$0xff]  ;;  %v5501_v51 = vld [vmem:[%s9334_s3 + $0x968] sm:$0xff] }
 0x1f4   :  { %3038 = vmatpush2.msra.mxu0 %v5424_v7  ;;  %3127 = vmatpush2.msra.mxu1 %v5426_v20  ;;  %v2938_v60 = vcombine.low %v2762_v25, %v2765_v52  ;;  %v5393_v7 = vld [vmem:[%s9334_s3 + $0x608] sm:$0xff]  ;;  %v5395_v20 = vld [vmem:[%s9334_s3 + $0x618] sm:$0xff]  ;;  %v2789_v31 = vrot.slane %v2742_v57, 7  ;;  %v5508_v52 = vld [vmem:[%s9334_s3 + $0x9a0] sm:$0xff] }
 0x1f5   :  { %3039 = vmatprep.subr.mxu0 %v5421_v2  ;;  %3128 = vmatprep.subr.mxu1 %v5423_v18  ;;  %v2779_v2 = vrot.slane %v2777_v45, 2  ;;  %v2784_v18 = vsel %vm7604_vm15, %v2782_v26, %v7908_v0  ;;  %v5506_v26 = vld [vmem:[%s9334_s3 + $0x990] sm:$0xff]  ;;  %v5495_v57 = vld [vmem:[%s9334_s3 + $0x938] sm:$0xff] }
 0x1f6   :  { %3040 = vmatpush2.msra.mxu0 %v5420_v4  ;;  %3129 = vmatpush2.msra.mxu1 %v5422_v55  ;;  %v2786_v4 = vrot.slane %v2740_v27, 7  ;;  %v5392_v55 = vld [vmem:[%s9334_s3 + $0x600] sm:$0xff] }
 0x1f7   :  { %3041 = vmatprep.subr.mxu0 %v5417_v40  ;;  %3130 = vmatprep.subr.mxu1 %v5419_v5  ;;  %v2781_v40 = vsel %vm7604_vm15, %v2779_v2, %v2780_v35  ;;  %v2785_v5 = vrot.slane %v7908_v0, 2  ;;  %v6080_v35 = vld [vmem:[#allocation3 + $0x18] ss:$-8 sps:$4 sm:$0xff]  }
 0x1f8   :  { %3042 = vmatpush2.msra.mxu0 %v5416_v36  ;;  %3131 = vmatpush2.msra.mxu1 %v5418_v59  ;;  %v5519_v36 = vld [vmem:[%s9334_s3 + $0x9f8] sm:$0xff]  ;;  %v2946_v59 = vrot.slane %v2938_v60, %v6929_v53  ;;  %v2788_v56 = vrot.slane %v2786_v4, 2  ;;  %v8004_v63 = vrot.slane %v6080_v35, %v6929_v53  ;;  %v5497_v60 = vld [vmem:[%s9334_s3 + $0x948] sm:$0xff]  ;;  %v5470_v35 = vld [vmem:[%s9334_s3 + $0x870] sm:$0xff] }
 0x1f9   :  { %3043 = vmatprep.subr.mxu0 %v5413_v9  ;;  %3132 = vmatprep.subr.mxu1 %v5415_v49  ;;  %v2957_v9 = vcombine.low %v2781_v40, %v2784_v18  ;;  %v2778_v49 = vsel %vm7604_vm15, %v2776_v21, %v2777_v45  ;;  %v2787_v43 = vsel %vm7604_vm15, %v2785_v5, %v2786_v4  ;;  %v5504_v45 = vld [vmem:[%s9334_s3 + $0x980] sm:$0xff]  ;;  %v5499_v21 = vld [vmem:[%s9334_s3 + $0x958] sm:$0xff]  ;;  %v5493_v18 = vld [vmem:[%s9334_s3 + $0x928] sm:$0xff] }
 0x1fa   :  { %3044 = vmatpush2.msra.mxu0 %v5412_v34  ;;  %3133 = vmatpush2.msra.mxu1 %v5414_v39  ;;  %v2955_v34 = vcombine.high %v2946_v59, %v2953_v38  ;;  %v5516_v39 = vld [vmem:[%s9334_s3 + $0x9e0] sm:$0xff]  ;;  %v2956_v12 = vcombine.low %v2775_v17, %v2778_v49  ;;  %v5489_v17 = vld [vmem:[%s9334_s3 + $0x908] sm:$0xff]  ;;  %v5491_v40 = vld [vmem:[%s9334_s3 + $0x918] sm:$0xff] }
 0x1fb   :  { %3045 = vmatprep.subr.mxu0 %v5409_v42  ;;  %3134 = vmatprep.subr.mxu1 %v5411_v30  ;;  %v5518_v42 = vld [vmem:[%s9334_s3 + $0x9f0] sm:$0xff]  ;;  %v5515_v30 = vld [vmem:[%s9334_s3 + $0x9d8] sm:$0xff]  ;;  %v2971_v54 = vrot.slane %v2957_v9, %v6929_v53  ;;  %v5488_v5 = vld [vmem:[%s9334_s3 + $0x900] sm:$0xff] }
 0x1fc   :  { %3046 = vmatpush2.msra.mxu0 %v5408_v13  ;;  %3135 = vmatpush2.msra.mxu1 %v5410_v24  ;;  %v2954_v13 = vcombine.low %v2946_v59, %v2953_v38  ;;  %v2790_v24 = vsel %vm7604_vm15, %v2788_v56, %v2789_v31  ;;  %v2964_v1 = vrot.slane %v2956_v12, %v6929_v53  ;;  %v5494_v38 = vld [vmem:[%s9334_s3 + $0x930] sm:$0xff]  ;;  %v5484_v59 = vld [vmem:[%s9334_s3 + $0x8e0] sm:$0xff]  ;;  %v5481_v49 = vld [vmem:[%s9334_s3 + $0x8c8] sm:$0xff] }
 0x1fd   :  { %3047 = vmatprep.subr.mxu0 %v5405_v61  ;;  %3136 = vmatprep.subr.mxu1 %v5407_v23  ;;  %v3241_v61 = vrot.slane %v6077_v48, %v6929_v53  ;;  %v5509_v23 = vld [vmem:[%s9334_s3 + $0x9a8] sm:$0xff]  ;;  %v5486_v9 = vld [vmem:[%s9334_s3 + $0x8f0] sm:$0xff]  ;;  %v5483_v56 = vld [vmem:[%s9334_s3 + $0x8d8] sm:$0xff] }
 0x1fe   :  { %3048 = vmatpush2.msra.mxu0 %v5404_v14  ;;  %3137 = vmatpush2.msra.mxu1 %v5406_v44  ;;  %v2974_v14 = vcombine.low %v2787_v43, %v2790_v24  ;;  %v3248_v44 = vrot.slane %v6079_v28, %v6929_v53  ;;  %v2973_v29 = vcombine.high %v2964_v1, %v2971_v54  ;;  %v5480_v31 = vld [vmem:[%s9334_s3 + $0x8c0] sm:$0xff]  ;;  %v5482_v48 = vld [vmem:[%s9334_s3 + $0x8d0] sm:$0xff]  ;;  %v5473_v28 = vld [vmem:[%s9334_s3 + $0x888] sm:$0xff] }
 0x1ff   :  { %3049 = vmatprep.subr.mxu0 %v5401_v22  ;;  %3138 = vmatprep.subr.mxu1 %v5403_v15  ;;  %v5505_v22 = vld [vmem:[%s9334_s3 + $0x988] sm:$0xff]  ;;  %v5507_v15 = vld [vmem:[%s9334_s3 + $0x998] sm:$0xff]  ;;  %v3249_v27 = vcombine.high %v3241_v61, %v3241_v61  ;;  %v5478_v12 = vld [vmem:[%s9334_s3 + $0x8b0] sm:$0xff] }
 0x200   :  { %3050 = vmatpush2.msra.mxu0 %v5400_v16  ;;  %3139 = vmatpush2.msra.mxu1 %v5402_v19  ;;  %v2981_v0 = vrot.slane %v2974_v14, %v6929_v53  ;;  %v3250_v16 = vcombine.high %v3248_v44, %v3248_v44  ;;  %v2972_v19 = vcombine.low %v2964_v1, %v2971_v54  ;;  %v5474_v43 = vld [vmem:[%s9334_s3 + $0x890] sm:$0xff]  ;;  %v5468_v54 = vld [vmem:[%s9334_s3 + $0x860] sm:$0xff]  ;;  %v5467_v24 = vld [vmem:[%s9334_s3 + $0x858] sm:$0xff] }
 0x201   :  { %3051 = vmatprep.subr.mxu0 %v5397_v10  ;;  %3140 = vmatprep.subr.mxu1 %v5399_v37  ;;  %v5503_v10 = vld [vmem:[%s9334_s3 + $0x978] sm:$0xff]  ;;  %v5464_v61 = vld [vmem:[%s9334_s3 + $0x840] sm:$0xff] }
 0x202   :  { %3052 = vmatpush2.msra.mxu0 %v5396_v8  ;;  %3141 = vmatpush2.msra.mxu1 %v5398_v50  ;;  %v3435_v37 = vcombine.low %v3250_v16, %v8004_v63  ;;  %v2982_v25 = vcombine.high %v2981_v0, %v2981_v0  ;;  %v5502_v8 = vld [vmem:[%s9334_s3 + $0x970] sm:$0xff]  ;;  %v3434_v50 = vcombine.low %v3249_v27, %v3248_v44  ;;  %v5463_v1 = vld [vmem:[%s9334_s3 + $0x838] sm:$0xff]  ;;  %v5460_v14 = vld [vmem:[%s9334_s3 + $0x820] sm:$0xff] }
 0x203   :  { %3053 = vmatprep.subr.mxu0 %v5393_v7  ;;  %3142 = vmatprep.subr.mxu1 %v5395_v20  ;;  %v5496_v7 = vld [vmem:[%s9334_s3 + $0x940] sm:$0xff]  ;;  %v5498_v20 = vld [vmem:[%s9334_s3 + $0x950] sm:$0xff]  ;;  %v5577_v27 = vld [vmem:[%s9334_s3 + $0xbc8] sm:$0xff] }
 0x204   :  { %3054 = vmatpush2.msra.mxu0 %v5392_v55  ;;  %3143 = vmatpush2.msra.mxu1 %v5394_v58  ;;  %v8045_v2 = vrot.slane %v3435_v37, %v6929_v53  ;;  %v8054_v4 = vrot.slane %v3434_v50, %v6929_v53  ;;  %v5492_v55 = vld [vmem:[%s9334_s3 + $0x920] sm:$0xff]  ;;  %v5462_v44 = vld [vmem:[%s9334_s3 + $0x830] sm:$0xff]  ;;  %v5579_v16 = vld [vmem:[%s9334_s3 + $0xbd8] sm:$0xff] }
 0x205   :  { %3056 = vmatmul.mubr.f32.vlgmr.msra.gmra.mxu0 %v2936_v3  ;;  %3145 = vmatmul.mubr.f32.vlgmr.msra.gmra.mxu1 %v2936_v3  ;;  %v5490_v3 = vld [vmem:[%s9334_s3 + $0x910] sm:$0xff]  ;;  %v5575_v37 = vld [vmem:[%s9334_s3 + $0xbb8] sm:$0xff] }
 0x206   :  { %3505 = vmatprep.subr.mxu0 %v5517_v11  ;;  %3594 = vmatprep.subr.mxu1 %v5519_v36  ;;  %v3451_v58 = vcombine.high %v8054_v4, %v8045_v2  ;;  %v5485_v11 = vld [vmem:[%s9334_s3 + $0x8e8] sm:$0xff]  ;;  %v5487_v36 = vld [vmem:[%s9334_s3 + $0x8f8] sm:$0xff] }
 0x207   :  { %3061 = vmatprep.mubr.f32.mxu0 %v2955_v34  ;;  %3150 = vmatprep.mubr.f32.mxu1 %v2955_v34  ;;  %v5477_v34 = vld [vmem:[%s9334_s3 + $0x8a8] sm:$0xff]  ;;  %v5571_v50 = vld [vmem:[%s9334_s3 + $0xb98] sm:$0xff] }
 0x208   :  { %3506 = vmatpush1.msra.mxu0 %v5516_v39  ;;  %3595 = vmatpush1.msra.mxu1 %v5518_v42  ;;  %v5479_v39 = vld [vmem:[%s9334_s3 + $0x8b8] sm:$0xff]  ;;  %v5476_v42 = vld [vmem:[%s9334_s3 + $0x8a0] sm:$0xff] }
 0x209   :  { %3507 = vmatprep.subr.mxu0 %v5513_v6  ;;  %3596 = vmatprep.subr.mxu1 %v5515_v30  ;;  %v5475_v6 = vld [vmem:[%s9334_s3 + $0x898] sm:$0xff]  ;;  %v5472_v30 = vld [vmem:[%s9334_s3 + $0x880] sm:$0xff] }
 0x20a   :  { %3508 = vmatpush1.msra.mxu0 %v5512_v47  ;;  %3597 = vmatpush1.msra.mxu1 %v5514_v32  ;;  %v5469_v47 = vld [vmem:[%s9334_s3 + $0x868] sm:$0xff]  ;;  %v5471_v32 = vld [vmem:[%s9334_s3 + $0x878] sm:$0xff] }
 0x20b   :  { %3062 = vmatmul.mubr.f32.gmra.mxu0 %v2954_v13  ;;  %3151 = vmatmul.mubr.f32.gmra.mxu1 %v2954_v13  ;;  %v5465_v13 = vld [vmem:[%s9334_s3 + $0x848] sm:$0xff] }
 0x20c   :  { %3509 = vmatprep.subr.mxu0 %v5509_v23  ;;  %3598 = vmatprep.subr.mxu1 %v5511_v62  ;;  %v5466_v23 = vld [vmem:[%s9334_s3 + $0x850] sm:$0xff]  ;;  %v5461_v62 = vld [vmem:[%s9334_s3 + $0x828] sm:$0xff] }
 0x20d   :  { %3067 = vmatprep.mubr.f32.mxu0 %v2973_v29  ;;  %3156 = vmatprep.mubr.f32.mxu1 %v2973_v29  ;;  %v5457_v29 = vld [vmem:[%s9334_s3 + $0x808] sm:$0xff] }
 0x20e   :  { %3510 = vmatpush1.msra.mxu0 %v5508_v52  ;;  %3599 = vmatpush1.msra.mxu1 %v5510_v41  ;;  %v5459_v52 = vld [vmem:[%s9334_s3 + $0x818] sm:$0xff]  ;;  %v5456_v41 = vld [vmem:[%s9334_s3 + $0x800] sm:$0xff] }
 0x20f   :  { %3511 = vmatprep.subr.mxu0 %v5505_v22  ;;  %3600 = vmatprep.subr.mxu1 %v5507_v15  ;;  %v5458_v22 = vld [vmem:[%s9334_s3 + $0x810] sm:$0xff]  ;;  %v5581_v15 = vld [vmem:[%s9334_s3 + $0xbe8] sm:$0xff] }
 0x210   :  { %3512 = vmatpush1.msra.mxu0 %v5504_v45  ;;  %3601 = vmatpush1.msra.mxu1 %v5506_v26  ;;  %v5583_v45 = vld [vmem:[%s9334_s3 + $0xbf8] sm:$0xff]  ;;  %v5580_v26 = vld [vmem:[%s9334_s3 + $0xbe0] sm:$0xff] }
 0x211   :  { %3068 = vmatmul.mubr.f32.gmra.mxu0 %v2972_v19  ;;  %3157 = vmatmul.mubr.f32.gmra.mxu1 %v2972_v19  ;;  %v5576_v19 = vld [vmem:[%s9334_s3 + $0xbc0] sm:$0xff] }
 0x212   :  { %3513 = vmatprep.subr.mxu0 %v5501_v51  ;;  %3602 = vmatprep.subr.mxu1 %v5503_v10  ;;  %v5578_v51 = vld [vmem:[%s9334_s3 + $0xbd0] sm:$0xff]  ;;  %v5573_v10 = vld [vmem:[%s9334_s3 + $0xba8] sm:$0xff] }
 0x213   :  { %3073 = vmatprep.mubr.f32.mxu0 %v2982_v25  ;;  %3162 = vmatprep.mubr.f32.mxu1 %v2982_v25  ;;  %v5572_v25 = vld [vmem:[%s9334_s3 + $0xba0] sm:$0xff] }
 0x214   :  { %3514 = vmatpush1.msra.mxu0 %v5500_v33  ;;  %3603 = vmatpush1.msra.mxu1 %v5502_v8  ;;  %v5574_v33 = vld [vmem:[%s9334_s3 + $0xbb0] sm:$0xff]  ;;  %v5569_v8 = vld [vmem:[%s9334_s3 + $0xb88] sm:$0xff] }
 0x215   :  { %3515 = vmatprep.subr.mxu0 %v5497_v60  ;;  %3604 = vmatprep.subr.mxu1 %v5499_v21  ;;  %v5568_v60 = vld [vmem:[%s9334_s3 + $0xb80] sm:$0xff]  ;;  %v5570_v21 = vld [vmem:[%s9334_s3 + $0xb90] sm:$0xff] }
 0x216   :  { %3516 = vmatpush1.msra.mxu0 %v5496_v7  ;;  %3605 = vmatpush1.msra.mxu1 %v5498_v20  ;;  %v5565_v7 = vld [vmem:[%s9334_s3 + $0xb68] sm:$0xff]  ;;  %v5567_v20 = vld [vmem:[%s9334_s3 + $0xb78] sm:$0xff] }
 0x217   :  { %3074 = vmatmul.mubr.f32.gmra.mxu0 %v2981_v0  ;;  %3163 = vmatmul.mubr.f32.gmra.mxu1 %v2981_v0  ;;  %v5582_v0 = vld [vmem:[%s9334_s3 + $0xbf0] sm:$0xff] }
 0x218   :  { %3517 = vmatprep.subr.mxu0 %v5493_v18  ;;  %3606 = vmatprep.subr.mxu1 %v5495_v57  ;;  %v5564_v18 = vld [vmem:[%s9334_s3 + $0xb60] sm:$0xff]  ;;  %v5566_v57 = vld [vmem:[%s9334_s3 + $0xb70] sm:$0xff] }
 0x219   :  { %3518 = vmatpush1.msra.mxu0 %v5492_v55  ;;  %3569 = vmatprep.mubr.f32.mxu0 %v3451_v58  ;;  %v5561_v55 = vld [vmem:[%s9334_s3 + $0xb48] sm:$0xff] }
 0x21a   :  { %3607 = vmatpush1.msra.mxu1 %v5494_v38  ;;  %3658 = vmatprep.mubr.f32.mxu1 %v3451_v58  ;;  %v5563_v58 = vld [vmem:[%s9334_s3 + $0xb58] sm:$0xff]  ;;  %v5560_v38 = vld [vmem:[%s9334_s3 + $0xb40] sm:$0xff] }
 0x21b   :  { %3519 = vmatprep.subr.mxu0 %v5489_v17  ;;  %3608 = vmatprep.subr.mxu1 %v5491_v40  ;;  %v5562_v17 = vld [vmem:[%s9334_s3 + $0xb50] sm:$0xff]  ;;  %v5557_v40 = vld [vmem:[%s9334_s3 + $0xb28] sm:$0xff] }
 0x21c   :  { %3520 = vmatpush1.msra.mxu0 %v5488_v5  ;;  %3609 = vmatpush1.msra.mxu1 %v5490_v3  ;;  %v5559_v5 = vld [vmem:[%s9334_s3 + $0xb38] sm:$0xff]  ;;  %v5556_v3 = vld [vmem:[%s9334_s3 + $0xb20] sm:$0xff] }
 0x21d   :  { %3521 = vmatprep.subr.mxu0 %v5485_v11  ;;  %3610 = vmatprep.subr.mxu1 %v5487_v36  ;;  %v5558_v11 = vld [vmem:[%s9334_s3 + $0xb30] sm:$0xff]  ;;  %v5553_v36 = vld [vmem:[%s9334_s3 + $0xb08] sm:$0xff] }
 0x21e   :  { %3522 = vmatpush1.msra.mxu0 %v5484_v59  ;;  %3611 = vmatpush1.msra.mxu1 %v5486_v9  ;;  %v5555_v59 = vld [vmem:[%s9334_s3 + $0xb18] sm:$0xff]  ;;  %v5552_v9 = vld [vmem:[%s9334_s3 + $0xb00] sm:$0xff] }
 0x21f   :  { %3523 = vmatprep.subr.mxu0 %v5481_v49  ;;  %3612 = vmatprep.subr.mxu1 %v5483_v56  ;;  %v5554_v49 = vld [vmem:[%s9334_s3 + $0xb10] sm:$0xff]  ;;  %v5549_v56 = vld [vmem:[%s9334_s3 + $0xae8] sm:$0xff] }
 0x220   :  { %3524 = vmatpush1.msra.mxu0 %v5480_v31  ;;  %3613 = vmatpush1.msra.mxu1 %v5482_v48  ;;  %v5551_v31 = vld [vmem:[%s9334_s3 + $0xaf8] sm:$0xff]  ;;  %v5548_v48 = vld [vmem:[%s9334_s3 + $0xae0] sm:$0xff] }
 0x221   :  { %3525 = vmatprep.subr.mxu0 %v5477_v34  ;;  %3614 = vmatprep.subr.mxu1 %v5479_v39  ;;  %v5550_v34 = vld [vmem:[%s9334_s3 + $0xaf0] sm:$0xff]  ;;  %v6083_v39 = vld [vmem:[#allocation3 + $0x8] ss:$24 sps:$4 sm:$0xcc]  }
 0x222   :  { %3526 = vmatpush1.msra.mxu0 %v5476_v42  ;;  %3615 = vmatpush1.msra.mxu1 %v5478_v12  ;;  %v5545_v42 = vld [vmem:[%s9334_s3 + $0xac8] sm:$0xff]  ;;  %v5547_v12 = vld [vmem:[%s9334_s3 + $0xad8] sm:$0xff] }
 0x223   :  { %3527 = vmatprep.subr.mxu0 %v5473_v28  ;;  %3616 = vmatprep.subr.mxu1 %v5475_v6  ;;  %v6086_v28 = vld [vmem:[#allocation3 + $0x28] ss:$16 sps:$4 sm:$0xff]   ;;  %v5544_v6 = vld [vmem:[%s9334_s3 + $0xac0] sm:$0xff] }
 0x224   :  { %3528 = vmatpush1.msra.mxu0 %v5472_v30  ;;  %3617 = vmatpush1.msra.mxu1 %v5474_v43  ;;  %v5546_v30 = vld [vmem:[%s9334_s3 + $0xad0] sm:$0xff] }
 0x225   :  { %3529 = vmatprep.subr.mxu0 %v5469_v47  ;;  %3618 = vmatprep.subr.mxu1 %v5471_v32  ;;  %v6082_v43 = vld [vmem:[#allocation3 + $0x1c] ss:$-8 sps:$4 sm:$0xff]   ;;  %v5541_v47 = vld [vmem:[%s9334_s3 + $0xaa8] sm:$0xff] }
 0x226   :  { %3530 = vmatpush1.msra.mxu0 %v5468_v54  ;;  %3619 = vmatpush1.msra.mxu1 %v5470_v35  ;;  %v5543_v32 = vld [vmem:[%s9334_s3 + $0xab8] sm:$0xff]  ;;  %v6085_v54 = vld [vmem:[#allocation3 + $0xc] ss:$24 sps:$4 sm:$0xff]  }
 0x227   :  { %3531 = vmatprep.subr.mxu0 %v5465_v13  ;;  %3620 = vmatprep.subr.mxu1 %v5467_v24  ;;  %v5540_v35 = vld [vmem:[%s9334_s3 + $0xaa0] sm:$0xff]  ;;  %v5542_v13 = vld [vmem:[%s9334_s3 + $0xab0] sm:$0xff]  ;;  %v5537_v24 = vld [vmem:[%s9334_s3 + $0xa88] sm:$0xff] }
 0x228   :  { %3532 = vmatpush1.msra.mxu0 %v5464_v61  ;;  %3621 = vmatpush1.msra.mxu1 %v5466_v23  ;;  %v5539_v61 = vld [vmem:[%s9334_s3 + $0xa98] sm:$0xff]  ;;  %v3277_v23 = vrot.slane %v6083_v39, %v6929_v53 }
 0x229   :  { %3533 = vmatprep.subr.mxu0 %v5461_v62  ;;  %3622 = vmatprep.subr.mxu1 %v5463_v1  ;;  %v6088_v62 = vld [vmem:[#allocation3 + $0x2c] ss:$16 sps:$4 sm:$0xff]   ;;  %v3295_v1 = vrot.slane %v6086_v28, %v6929_v53 }
 0x22a   :  { %3534 = vmatpush1.msra.mxu0 %v5460_v14  ;;  %3623 = vmatpush1.msra.mxu1 %v5462_v44  ;;  %v5536_v14 = vld [vmem:[%s9334_s3 + $0xa80] sm:$0xff]  ;;  %v5538_v44 = vld [vmem:[%s9334_s3 + $0xa90] sm:$0xff] }
 0x22b   :  { %3535 = vmatprep.subr.mxu0 %v5457_v29  ;;  %3624 = vmatprep.subr.mxu1 %v5459_v52  ;;  %v5533_v29 = vld [vmem:[%s9334_s3 + $0xa68] sm:$0xff]  ;;  %v5535_v52 = vld [vmem:[%s9334_s3 + $0xa78] sm:$0xff] }
 0x22c   :  { %3536 = vmatpush1.msra.mxu0 %v5456_v41  ;;  %3625 = vmatpush1.msra.mxu1 %v5458_v22  ;;  %v3266_v41 = vrot.slane %v6082_v43, %v6929_v53  ;;  %v3267_v22 = vcombine.high %v8004_v63, %v8004_v63  ;;  %v5531_v63 = vld [vmem:[%s9334_s3 + $0xa58] sm:$0xff] }
 0x22d   :  { %3537 = vmatprep.subr.mxu0 %v5581_v15  ;;  %3626 = vmatprep.subr.mxu1 %v5583_v45  ;;  %v3284_v15 = vrot.slane %v6085_v54, %v6929_v53  ;;  %v5532_v45 = vld [vmem:[%s9334_s3 + $0xa60] sm:$0xff] }
 0x22e   :  { %3538 = vmatpush2.msra.mxu0 %v5580_v26  ;;  %3627 = vmatpush2.msra.mxu1 %v5582_v0  ;;  %v5534_v26 = vld [vmem:[%s9334_s3 + $0xa70] sm:$0xff]  ;;  %v5529_v0 = vld [vmem:[%s9334_s3 + $0xa48] sm:$0xff] }
 0x22f   :  { %3539 = vmatprep.subr.mxu0 %v5577_v27  ;;  %3628 = vmatprep.subr.mxu1 %v5579_v16  ;;  %v5584_v27 = vcombine.high %v3266_v41, %v3277_v23  ;;  %v3303_v16 = vcombine.high %v3295_v1, %v3295_v1 }
 0x230   :  { %3540 = vmatpush2.msra.mxu0 %v5576_v19  ;;  %3629 = vmatpush2.msra.mxu1 %v5578_v51  ;;  %v3302_v19 = vrot.slane %v6088_v62, %v6929_v53  ;;  %v5528_v51 = vld [vmem:[%s9334_s3 + $0xa40] sm:$0xff] }
 0x231   :  { %3541 = vmatprep.subr.mxu0 %v5573_v10  ;;  %3630 = vmatprep.subr.mxu1 %v5575_v37  ;;  %v5530_v10 = vld [vmem:[%s9334_s3 + $0xa50] sm:$0xff]  ;;  %v5525_v37 = vld [vmem:[%s9334_s3 + $0xa28] sm:$0xff] }
 0x232   :  { %3542 = vmatpush2.msra.mxu0 %v5572_v25  ;;  %3631 = vmatpush2.msra.mxu1 %v5574_v33  ;;  %v5527_v25 = vld [vmem:[%s9334_s3 + $0xa38] sm:$0xff]  ;;  %v3452_v33 = vcombine.low %v3267_v22, %v3266_v41 }
 0x233   :  { %3543 = vmatprep.subr.mxu0 %v5569_v8  ;;  %3632 = vmatprep.subr.mxu1 %v5571_v50  ;;  %v3286_v8 = vcombine.high %v3284_v15, %v3284_v15  ;;  %v5524_v50 = vld [vmem:[%s9334_s3 + $0xa20] sm:$0xff] }
 0x234   :  { %3544 = vmatpush2.msra.mxu0 %v5568_v60  ;;  %3633 = vmatpush2.msra.mxu1 %v5570_v21  ;;  %v5526_v60 = vld [vmem:[%s9334_s3 + $0xa30] sm:$0xff]  ;;  %v5521_v21 = vld [vmem:[%s9334_s3 + $0xa08] sm:$0xff] }
 0x235   :  { %3545 = vmatprep.subr.mxu0 %v5565_v7  ;;  %3634 = vmatprep.subr.mxu1 %v5567_v20  ;;  %v5523_v7 = vld [vmem:[%s9334_s3 + $0xa18] sm:$0xff]  ;;  %v3467_v20 = vrot.slane %v5584_v27, %v6929_v53 }
 0x236   :  { %3546 = vmatpush2.msra.mxu0 %v5564_v18  ;;  %3635 = vmatpush2.msra.mxu1 %v5566_v57  ;;  %v3471_v18 = vcombine.low %v3295_v1, %v3303_v16  ;;  %v3304_v57 = vcombine.high %v3302_v19, %v3302_v19 }
 0x237   :  { %3547 = vmatprep.subr.mxu0 %v5561_v55  ;;  %3636 = vmatprep.subr.mxu1 %v5563_v58  ;;  %v5520_v55 = vld [vmem:[%s9334_s3 + $0xa00] sm:$0xff]  ;;  %v5522_v58 = vld [vmem:[%s9334_s3 + $0xa10] sm:$0xff] }
 0x238   :  { %3548 = vmatpush2.msra.mxu0 %v5560_v38  ;;  %3637 = vmatpush2.msra.mxu1 %v5562_v17  ;;  %v3460_v38 = vrot.slane %v3452_v33, %v6929_v53  ;;  %v3470_v17 = vcombine.low %v3284_v15, %v3286_v8 }
 0x239   :  { %3549 = vmatprep.subr.mxu0 %v5557_v40  ;;  %3638 = vmatprep.subr.mxu1 %v5559_v5  ;;  %v3450_v40 = vcombine.low %v8054_v4, %v8045_v2 }
 0x23a   :  { %3550 = vmatpush2.msra.mxu0 %v5556_v3  ;;  %3639 = vmatpush2.msra.mxu1 %v5558_v11  ;;  %v3469_v5 = vcombine.high %v3460_v38, %v3467_v20  ;;  %v3485_v3 = vrot.slane %v3471_v18, %v6929_v53  ;;  %v3488_v11 = vcombine.low %v3302_v19, %v3304_v57 }
 0x23b   :  { %3551 = vmatprep.subr.mxu0 %v5553_v36  ;;  %3640 = vmatprep.subr.mxu1 %v5555_v59  ;;  %v3478_v36 = vrot.slane %v3470_v17, %v6929_v53  ;;  %v3468_v59 = vcombine.low %v3460_v38, %v3467_v20  ;;  %v5616_v38 = vld [vmem:[%s9336_s5 + $0x1f8] sm:$0xff] }
 0x23c   :  { %3552 = vmatpush2.msra.mxu0 %v5552_v9  ;;  %3641 = vmatpush2.msra.mxu1 %v5554_v49  ;;  %v3495_v49 = vrot.slane %v3488_v11, %v6929_v53  ;;  %v4310_v17 = vld [vmem:[%s9336_s5 + $0xf8] sm:$0xff]  ;;  %v4309_v11 = vld [vmem:[%s9336_s5 + $0xf0] sm:$0xff] }
 0x23d   :  { %3553 = vmatprep.subr.mxu0 %v5549_v56  ;;  %3642 = vmatprep.subr.mxu1 %v5551_v31  ;;  %v3487_v9 = vcombine.high %v3478_v36, %v3485_v3  ;;  %v3486_v2 = vcombine.low %v3478_v36, %v3485_v3  ;;  %v5615_v3 = vld [vmem:[%s9336_s5 + $0x1f0] sm:$0xff] }
 0x23e   :  { %3554 = vmatpush2.msra.mxu0 %v5548_v48  ;;  %3643 = vmatpush2.msra.mxu1 %v5550_v34  ;;  %v3496_v4 = vcombine.high %v3495_v49, %v3495_v49  ;;  %v5599_v36 = vld [vmem:[%s9336_s5 + $0x170] sm:$0xff] }
 0x23f   :  { %3555 = vmatprep.subr.mxu0 %v5545_v42  ;;  %3644 = vmatprep.subr.mxu1 %v5547_v12 }
 0x240   :  { %3556 = vmatpush2.msra.mxu0 %v5544_v6  ;;  %3645 = vmatpush2.msra.mxu1 %v5546_v30 }
 0x241   :  { %3557 = vmatprep.subr.mxu0 %v5541_v47  ;;  %3646 = vmatprep.subr.mxu1 %v5543_v32 }
 0x242   :  { %3558 = vmatpush2.msra.mxu0 %v5540_v35  ;;  %3647 = vmatpush2.msra.mxu1 %v5542_v13 }
 0x243   :  { %3559 = vmatprep.subr.mxu0 %v5537_v24  ;;  %3648 = vmatprep.subr.mxu1 %v5539_v61 }
 0x244   :  { %3560 = vmatpush2.msra.mxu0 %v5536_v14  ;;  %3649 = vmatpush2.msra.mxu1 %v5538_v44 }
 0x245   :  { %3561 = vmatprep.subr.mxu0 %v5533_v29  ;;  %3650 = vmatprep.subr.mxu1 %v5535_v52 }
 0x246   :  { %3562 = vmatpush2.msra.mxu0 %v5532_v45  ;;  %3651 = vmatpush2.msra.mxu1 %v5534_v26 }
 0x247   :  { %3563 = vmatprep.subr.mxu0 %v5529_v0  ;;  %3652 = vmatprep.subr.mxu1 %v5531_v63 }
 0x248   :  { %3564 = vmatpush2.msra.mxu0 %v5528_v51  ;;  %3653 = vmatpush2.msra.mxu1 %v5530_v10 }
 0x249   :  { %3565 = vmatprep.subr.mxu0 %v5525_v37  ;;  %3654 = vmatprep.subr.mxu1 %v5527_v25 }
 0x24a   :  { %3566 = vmatpush2.msra.mxu0 %v5524_v50  ;;  %3655 = vmatpush2.msra.mxu1 %v5526_v60 }
 0x24b   :  { %3567 = vmatprep.subr.mxu0 %v5521_v21  ;;  %3656 = vmatprep.subr.mxu1 %v5523_v7 }
 0x24c   :  { %3568 = vmatpush2.msra.mxu0 %v5520_v55  ;;  %3657 = vmatpush2.msra.mxu1 %v5522_v58 }
 0x24d   :  { %3570 = vmatmul.mubr.f32.vlgmr.msra.gmra.mxu0 %v3450_v40  ;;  %3659 = vmatmul.mubr.f32.vlgmr.msra.gmra.mxu1 %v3450_v40  ;;  %v5600_v40 = vld [vmem:[%s9336_s5 + $0x178] sm:$0xff] }
 0x24e   :  { %3575 = vmatprep.mubr.f32.mxu0 %v3469_v5  ;;  %3664 = vmatprep.mubr.f32.mxu1 %v3469_v5  ;;  %v4294_v5 = vld [vmem:[%s9336_s5 + $0x78] sm:$0xff] }
 0x24f   :  { %5778 = vmatprep.subr.mxu0 %v5616_v38  ;;  %5813 = vmatprep.subr.mxu1 %v4310_v17  ;;  %v5604_v38 = vld [vmem:[%s9336_s5 + $0x198] sm:$0xff] }
 0x250   :  { %5779 = vmatpush3.msra.mxu0 %v5600_v40  ;;  %5814 = vmatpush3.msra.mxu1 %v4294_v5  ;;  %v4298_v17 = vld [vmem:[%s9336_s5 + $0x98] sm:$0xff] }
 0x251   :  { %3576 = vmatmul.mubr.f32.gmra.mxu0 %v3468_v59  ;;  %3665 = vmatmul.mubr.f32.gmra.mxu1 %v3468_v59  ;;  %v4293_v59 = vld [vmem:[%s9336_s5 + $0x70] sm:$0xff]  ;;  %v5588_v40 = vld [vmem:[%s9336_s5 + $0x118] sm:$0xff] }
 0x252   :  { %3581 = vmatprep.mubr.f32.mxu0 %v3487_v9  ;;  %3670 = vmatprep.mubr.f32.mxu1 %v3487_v9  ;;  %v5614_v9 = vld [vmem:[%s9336_s5 + $0x1e8] sm:$0xff]  ;;  %v4282_v5 = vld [vmem:[%s9336_s5 + $0x18] sm:$0xff] }
 0x253   :  { %5780 = vmatprep.subr.mxu0 %v5615_v3  ;;  %5815 = vmatprep.subr.mxu1 %v4309_v11  ;;  %v5603_v3 = vld [vmem:[%s9336_s5 + $0x190] sm:$0xff] }
 0x254   :  { %5781 = vmatpush3.msra.mxu0 %v5599_v36  ;;  %5816 = vmatpush3.msra.mxu1 %v4293_v59  ;;  %v4297_v11 = vld [vmem:[%s9336_s5 + $0x90] sm:$0xff] }
 0x255   :  { %3582 = vmatmul.mubr.f32.gmra.mxu0 %v3486_v2  ;;  %3671 = vmatmul.mubr.f32.gmra.mxu1 %v3486_v2  ;;  %v5598_v2 = vld [vmem:[%s9336_s5 + $0x168] sm:$0xff]  ;;  %v5587_v36 = vld [vmem:[%s9336_s5 + $0x110] sm:$0xff] }
 0x256   :  { %3587 = vmatprep.mubr.f32.mxu0 %v3496_v4  ;;  %3676 = vmatprep.mubr.f32.mxu1 %v3496_v4  ;;  %v4292_v4 = vld [vmem:[%s9336_s5 + $0x68] sm:$0xff]  ;;  %v4281_v59 = vld [vmem:[%s9336_s5 + $0x10] sm:$0xff] }
 0x257   :  { %5782 = vmatprep.subr.mxu0 %v5614_v9  ;;  %v5602_v9 = vld [vmem:[%s9336_s5 + $0x188] sm:$0xff] }
 0x258   :  { %5783 = vmatpush3.msra.mxu0 %v5598_v2  ;;  %v5586_v2 = vld [vmem:[%s9336_s5 + $0x108] sm:$0xff] }
 0x259   :  { %3588 = vmatmul.mubr.f32.gmra.mxu0 %v3495_v49  ;;  %3677 = vmatmul.mubr.f32.gmra.mxu1 %v3495_v49  ;;  %v4308_v49 = vld [vmem:[%s9336_s5 + $0xe8] sm:$0xff] }
 0x25a   :  { %5817 = vmatprep.subr.mxu1 %v4308_v49  ;;  %v4296_v49 = vld [vmem:[%s9336_s5 + $0x88] sm:$0xff] }
 0x25b   :  { %5818 = vmatpush3.msra.mxu1 %v4292_v4  ;;  %v4280_v4 = vld [vmem:[%s9336_s5 + $0x8] sm:$0xff] }
 0x27e   :  { %v8378_v56 = vpop.f32.mrf.mxu0  ;;  %v8380_v31 = vpop.f32.mrf.mxu1 }
 0x280   :  { %v2529_v48 = vpop.f32.mrf.mxu0  ;;  %v2618_v34 = vpop.f32.mrf.mxu1 }
 0x28c   :  { %v2533_v39 = vpop.f32.mrf.mxu0  ;;  %v2622_v42 = vpop.f32.mrf.mxu1 }
 0x28e   :  { %v2535_v12 = vpop.f32.mrf.mxu0  ;;  %v2624_v28 = vpop.f32.mrf.mxu1 }
 0x295   :  { %v2539_v6 = vpop.f32.mrf.mxu0  ;;  %v2628_v30 = vpop.f32.mrf.mxu1 }
 0x297   :  { %v2541_v43 = vpop.f32.mrf.mxu0  ;;  %v2630_v47 = vpop.f32.mrf.mxu1 }
 0x29b   :  { %v2545_v32 = vpop.f32.mrf.mxu0  ;;  %v2634_v54 = vpop.f32.mrf.mxu1 }
 0x29c   :  { %2651 = vst [vmem:[#allocation5 + $0x58] sm:$0xf] %v2545_v32  ;;  %2653 = vst [vmem:[#allocation5 + $0x78] sm:$0xf] %v2634_v54  ;;  %v5595_v32 = vld [vmem:[%s9336_s5 + $0x150] sm:$0xff] }
 0x29d   :  { %v2547_v35 = vpop.f32.mrf.mxu0  ;;  %v2636_v13 = vpop.f32.mrf.mxu1  ;;  %v4289_v54 = vld [vmem:[%s9336_s5 + $0x50] sm:$0xff] }
 0x29e   :  { %2652 = vst [vmem:[#allocation5 + $0x48] sm:$0xf] %v2547_v35  ;;  %2654 = vst [vmem:[#allocation5 + $0x30] sm:$0xf] %v2636_v13  ;;  %v5610_v35 = vld [vmem:[%s9336_s5 + $0x1c8] sm:$0xff] }
 0x29f   :  { %v4304_v13 = vld [vmem:[%s9336_s5 + $0xc8] sm:$0xff] }
 0x2a3   :  { %v3181_v33 = vld [vmem:[#allocation5 + $0x58] sm:$0xf] }
 0x2a4   :  { %v3183_v50 = vld [vmem:[#allocation5 + $0x78] sm:$0xf] }
 0x2a5   :  { %v3182_v20 = vld [vmem:[#allocation5 + $0x48] sm:$0xf]  ;;  %v3184_v57 = vld [vmem:[#allocation5 + $0x30] sm:$0xf] }
 0x2c5   :  { %v8382_v24 = vpop.f32.mrf.mxu0  ;;  %v8384_v61 = vpop.f32.mrf.mxu1 }
 0x2c7   :  { %v3059_v23 = vpop.f32.mrf.mxu0  ;;  %v3148_v62 = vpop.f32.mrf.mxu1 }
 0x2c8   :  { %v8386_v1 = vadd.f32 %v3059_v23, %v2529_v48  ;;  %v8388_v14 = vadd.f32 %v3148_v62, %v2618_v34  ;;  %v5613_v48 = vld [vmem:[%s9336_s5 + $0x1e0] sm:$0xff]  ;;  %v5594_v23 = vld [vmem:[%s9336_s5 + $0x148] sm:$0xff] }
 0x2c9   :  { %v4307_v34 = vld [vmem:[%s9336_s5 + $0xe0] sm:$0xff]  ;;  %5784 = vmatprep.subr.mxu0 %v5613_v48  ;;  %v4288_v62 = vld [vmem:[%s9336_s5 + $0x48] sm:$0xff] }
 0x2ca   :  { %5819 = vmatprep.subr.mxu1 %v4307_v34  ;;  %v5601_v48 = vld [vmem:[%s9336_s5 + $0x180] sm:$0xff] }
 0x2cb   :  { %v3063_v44 = vpop.f32.mrf.mxu0  ;;  %v3152_v29 = vpop.f32.mrf.mxu1  ;;  %v4295_v34 = vld [vmem:[%s9336_s5 + $0x80] sm:$0xff] }
 0x2cc   :  { %v8390_v52 = vadd.f32 %v3063_v44, %v2533_v39  ;;  %v8392_v41 = vadd.f32 %v3152_v29, %v2622_v42  ;;  %v5597_v39 = vld [vmem:[%s9336_s5 + $0x160] sm:$0xff] }
 0x2cd   :  { %v3065_v22 = vpop.f32.mrf.mxu0  ;;  %v3154_v15 = vpop.f32.mrf.mxu1  ;;  %v4291_v42 = vld [vmem:[%s9336_s5 + $0x60] sm:$0xff]  ;;  %5785 = vmatpush3.msra.mxu0 %v5597_v39 }
 0x2ce   :  { %v8394_v45 = vadd.f32 %v3065_v22, %v2535_v12  ;;  %v8396_v26 = vadd.f32 %v3154_v15, %v2624_v28  ;;  %v5612_v12 = vld [vmem:[%s9336_s5 + $0x1d8] sm:$0xff]  ;;  %5820 = vmatpush3.msra.mxu1 %v4291_v42  ;;  %v5609_v44 = vld [vmem:[%s9336_s5 + $0x1c0] sm:$0xff] }
 0x2cf   :  { %v4306_v28 = vld [vmem:[%s9336_s5 + $0xd8] sm:$0xff]  ;;  %5786 = vmatprep.subr.mxu0 %v5612_v12  ;;  %v4303_v29 = vld [vmem:[%s9336_s5 + $0xc0] sm:$0xff] }
 0x2d0   :  { %5821 = vmatprep.subr.mxu1 %v4306_v28  ;;  %v5593_v22 = vld [vmem:[%s9336_s5 + $0x140] sm:$0xff]  ;;  %v5648_v12 = vld [vmem:[%s9336_s5 + $0x2f8] sm:$0xff] }
 0x2d1   :  { %v3069_v0 = vpop.f32.mrf.mxu0  ;;  %v3158_v63 = vpop.f32.mrf.mxu1  ;;  %v4287_v15 = vld [vmem:[%s9336_s5 + $0x40] sm:$0xff]  ;;  %v5680_v28 = vld [vmem:[%s9336_s5 + $0x3f8] sm:$0xff] }
 0x2d2   :  { %v8398_v27 = vadd.f32 %v3069_v0, %v2539_v6  ;;  %v8400_v16 = vadd.f32 %v3158_v63, %v2628_v30  ;;  %v5596_v6 = vld [vmem:[%s9336_s5 + $0x158] sm:$0xff]  ;;  %v5585_v39 = vld [vmem:[%s9336_s5 + $0x100] sm:$0xff] }
 0x2d3   :  { %v3071_v19 = vpop.f32.mrf.mxu0  ;;  %v3160_v51 = vpop.f32.mrf.mxu1  ;;  %v4290_v30 = vld [vmem:[%s9336_s5 + $0x58] sm:$0xff]  ;;  %5787 = vmatpush3.msra.mxu0 %v5596_v6  ;;  %v4279_v42 = vld [vmem:[%s9336_s5] sm:$0xff] }
 0x2d4   :  { %v8402_v10 = vadd.f32 %v3071_v19, %v2541_v43  ;;  %v8404_v37 = vadd.f32 %v3160_v51, %v2630_v47  ;;  %v5611_v43 = vld [vmem:[%s9336_s5 + $0x1d0] sm:$0xff]  ;;  %5822 = vmatpush3.msra.mxu1 %v4290_v30  ;;  %v5608_v0 = vld [vmem:[%s9336_s5 + $0x1b8] sm:$0xff]  ;;  %v3747_v6 = vld [vmem:[%s9335_s4] sm:$0xf]  ;;  %v9355_v30 = vsub.s32 0, %v6751_v46 }
 0x2d5   :  { %v4305_v47 = vld [vmem:[%s9336_s5 + $0xd0] sm:$0xff]  ;;  %5788 = vmatprep.subr.mxu0 %v5611_v43  ;;  %v4302_v63 = vld [vmem:[%s9336_s5 + $0xb8] sm:$0xff] }
 0x2d6   :  { %5823 = vmatprep.subr.mxu1 %v4305_v47  ;;  %5789 = vmatpush3.msra.mxu0 %v5595_v32  ;;  %v5592_v19 = vld [vmem:[%s9336_s5 + $0x138] sm:$0xff]  ;;  %v8609_v43 = vrot.slane %v3747_v6, %v9355_v30  ;;  %v9356_v47 = vsub.s32 2, %v6751_v46 }
 0x2d7   :  { %v3075_v25 = vpop.f32.mrf.mxu0  ;;  %v3164_v8 = vpop.f32.mrf.mxu1  ;;  %5824 = vmatpush3.msra.mxu1 %v4289_v54  ;;  %5790 = vmatprep.subr.mxu0 %v5610_v35  ;;  %v4286_v51 = vld [vmem:[%s9336_s5 + $0x38] sm:$0xff]  ;;  %v3185_v54 = vadd.f32 %v8382_v24, %v8378_v56  ;;  %v3187_v35 = vadd.f32 %v8384_v61, %v8380_v31 }
 0x2d8   :  { %v3197_v60 = vadd.f32 %v3181_v33, %v3075_v25  ;;  %v3199_v21 = vadd.f32 %v3183_v50, %v3164_v8  ;;  %5825 = vmatprep.subr.mxu1 %v4304_v13  ;;  %5791 = vmatpush3.msra.mxu0 %v5594_v23  ;;  %v5607_v25 = vld [vmem:[%s9336_s5 + $0x1b0] sm:$0xff]  ;;  %v8613_v32 = vrot.slane %v3747_v6, %v9356_v47 }
 0x2d9   :  { %v3077_v7 = vpop.f32.mrf.mxu0  ;;  %v3166_v18 = vpop.f32.mrf.mxu1  ;;  %5826 = vmatpush3.msra.mxu1 %v4288_v62  ;;  %5792 = vmatprep.subr.mxu0 %v5609_v44  ;;  %v4301_v33 = vld [vmem:[%s9336_s5 + $0xb0] sm:$0xff]  ;;  %v9357_v62 = vsub.s32 1, %v6751_v46 }
 0x2da   :  { %3213 = vst [vmem:[#allocation5 + $0x58] sm:$0xf] %v3197_v60  ;;  %3215 = vst [vmem:[#allocation5 + $0x78] sm:$0xf] %v3199_v21  ;;  %v3198_v55 = vadd.f32 %v3182_v20, %v3077_v7  ;;  %v3200_v58 = vadd.f32 %v3184_v57, %v3166_v18  ;;  %5827 = vmatprep.subr.mxu1 %v4303_v29  ;;  %5793 = vmatpush3.msra.mxu0 %v5593_v22  ;;  %v5591_v8 = vld [vmem:[%s9336_s5 + $0x130] sm:$0xff]  ;;  %v5606_v60 = vld [vmem:[%s9336_s5 + $0x1a8] sm:$0xff] }
 0x2db   :  { %5828 = vmatpush3.msra.mxu1 %v4287_v15  ;;  %5794 = vmatprep.subr.mxu0 %v5608_v0  ;;  %v4285_v50 = vld [vmem:[%s9336_s5 + $0x30] sm:$0xff]  ;;  %v4300_v21 = vld [vmem:[%s9336_s5 + $0xa8] sm:$0xff]  ;;  %v5605_v18 = vld [vmem:[%s9336_s5 + $0x1a0] sm:$0xff]  ;;  %v8621_v44 = vrot.slane %v3747_v6, %v9357_v62  ;;  %v9358_v29 = vsub.s32 3, %v6751_v46 }
 0x2dc   :  { %3214 = vst [vmem:[#allocation5 + $0x48] sm:$0xf] %v3198_v55  ;;  %3216 = vst [vmem:[#allocation5 + $0x30] sm:$0xf] %v3200_v58  ;;  %5829 = vmatprep.subr.mxu1 %v4302_v63  ;;  %5795 = vmatpush3.msra.mxu0 %v5592_v19  ;;  %v5590_v7 = vld [vmem:[%s9336_s5 + $0x128] sm:$0xff]  ;;  %v4299_v57 = vld [vmem:[%s9336_s5 + $0xa0] sm:$0xff] }
 0x2dd   :  { %5830 = vmatpush3.msra.mxu1 %v4286_v51  ;;  %5796 = vmatprep.subr.mxu0 %v5607_v25  ;;  %v4284_v20 = vld [vmem:[%s9336_s5 + $0x28] sm:$0xff]  ;;  %v5589_v55 = vld [vmem:[%s9336_s5 + $0x120] sm:$0xff]  ;;  %v8625_v22 = vrot.slane %v3747_v6, %v9358_v29 }
 0x2de   :  { %5831 = vmatprep.subr.mxu1 %v4301_v33  ;;  %5797 = vmatpush3.msra.mxu0 %v5591_v8  ;;  %v4283_v58 = vld [vmem:[%s9336_s5 + $0x20] sm:$0xff] }
 0x2df   :  { %5832 = vmatpush3.msra.mxu1 %v4285_v50  ;;  %5798 = vmatprep.subr.mxu0 %v5606_v60 }
 0x2e0   :  { %5833 = vmatprep.subr.mxu1 %v4300_v21  ;;  %5799 = vmatpush3.msra.mxu0 %v5590_v7 }
 0x2e1   :  { %5834 = vmatpush3.msra.mxu1 %v4284_v20  ;;  %5800 = vmatprep.subr.mxu0 %v5605_v18  ;;  %v3695_v47 = vld [vmem:[#allocation5 + $0x58] sm:$0xf] }
 0x2e2   :  { %5835 = vmatprep.subr.mxu1 %v4299_v57  ;;  %5801 = vmatpush3.msra.mxu0 %v5589_v55 }
 0x2e3   :  { %5836 = vmatpush3.msra.mxu1 %v4283_v58  ;;  %5802 = vmatprep.subr.mxu0 %v5604_v38 }
 0x2e4   :  { %5837 = vmatprep.subr.mxu1 %v4298_v17  ;;  %5803 = vmatpush3.msra.mxu0 %v5588_v40 }
 0x2e5   :  { %5838 = vmatpush3.msra.mxu1 %v4282_v5  ;;  %5804 = vmatprep.subr.mxu0 %v5603_v3 }
 0x2e6   :  { %5839 = vmatprep.subr.mxu1 %v4297_v11  ;;  %5805 = vmatpush3.msra.mxu0 %v5587_v36 }
 0x2e7   :  { %5840 = vmatpush3.msra.mxu1 %v4281_v59  ;;  %5806 = vmatprep.subr.mxu0 %v5602_v9 }
 0x2e8   :  { %5841 = vmatprep.subr.mxu1 %v4296_v49  ;;  %5807 = vmatpush3.msra.mxu0 %v5586_v2 }
 0x2e9   :  { %5842 = vmatpush3.msra.mxu1 %v4280_v4  ;;  %5808 = vmatprep.subr.mxu0 %v5601_v48 }
 0x2ea   :  { %5843 = vmatprep.subr.mxu1 %v4295_v34  ;;  %5809 = vmatpush3.msra.mxu0 %v5585_v39 }
 0x2eb   :  { %5844 = vmatpush3.msra.mxu1 %v4279_v42  ;;  %5848 = vmatprep.subr.mxu0 %v5648_v12 }
 0x2ec   :  { %5883 = vmatprep.subr.mxu1 %v5680_v28 }
 0x30d   :  { %v3571_v13 = vpop.f32.mrf.mxu0  ;;  %v3660_v23 = vpop.f32.mrf.mxu1 }
 0x30e   :  { %v3699_v15 = vadd.f32 %v3571_v13, %v3185_v54  ;;  %v3701_v0 = vadd.f32 %v3660_v23, %v3187_v35 }
 0x30f   :  { %v3573_v63 = vpop.f32.mrf.mxu0  ;;  %v3662_v19 = vpop.f32.mrf.mxu1 }
 0x310   :  { %v3769_v51 = vadd.f32 %v8609_v43, %v3699_v15  ;;  %v3771_v56 = vadd.f32 %v8613_v32, %v3701_v0  ;;  %v3700_v31 = vadd.f32 %v3573_v63, %v8386_v1  ;;  %v3702_v24 = vadd.f32 %v3662_v19, %v8388_v14 }
 0x311   :  { %v3577_v61 = vpop.f32.mrf.mxu0  ;;  %v3666_v25 = vpop.f32.mrf.mxu1 }
 0x312   :  { %v3785_v33 = vmax.f32 %v3769_v51, 0.0  ;;  %v3787_v8 = vmax.f32 %v3771_v56, 0.0  ;;  %v3770_v50 = vadd.f32 %v8621_v44, %v3700_v31  ;;  %v3772_v60 = vadd.f32 %v8625_v22, %v3702_v24 }
 0x313   :  { %v3703_v21 = vadd.f32 %v3577_v61, %v8390_v52  ;;  %v3705_v7 = vadd.f32 %v3666_v25, %v8392_v41  ;;  %v3579_v20 = vpop.f32.mrf.mxu0  ;;  %v3668_v18 = vpop.f32.mrf.mxu1 }
 0x314   :  { %v3801_v57 = vmax.f32 %v3785_v33, %v3787_v8  ;;  %v3786_v55 = vmax.f32 %v3770_v50, 0.0  ;;  %v3788_v58 = vmax.f32 %v3772_v60, 0.0  ;;  %v3704_v1 = vadd.f32 %v3579_v20, %v8394_v45 }
 0x315   :  { %v3773_v14 = vadd.f32 %v8609_v43, %v3703_v21  ;;  %v3775_v38 = vadd.f32 %v8613_v32, %v3705_v7  ;;  %v3706_v17 = vadd.f32 %v3668_v18, %v8396_v26  ;;  %v3583_v40 = vpop.f32.mrf.mxu0  ;;  %v3672_v5 = vpop.f32.mrf.mxu1 }
 0x316   :  { %v3802_v3 = vmax.f32 %v3786_v55, %v3788_v58  ;;  %v3774_v52 = vadd.f32 %v8621_v44, %v3704_v1  ;;  %v3707_v41 = vadd.f32 %v3583_v40, %v8398_v27  ;;  %v3709_v11 = vadd.f32 %v3672_v5, %v8400_v16 }
 0x317   :  { %v3789_v36 = vmax.f32 %v3773_v14, 0.0  ;;  %v3791_v59 = vmax.f32 %v3775_v38, 0.0  ;;  %v3776_v9 = vadd.f32 %v8625_v22, %v3706_v17  ;;  %v3585_v45 = vpop.f32.mrf.mxu0  ;;  %v3674_v49 = vpop.f32.mrf.mxu1 }
 0x318   :  { %v3817_v2 = vcombine.low %v3801_v57, %v3802_v3  ;;  %v3818_v4 = vcombine.high %v3801_v57, %v3802_v3  ;;  %v3790_v48 = vmax.f32 %v3774_v52, 0.0  ;;  %v3777_v26 = vadd.f32 %v8609_v43, %v3707_v41 }
 0x319   :  { %v3803_v34 = vmax.f32 %v3789_v36, %v3791_v59  ;;  %v3792_v39 = vmax.f32 %v3776_v9, 0.0  ;;  %v3779_v42 = vadd.f32 %v8613_v32, %v3709_v11  ;;  %v3708_v12 = vadd.f32 %v3585_v45, %v8402_v10  ;;  %v3589_v27 = vpop.f32.mrf.mxu0 }
 0x31a   :  { %v3825_v16 = vrot.slane %v3817_v2, %v6929_v53  ;;  %v3832_v28 = vrot.slane %v3818_v4, %v6929_v53  ;;  %v3793_v6 = vmax.f32 %v3777_v26, 0.0  ;;  %v8649_v30 = vadd.f32 %v3674_v49, %v8404_v37 }
 0x31b   :  { %v3804_v54 = vmax.f32 %v3790_v48, %v3792_v39  ;;  %v3795_v35 = vmax.f32 %v3779_v42, 0.0  ;;  %v8652_v13 = vadd.f32 %v8621_v44, %v3708_v12  ;;  %v3711_v23 = vadd.f32 %v3695_v47, %v3589_v27 }
 0x31c   :  { %v3833_v62 = vcombine.high %v3825_v16, %v3825_v16  ;;  %v3834_v29 = vcombine.high %v3832_v28, %v3832_v28  ;;  %v3886_v10 = vrot.slane %v3825_v16, %v6929_v53  ;;  %v3902_v15 = vrot.slane %v3832_v28, %v6929_v53 }
 0x31d   :  { %v3835_v0 = vcombine.low %v3803_v34, %v3804_v54  ;;  %v3836_v63 = vcombine.high %v3803_v34, %v3804_v54  ;;  %v8656_v19 = vmax.f32 %v3793_v6, %v3795_v35  ;;  %v3794_v37 = vmax.f32 %v8652_v13, 0.0  ;;  %3727 = vst [vmem:[#allocation5 + $0x58] sm:$0xf] %v3711_v23 }
 0x31e   :  { %v3887_v51 = vcombine.high %v3886_v10, %v3886_v10  ;;  %v3894_v56 = vrot.slane %v3833_v62, %v6929_v53  ;;  %v3903_v31 = vcombine.high %v3902_v15, %v3902_v15  ;;  %v3910_v24 = vrot.slane %v3834_v29, %v6929_v53 }
 0x31f   :  { %v4020_v61 = vsel %vm1648_vm4, %v3886_v10, -inf  ;;  %v4048_v25 = vsel %vm1648_vm4, %v3902_v15, -inf  ;;  %v3843_v33 = vrot.slane %v3835_v0, %v6929_v53  ;;  %v8665_v8 = vrot.slane %v3836_v63, %v6929_v53 }
 0x320   :  { %v3895_v50 = vcombine.high %v3894_v56, %v3894_v56  ;;  %v3911_v60 = vcombine.high %v3910_v24, %v3910_v24  ;;  %v4021_v21 = vrot.slane %v4020_v61, 4  ;;  %v4027_v7 = vsel %vm1648_vm4, %v3887_v51, -inf }
 0x321   :  { %v4028_v20 = vrot.slane %v4027_v7, 4  ;;  %v4034_v18 = vsel %vm1648_vm4, %v3894_v56, -inf  ;;  %v4049_v57 = vrot.slane %v4048_v25, 4  ;;  %v4055_v55 = vsel %vm1648_vm4, %v3903_v31, -inf }
 0x322   :  { %v4022_v58 = vmax.f32 %v4020_v61, %v4021_v21  ;;  %v4035_v1 = vrot.slane %v4034_v18, 4  ;;  %v4041_v14 = vsel %vm1648_vm4, %v3895_v50, -inf  ;;  %v4056_v38 = vrot.slane %v4055_v55, 4 }
 0x323   :  { %v4029_v17 = vmax.f32 %v4027_v7, %v4028_v20  ;;  %v4042_v40 = vrot.slane %v4041_v14, 4  ;;  %v4050_v5 = vmax.f32 %v4048_v25, %v4049_v57  ;;  %v4062_v3 = vsel %vm1648_vm4, %v3910_v24, -inf }
 0x324   :  { %v4023_v52 = vrot.slane %v4022_v58, 2  ;;  %v4036_v41 = vmax.f32 %v4034_v18, %v4035_v1  ;;  %v4057_v11 = vmax.f32 %v4055_v55, %v4056_v38  ;;  %v4063_v36 = vrot.slane %v4062_v3, 4 }
 0x325   :  { %v4030_v59 = vrot.slane %v4029_v17, 2  ;;  %v4043_v9 = vmax.f32 %v4041_v14, %v4042_v40  ;;  %v4051_v45 = vrot.slane %v4050_v5, 2  ;;  %v4069_v49 = vsel %vm1648_vm4, %v3911_v60, -inf }
 0x326   :  { %v4024_v2 = vmax.f32 %v4022_v58, %v4023_v52  ;;  %v4037_v4 = vrot.slane %v4036_v41, 2  ;;  %v4058_v48 = vrot.slane %v4057_v11, 2  ;;  %v4064_v26 = vmax.f32 %v4062_v3, %v4063_v36 }
 0x327   :  { %v4031_v34 = vmax.f32 %v4029_v17, %v4030_v59  ;;  %v4044_v39 = vrot.slane %v4043_v9, 2  ;;  %v4052_v42 = vmax.f32 %v4050_v5, %v4051_v45  ;;  %v4070_v12 = vrot.slane %v4069_v49, 4 }
 0x328   :  { %v4025_v27 = vrot.slane %v4024_v2, 1  ;;  %v4038_v16 = vmax.f32 %v4036_v41, %v4037_v4  ;;  %v4059_v28 = vmax.f32 %v4057_v11, %v4058_v48  ;;  %v4065_v6 = vrot.slane %v4064_v26, 2  ;;  %v3678_v4 = vpop.f32.mrf.mxu1 }
 0x329   :  { %v4032_v47 = vrot.slane %v4031_v34, 1  ;;  %v4045_v54 = vmax.f32 %v4043_v9, %v4044_v39  ;;  %v4053_v35 = vrot.slane %v4052_v42, 1  ;;  %v4071_v23 = vmax.f32 %v4069_v49, %v4070_v12 }
 0x32a   :  { %v8673_v62 = vmax.f32 %v4024_v2, %v4025_v27  ;;  %v4039_v29 = vrot.slane %v4038_v16, 1  ;;  %v4060_v10 = vrot.slane %v4059_v28, 1  ;;  %v4066_v15 = vmax.f32 %v4064_v26, %v4065_v6  ;;  %v3591_v6 = vpop.f32.mrf.mxu0 }
 0x32b   :  { %v8675_v0 = vmax.f32 %v4031_v34, %v4032_v47  ;;  %v4046_v63 = vrot.slane %v4045_v54, 1  ;;  %v8677_v51 = vmax.f32 %v4052_v42, %v4053_v35  ;;  %v4072_v56 = vrot.slane %v4071_v23, 2  ;;  %v3743_v42 = vld [vmem:[#allocation5 + $0x58] sm:$0xf] }
 0x32c   :  { %v8679_v31 = vmax.f32 %v4038_v16, %v4039_v29  ;;  %v8681_v24 = vmax.f32 %v4059_v28, %v4060_v10  ;;  %v4067_v61 = vrot.slane %v4066_v15, 1  ;;  %v3851_v25 = vcombine.high %v3843_v33, %v3843_v33 }
 0x32d   :  { %v8683_v50 = vmax.f32 %v4045_v54, %v4046_v63  ;;  %v4073_v60 = vmax.f32 %v4071_v23, %v4072_v56  ;;  %v3852_v21 = vcombine.high %v8665_v8, %v8665_v8  ;;  %v3918_v7 = vrot.slane %v3843_v33, %v6929_v53  ;;  %v3697_v56 = vld [vmem:[#allocation5 + $0x78] sm:$0xf] }
 0x32e   :  { %v8688_v20 = vmax.f32 %v4066_v15, %v4067_v61  ;;  %v3926_v18 = vrot.slane %v3851_v25, %v6929_v53  ;;  %v3934_v57 = vrot.slane %v8665_v8, %v6929_v53  ;;  %v3780_v55 = vadd.f32 %v8625_v22, %v8649_v30  ;;  %v3696_v61 = vld [vmem:[#allocation5 + $0x48] sm:$0xf]  ;;  %v3680_v25 = vpop.f32.mrf.mxu1 }
 0x32f   :  { %v4074_v58 = vrot.slane %v4073_v60, 1  ;;  %v3919_v1 = vcombine.high %v3918_v7, %v3918_v7  ;;  %v3942_v14 = vrot.slane %v3852_v21, %v6929_v53  ;;  %v4076_v38 = vsel %vm1648_vm4, %v3918_v7, -inf }
 0x330   :  { %v3927_v17 = vcombine.high %v3926_v18, %v3926_v18  ;;  %v3935_v40 = vcombine.high %v3934_v57, %v3934_v57  ;;  %v4077_v5 = vrot.slane %v4076_v38, 4  ;;  %v4090_v33 = vsel %vm1648_vm4, %v3926_v18, -inf }
 0x331   :  { %v3943_v3 = vcombine.high %v3942_v14, %v3942_v14  ;;  %v4083_v52 = vsel %vm1648_vm4, %v3919_v1, -inf  ;;  %v4091_v41 = vrot.slane %v4090_v33, 4  ;;  %v4104_v8 = vsel %vm1648_vm4, %v3934_v57, -inf }
 0x332   :  { %v4078_v11 = vmax.f32 %v4076_v38, %v4077_v5  ;;  %v4084_v36 = vrot.slane %v4083_v52, 4  ;;  %v4097_v30 = vsel %vm1648_vm4, %v3927_v17, -inf  ;;  %v4105_v59 = vrot.slane %v4104_v8, 4 }
 0x333   :  { %v4092_v9 = vmax.f32 %v4090_v33, %v4091_v41  ;;  %v4098_v45 = vrot.slane %v4097_v30, 4  ;;  %v4111_v49 = vsel %vm1648_vm4, %v3935_v40, -inf  ;;  %v4118_v2 = vsel %vm1648_vm4, %v3942_v14, -inf  ;;  %v3698_v40 = vld [vmem:[#allocation5 + $0x30] sm:$0xf] }
 0x334   :  { %v4079_v48 = vrot.slane %v4078_v11, 2  ;;  %v4085_v26 = vmax.f32 %v4083_v52, %v4084_v36  ;;  %v4106_v34 = vmax.f32 %v4104_v8, %v4105_v59  ;;  %v4112_v39 = vrot.slane %v4111_v49, 4 }
 0x335   :  { %v4093_v12 = vrot.slane %v4092_v9, 2  ;;  %v4099_v27 = vmax.f32 %v4097_v30, %v4098_v45  ;;  %v4119_v16 = vrot.slane %v4118_v2, 4  ;;  %v4125_v28 = vsel %vm1648_vm4, %v3943_v3, -inf }
 0x336   :  { %v4080_v47 = vmax.f32 %v4078_v11, %v4079_v48  ;;  %v4086_v54 = vrot.slane %v4085_v26, 2  ;;  %v4107_v35 = vrot.slane %v4106_v34, 2  ;;  %v8704_v23 = vmax.f32 %v4111_v49, %v4112_v39 }
 0x337   :  { %v4120_v29 = vmax.f32 %v4118_v2, %v4119_v16  ;;  %v4126_v10 = vrot.slane %v4125_v28, 4  ;;  %v3796_v15 = vmax.f32 %v3780_v55, 0.0  ;;  %v8707_v63 = vadd.f32 %v8609_v43, %v3743_v42 }
 0x338   :  { %v4081_v21 = vrot.slane %v4080_v47, 1  ;;  %v4087_v7 = vmax.f32 %v4085_v26, %v4086_v54  ;;  %v3713_v18 = vadd.f32 %v3697_v56, %v3678_v4  ;;  %v3712_v57 = vadd.f32 %v3696_v61, %v3591_v6 }
 0x339   :  { %v4121_v1 = vrot.slane %v4120_v29, 2  ;;  %v4127_v14 = vmax.f32 %v4125_v28, %v4126_v10  ;;  %v3806_v38 = vmax.f32 %v3794_v37, %v3796_v15  ;;  %v3797_v17 = vmax.f32 %v8707_v63, 0.0 }
 0x33a   :  { %3729 = vst [vmem:[#allocation5 + $0x78] sm:$0xf] %v3713_v18  ;;  %3728 = vst [vmem:[#allocation5 + $0x48] sm:$0xf] %v3712_v57  ;;  %v3714_v55 = vadd.f32 %v3698_v40, %v3680_v25  ;;  %v8712_v43 = vmax.f32 %v4073_v60, %v4074_v58  ;;  %v8714_v5 = vmax.f32 %v4080_v47, %v4081_v21  ;;  %v4088_v33 = vrot.slane %v4087_v7, 1 }
 0x33b   :  { %v4122_v3 = vmax.f32 %v4120_v29, %v4121_v1  ;;  %v4128_v52 = vrot.slane %v4127_v14, 2  ;;  %v3853_v41 = vcombine.low %v8656_v19, %v3806_v38  ;;  %v3854_v8 = vcombine.high %v8656_v19, %v3806_v38 }
 0x33c   :  { %3730 = vst [vmem:[#allocation5 + $0x30] sm:$0xf] %v3714_v55  ;;  %v8718_v13 = vmax.f32 %v4087_v7, %v4088_v33  ;;  %v4094_v37 = vmax.f32 %v4092_v9, %v4093_v12  ;;  %v4100_v11 = vrot.slane %v4099_v27, 2  ;;  %v4108_v36 = vmax.f32 %v4106_v34, %v4107_v35 }
 0x33d   :  { %v4123_v30 = vrot.slane %v4122_v3, 1  ;;  %v4129_v59 = vmax.f32 %v4127_v14, %v4128_v52  ;;  %v3861_v60 = vrot.slane %v3853_v41, %v6929_v53  ;;  %v3868_v58 = vrot.slane %v3854_v8, %v6929_v53 }
 0x33e   :  { %v4095_v45 = vrot.slane %v4094_v37, 1  ;;  %v8722_v49 = vmax.f32 %v4099_v27, %v4100_v11  ;;  %v4109_v2 = vrot.slane %v4108_v36, 1  ;;  %v4114_v4 = vrot.slane %v8704_v23, 2 }
 0x33f   :  { %v8725_v48 = vmax.f32 %v4122_v3, %v4123_v30  ;;  %v4130_v19 = vrot.slane %v4129_v59, 1  ;;  %v3869_v26 = vcombine.high %v3861_v60, %v3861_v60  ;;  %v3870_v39 = vcombine.high %v3868_v58, %v3868_v58 }
 0x340   :  { %v3950_v9 = vrot.slane %v3861_v60, %v6929_v53  ;;  %v3966_v34 = vrot.slane %v3868_v58, %v6929_v53  ;;  %v8729_v42 = vmax.f32 %v4094_v37, %v4095_v45  ;;  %v4102_v12 = vrot.slane %v8722_v49, 1 }
 0x341   :  { %v8732_v16 = vmax.f32 %v4129_v59, %v4130_v19  ;;  %v3958_v27 = vrot.slane %v3869_v26, %v6929_v53  ;;  %v3974_v28 = vrot.slane %v3870_v39, %v6929_v53  ;;  %v8736_v6 = vmax.f32 %v4108_v36, %v4109_v2 }
 0x342   :  { %v3951_v47 = vcombine.high %v3950_v9, %v3950_v9  ;;  %v3967_v54 = vcombine.high %v3966_v34, %v3966_v34  ;;  %v4132_v35 = vsel %vm1648_vm4, %v3950_v9, -inf  ;;  %v4160_v29 = vsel %vm1648_vm4, %v3966_v34, -inf }
 0x343   :  { %v3959_v10 = vcombine.high %v3958_v27, %v3958_v27  ;;  %v3975_v15 = vcombine.high %v3974_v28, %v3974_v28  ;;  %v4133_v56 = vrot.slane %v4132_v35, 4  ;;  %v4146_v61 = vsel %vm1648_vm4, %v3958_v27, -inf }
 0x344   :  { %v4139_v25 = vsel %vm1648_vm4, %v3951_v47, -inf  ;;  %v4147_v21 = vrot.slane %v4146_v61, 4  ;;  %v4161_v7 = vrot.slane %v4160_v29, 4  ;;  %v4167_v18 = vsel %vm1648_vm4, %v3967_v54, -inf }
 0x345   :  { %v4134_v57 = vmax.f32 %v4132_v35, %v4133_v56  ;;  %v4140_v1 = vrot.slane %v4139_v25, 4  ;;  %v4153_v14 = vsel %vm1648_vm4, %v3959_v10, -inf  ;;  %v4168_v38 = vrot.slane %v4167_v18, 4  ;;  %v3745_v56 = vld [vmem:[#allocation5 + $0x78] sm:$0xf] }
 0x346   :  { %v4148_v40 = vmax.f32 %v4146_v61, %v4147_v21  ;;  %v4154_v55 = vrot.slane %v4153_v14, 4  ;;  %v4162_v33 = vmax.f32 %v4160_v29, %v4161_v7  ;;  %v4174_v3 = vsel %vm1648_vm4, %v3974_v28, -inf  ;;  %v3744_v61 = vld [vmem:[#allocation5 + $0x48] sm:$0xf] }
 0x347   :  { %v4135_v52 = vrot.slane %v4134_v57, 2  ;;  %v4141_v41 = vmax.f32 %v4139_v25, %v4140_v1  ;;  %v4169_v8 = vmax.f32 %v4167_v18, %v4168_v38  ;;  %v4175_v37 = vrot.slane %v4174_v3, 4  ;;  %v3746_v18 = vld [vmem:[#allocation5 + $0x30] sm:$0xf] }
 0x348   :  { %v4149_v11 = vrot.slane %v4148_v40, 2  ;;  %v4155_v36 = vmax.f32 %v4153_v14, %v4154_v55  ;;  %v4163_v30 = vrot.slane %v4162_v33, 2  ;;  %v4181_v59 = vsel %vm1648_vm4, %v3975_v15, -inf }
 0x349   :  { %v4136_v60 = vmax.f32 %v4134_v57, %v4135_v52  ;;  %v4142_v58 = vrot.slane %v4141_v41, 2  ;;  %v4170_v45 = vrot.slane %v4169_v8, 2  ;;  %v4176_v2 = vmax.f32 %v4174_v3, %v4175_v37 }
 0x34a   :  { %v4150_v19 = vmax.f32 %v4148_v40, %v4149_v11  ;;  %v4156_v26 = vrot.slane %v4155_v36, 2  ;;  %v4164_v39 = vmax.f32 %v4162_v33, %v4163_v30  ;;  %v4182_v9 = vrot.slane %v4181_v59, 4 }
 0x34b   :  { %v4137_v34 = vrot.slane %v4136_v60, 1  ;;  %v4143_v27 = vmax.f32 %v4141_v41, %v4142_v58  ;;  %v4171_v28 = vmax.f32 %v4169_v8, %v4170_v45  ;;  %v4177_v47 = vrot.slane %v4176_v2, 2 }
 0x34c   :  { %v4151_v54 = vrot.slane %v4150_v19, 1  ;;  %v4157_v35 = vmax.f32 %v4155_v36, %v4156_v26  ;;  %v4165_v29 = vrot.slane %v4164_v39, 1  ;;  %v4183_v10 = vmax.f32 %v4181_v59, %v4182_v9 }
 0x34d   :  { %v4138_v25 = vmax.f32 %v4136_v60, %v4137_v34  ;;  %v4144_v15 = vrot.slane %v4143_v27, 1  ;;  %v4172_v21 = vrot.slane %v4171_v28, 1  ;;  %v4178_v7 = vmax.f32 %v4176_v2, %v4177_v47 }
 0x34e   :  { %v4152_v57 = vmax.f32 %v4150_v19, %v4151_v54  ;;  %v4158_v1 = vrot.slane %v4157_v35, 1  ;;  %v4166_v14 = vmax.f32 %v4164_v39, %v4165_v29  ;;  %v4184_v38 = vrot.slane %v4183_v10, 2 }
 0x34f   :  { %v4145_v40 = vmax.f32 %v4143_v27, %v4144_v15  ;;  %v4173_v55 = vmax.f32 %v4171_v28, %v4172_v21  ;;  %v3783_v33 = vadd.f32 %v8613_v32, %v3745_v56  ;;  %v3782_v3 = vadd.f32 %v8621_v44, %v3744_v61 }
 0x350   :  { %v4159_v52 = vmax.f32 %v4157_v35, %v4158_v1  ;;  %v3784_v41 = vadd.f32 %v8625_v22, %v3746_v18  ;;  %v4103_v8 = vmax.f32 %v8722_v49, %v4102_v12  ;;  %v4115_v37 = vmax.f32 %v8704_v23, %v4114_v4 }
 0x351   :  { %v3799_v11 = vmax.f32 %v3783_v33, 0.0  ;;  %v3798_v36 = vmax.f32 %v3782_v3, 0.0  ;;  %v4179_v30 = vrot.slane %v4178_v7, 1  ;;  %v4185_v59 = vmax.f32 %v4183_v10, %v4184_v38 }
 0x352   :  { %v3800_v60 = vmax.f32 %v3784_v41, 0.0  ;;  %v4116_v58 = vrot.slane %v4115_v37, 1  ;;  %v4244_v32 = vsel %vm2123_vm11, %v8679_v31, %v8673_v62  ;;  %v4250_v44 = vsel %vm2123_vm11, %v8683_v50, %v8675_v0 }
 0x353   :  { %v3807_v22 = vmax.f32 %v3797_v17, %v3799_v11  ;;  %v4180_v49 = vmax.f32 %v4178_v7, %v4179_v30  ;;  %v4186_v12 = vrot.slane %v4185_v59, 1  ;;  %v4245_v23 = vsel %vm2105_vm5, %v8677_v51, %v4244_v32 }
 0x354   :  { %v3808_v4 = vmax.f32 %v3798_v36, %v3800_v60  ;;  %v4117_v45 = vmax.f32 %v4115_v37, %v4116_v58  ;;  %v4246_v2 = vsel %vm2107_vm6, %v8688_v20, %v4245_v23  ;;  %v4251_v62 = vsel %vm2105_vm5, %v8681_v24, %v4250_v44 }
 0x355   :  { %v4187_v31 = vmax.f32 %v4185_v59, %v4186_v12  ;;  %v4247_v0 = vsel %vm2109_vm7, %v8714_v5, %v4246_v2  ;;  %v4252_v50 = vsel %vm2107_vm6, %v8712_v43, %v4251_v62  ;;  %v4256_v63 = vsel %vm2123_vm11, %v4138_v25, %v8725_v48 }
 0x356   :  { %v3871_v17 = vcombine.low %v3807_v22, %v3808_v4  ;;  %v4248_v51 = vsel %vm2111_vm8, %v8729_v42, %v4247_v0  ;;  %v4253_v20 = vsel %vm2109_vm7, %v8718_v13, %v4252_v50  ;;  %v4257_v19 = vsel %vm2105_vm5, %v4152_v57, %v4256_v63 }
 0x357   :  { %v4249_v24 = vsel %vm2113_vm9, %v8736_v6, %v4248_v51  ;;  %v4254_v5 = vsel %vm2111_vm8, %v4103_v8, %v4253_v20  ;;  %v4258_v26 = vsel %vm2107_vm6, %v4166_v14, %v4257_v19  ;;  %v4262_v43 = vsel %vm2123_vm11, %v4145_v40, %v8732_v16 }
 0x358   :  { %v3878_v48 = vrot.slane %v3871_v17, %v6929_v53  ;;  %v4255_v39 = vsel %vm2113_vm9, %v4117_v45, %v4254_v5  ;;  %v4259_v42 = vsel %vm2109_vm7, %v4180_v49, %v4258_v26  ;;  %v4263_v13 = vsel %vm2105_vm5, %v4159_v52, %v4262_v43  ;;  %4272 = vst [vmem:[#allocation6] sm:$0x7f] %v4249_v24 }
 0x359   :  { %v4264_v9 = vsel %vm2107_vm6, %v4173_v55, %v4263_v13  ;;  %4273 = vst [vmem:[#allocation6 + $0x8] sm:$0x7f] %v4255_v39  ;;  %v6113_v44 = vmov 1966171168  }
 0x35a   :  { %v3879_v6 = vcombine.high %v3878_v48, %v3878_v48  ;;  %v3982_v34 = vrot.slane %v3878_v48, %v6929_v53  ;;  %v4265_v27 = vsel %vm2109_vm7, %v4187_v31, %v4264_v9  ;;  %v4352_v22 = vunpack.c.l.s4 %v6113_v44  ;;  %v5656_v44 = vld [vmem:[%s9336_s5 + $0x338] sm:$0xff] }
 0x35c   :  { %v3983_v28 = vcombine.high %v3982_v34, %v3982_v34  ;;  %v3990_v16 = vrot.slane %v3879_v6, %v6929_v53  ;;  %v4188_v47 = vsel %vm1648_vm4, %v3982_v34, -inf  ;;  %v4353_v12 = vunpack.c.0.s8 %v4352_v22  ;;  %v5639_v22 = vld [vmem:[%s9336_s5 + $0x2b0] sm:$0xff] }
 0x35d   :  { %v4189_v54 = vrot.slane %v4188_v47, 4 }
 0x35e   :  { %v3991_v35 = vcombine.high %v3990_v16, %v3990_v16  ;;  %v4195_v29 = vsel %vm1648_vm4, %v3983_v28, -inf  ;;  %v4202_v10 = vsel %vm1648_vm4, %v3990_v16, -inf  ;;  %v8803_v45 = vsub.s32 %v4353_v12, %v6751_v46  ;;  %v5664_v28 = vld [vmem:[%s9336_s5 + $0x378] sm:$0xff]  ;;  %v5647_v16 = vld [vmem:[%s9336_s5 + $0x2f0] sm:$0xff] }
 0x35f   :  { %v4190_v56 = vmax.f32 %v4188_v47, %v4189_v54  ;;  %v4196_v61 = vrot.slane %v4195_v29, 4  ;;  %v4203_v25 = vrot.slane %v4202_v10, 4  ;;  %v5679_v54 = vld [vmem:[%s9336_s5 + $0x3f0] sm:$0xff] }
 0x360   :  { %v4209_v15 = vsel %vm1648_vm4, %v3991_v35, -inf  ;;  %v4312_v23 = vld [vmem:[#allocation6 + $0x1] ss:$8 sm:$0x3]  ;;  %v5623_v12 = vld [vmem:[%s9336_s5 + $0x230] sm:$0xff] }
 0x361   :  { %v4191_v21 = vrot.slane %v4190_v56, 2  ;;  %v4197_v7 = vmax.f32 %v4195_v29, %v4196_v61  ;;  %v4204_v18 = vmax.f32 %v4202_v10, %v4203_v25  ;;  %v4210_v57 = vrot.slane %v4209_v15, 4  ;;  %v4276_v4 = vld [vmem:[#allocation6] ss:$8 sm:$0x3]  ;;  %v5631_v29 = vld [vmem:[%s9336_s5 + $0x270] sm:$0xff] }
 0x362   :  { %v4543_v2 = vld [vmem:[#allocation6 + $0x2] ss:$8 sm:$0x3]  ;;  %v4678_v62 = vld [vmem:[#allocation6 + $0x3] ss:$8 sm:$0x3] }
 0x363   :  { %v4192_v1 = vmax.f32 %v4190_v56, %v4191_v21  ;;  %v4198_v14 = vrot.slane %v4197_v7, 2  ;;  %v4205_v53 = vrot.slane %v4204_v18, 2  ;;  %v4211_v38 = vmax.f32 %v4209_v15, %v4210_v57  ;;  %v5663_v10 = vld [vmem:[%s9336_s5 + $0x370] sm:$0xff]  ;;  %v5646_v56 = vld [vmem:[%s9336_s5 + $0x2e8] sm:$0xff]  ;;  %v5645_v21 = vld [vmem:[%s9336_s5 + $0x2e0] sm:$0xff] }
 0x364   :  { %v5678_v61 = vld [vmem:[%s9336_s5 + $0x3e8] sm:$0xff]  ;;  %v5661_v57 = vld [vmem:[%s9336_s5 + $0x360] sm:$0xff] }
 0x365   :  { %v4193_v40 = vrot.slane %v4192_v1, 1  ;;  %v4199_v55 = vmax.f32 %v4197_v7, %v4198_v14  ;;  %v4206_v33 = vmax.f32 %v4204_v18, %v4205_v53  ;;  %v4212_v3 = vrot.slane %v4211_v38, 2  ;;  %v5630_v25 = vld [vmem:[%s9336_s5 + $0x268] sm:$0xff]  ;;  %v5677_v7 = vld [vmem:[%s9336_s5 + $0x3e0] sm:$0xff]  ;;  %v5676_v14 = vld [vmem:[%s9336_s5 + $0x3d8] sm:$0xff] }
 0x366   :  { %v5662_v15 = vld [vmem:[%s9336_s5 + $0x368] sm:$0xff]  ;;  %v5629_v18 = vld [vmem:[%s9336_s5 + $0x260] sm:$0xff]  ;;  %v5628_v53 = vld [vmem:[%s9336_s5 + $0x258] sm:$0xff] }
 0x367   :  { %v4194_v52 = vmax.f32 %v4192_v1, %v4193_v40  ;;  %v4200_v41 = vrot.slane %v4199_v55, 1  ;;  %v4207_v8 = vrot.slane %v4206_v33, 1  ;;  %v4213_v37 = vmax.f32 %v4211_v38, %v4212_v3  ;;  %v5644_v1 = vld [vmem:[%s9336_s5 + $0x2d8] sm:$0xff]  ;;  %v5643_v40 = vld [vmem:[%s9336_s5 + $0x2d0] sm:$0xff] }
 0x368   :  { %v5660_v38 = vld [vmem:[%s9336_s5 + $0x358] sm:$0xff]  ;;  %v5659_v3 = vld [vmem:[%s9336_s5 + $0x350] sm:$0xff] }
 0x369   :  { %v4201_v11 = vmax.f32 %v4199_v55, %v4200_v41  ;;  %v4208_v36 = vmax.f32 %v4206_v33, %v4207_v8  ;;  %v4214_v30 = vrot.slane %v4213_v37, 1  ;;  %v4260_v59 = vsel %vm2111_vm8, %v4194_v52, %v4259_v42  ;;  %v5675_v55 = vld [vmem:[%s9336_s5 + $0x3d0] sm:$0xff]  ;;  %v5642_v52 = vld [vmem:[%s9336_s5 + $0x2c8] sm:$0xff] }
 0x36a   :  { %v5627_v33 = vld [vmem:[%s9336_s5 + $0x250] sm:$0xff]  ;;  %v5674_v41 = vld [vmem:[%s9336_s5 + $0x3c8] sm:$0xff] }
 0x36b   :  { %v4215_v60 = vmax.f32 %v4213_v37, %v4214_v30  ;;  %v4261_v58 = vsel %vm2113_vm9, %v4208_v36, %v4260_v59  ;;  %v4266_v32 = vsel %vm2111_vm8, %v4201_v11, %v4265_v27  ;;  %v5632_v27 = vld [vmem:[%s9336_s5 + $0x278] sm:$0xff]  ;;  %v5626_v8 = vld [vmem:[%s9336_s5 + $0x248] sm:$0xff]  ;;  %v5641_v11 = vld [vmem:[%s9336_s5 + $0x2c0] sm:$0xff] }
 0x36c   :  { %4274 = vst [vmem:[#allocation6 + $0x10] sm:$0x7f] %v4261_v58  ;;  %v5658_v37 = vld [vmem:[%s9336_s5 + $0x348] sm:$0xff]  ;;  %v5673_v36 = vld [vmem:[%s9336_s5 + $0x3c0] sm:$0xff]  ;;  %v5672_v58 = vld [vmem:[%s9336_s5 + $0x3b8] sm:$0xff] }
 0x36d   :  { %v4267_v49 = vsel %vm2113_vm9, %v4215_v60, %v4266_v32  ;;  %v5625_v30 = vld [vmem:[%s9336_s5 + $0x240] sm:$0xff]  ;;  %v5640_v60 = vld [vmem:[%s9336_s5 + $0x2b8] sm:$0xff] }
 0x36e   :  { %4275 = vst [vmem:[#allocation6 + $0x18] sm:$0x7f] %v4267_v49  ;;  %v5657_v59 = vld [vmem:[%s9336_s5 + $0x340] sm:$0xff]  ;;  %v5624_v32 = vld [vmem:[%s9336_s5 + $0x238] sm:$0xff]  ;;  %v5671_v49 = vld [vmem:[%s9336_s5 + $0x3b0] sm:$0xff] }
 0x375   :  { %v4314_v31 = vld [vmem:[#allocation6 + $0x11] ss:$8 sm:$0x3]  ;;  %v4278_v0 = vld [vmem:[#allocation6 + $0x10] ss:$8 sm:$0x3] }
 0x376   :  { %v4350_v50 = vcombine.low %v4312_v23, %v4314_v31  ;;  %v4447_v63 = vcombine.low %v4276_v4, %v4278_v0  ;;  %v4545_v17 = vld [vmem:[#allocation6 + $0x12] ss:$8 sm:$0x3]  ;;  %v4680_v51 = vld [vmem:[#allocation6 + $0x13] ss:$8 sm:$0x3] }
 0x377   :  { %v4581_v20 = vcombine.low %v4543_v2, %v4545_v17  ;;  %v4716_v19 = vcombine.low %v4678_v62, %v4680_v51  ;;  %v5655_v23 = vld [vmem:[%s9336_s5 + $0x330] sm:$0xff]  ;;  %v5638_v4 = vld [vmem:[%s9336_s5 + $0x2a8] sm:$0xff]  ;;  %v5669_v17 = vld [vmem:[%s9336_s5 + $0x3a0] sm:$0xff] }
 0x378   :  { %v4357_v24 = vrot.slane %v4350_v50, %v8803_v45  ;;  %v4454_v5 = vrot.slane %v4447_v63, %v8803_v45  ;;  %v5670_v2 = vld [vmem:[%s9336_s5 + $0x3a8] sm:$0xff]  ;;  %v4815_v62 = vld [vmem:[#allocation6 + $0x14] ss:$8 sm:$0x3]  ;;  %v5637_v63 = vld [vmem:[%s9336_s5 + $0x2a0] sm:$0xff] }
 0x379   :  { %v8808_v26 = vrot.slane %v4581_v20, %v8803_v45  ;;  %v8811_v46 = vrot.slane %v4716_v19, %v8803_v45  ;;  %v5622_v31 = vld [vmem:[%s9336_s5 + $0x228] sm:$0xff]  ;;  %v4950_v50 = vld [vmem:[#allocation6 + $0x15] ss:$8 sm:$0x3]  ;;  %v5621_v20 = vld [vmem:[%s9336_s5 + $0x220] sm:$0xff] }
 0x37a   :  { %v4358_v43 = vcombine.high %v4357_v24, %v4357_v24  ;;  %v4455_v48 = vcombine.high %v4454_v5, %v4454_v5  ;;  %v4365_v6 = vrot.slane %v4357_v24, %v8803_v45  ;;  %v4462_v34 = vrot.slane %v4454_v5, %v8803_v45  ;;  %v5654_v0 = vld [vmem:[%s9336_s5 + $0x328] sm:$0xff]  ;;  %v5653_v19 = vld [vmem:[%s9336_s5 + $0x320] sm:$0xff] }
 0x37b   :  { %v4589_v39 = vcombine.high %v8808_v26, %v8808_v26  ;;  %v4724_v9 = vcombine.high %v8811_v46, %v8811_v46  ;;  %v4813_v51 = vld [vmem:[#allocation6 + $0x4] ss:$8 sm:$0x3]  ;;  %v4948_v5 = vld [vmem:[#allocation6 + $0x5] ss:$8 sm:$0x3] }
 0x37c   :  { %v4372_v42 = vrot.slane %v4358_v43, %v8803_v45  ;;  %v4469_v13 = vrot.slane %v4455_v48, %v8803_v45  ;;  %v4851_v24 = vcombine.low %v4813_v51, %v4815_v62  ;;  %v5636_v43 = vld [vmem:[%s9336_s5 + $0x298] sm:$0xff]  ;;  %v5722_v62 = vld [vmem:[%s9336_s5 + $0x548] sm:$0xff] }
 0x37d   :  { %v4603_v47 = vrot.slane %v4589_v39, %v8803_v45  ;;  %v4738_v35 = vrot.slane %v4724_v9, %v8803_v45  ;;  %v5668_v48 = vld [vmem:[%s9336_s5 + $0x398] sm:$0xff]  ;;  %v4986_v39 = vcombine.low %v4948_v5, %v4950_v50  ;;  %v5635_v9 = vld [vmem:[%s9336_s5 + $0x290] sm:$0xff]  ;;  %v5689_v50 = vld [vmem:[%s9336_s5 + $0x440] sm:$0xff] }
 0x37e   :  { %4439 = vmatprep.mubr.f32.mxu0 %v4372_v42  ;;  %4536 = vmatprep.mubr.f32.mxu1 %v4469_v13  ;;  %v5620_v42 = vld [vmem:[%s9336_s5 + $0x218] sm:$0xff]  ;;  %v5735_v5 = vld [vmem:[%s9336_s5 + $0x5b0] sm:$0xff] }
 0x37f   :  { %4440 = vmatmul.mubr.f32.vlgmr.msra.gmra.mxu0 %v4365_v6  ;;  %4537 = vmatmul.mubr.f32.vlgmr.msra.gmra.mxu1 %v4462_v34  ;;  %v5652_v13 = vld [vmem:[%s9336_s5 + $0x318] sm:$0xff]  ;;  %v5667_v6 = vld [vmem:[%s9336_s5 + $0x390] sm:$0xff] }
 0x380   :  { %5849 = vmatpush3.msra.mxu0 %v5632_v27  ;;  %5884 = vmatpush3.msra.mxu1 %v5664_v28  ;;  %v5619_v34 = vld [vmem:[%s9336_s5 + $0x210] sm:$0xff]  ;;  %v8986_v28 = vrot.slane %v4851_v24, %v8803_v45  ;;  %v5736_v51 = vld [vmem:[%s9336_s5 + $0x5b8] sm:$0xff] }
 0x381   :  { %5850 = vmatprep.subr.mxu0 %v5647_v16  ;;  %4670 = vmatprep.mubr.f32.mxu0 %v4603_v47  ;;  %v5651_v27 = vld [vmem:[%s9336_s5 + $0x310] sm:$0xff]  ;;  %v5634_v16 = vld [vmem:[%s9336_s5 + $0x288] sm:$0xff] }
 0x382   :  { %5885 = vmatprep.subr.mxu1 %v5679_v54  ;;  %4805 = vmatprep.mubr.f32.mxu1 %v4738_v35  ;;  %v5666_v47 = vld [vmem:[%s9336_s5 + $0x388] sm:$0xff]  ;;  %v8995_v54 = vrot.slane %v4986_v39, %v8803_v45  ;;  %v5703_v24 = vld [vmem:[%s9336_s5 + $0x4b0] sm:$0xff] }
 0x383   :  { %5851 = vmatpush3.msra.mxu0 %v5631_v29  ;;  %5886 = vmatpush3.msra.mxu1 %v5663_v10  ;;  %v5618_v35 = vld [vmem:[%s9336_s5 + $0x208] sm:$0xff]  ;;  %v5633_v10 = vld [vmem:[%s9336_s5 + $0x280] sm:$0xff]  ;;  %v5085_v39 = vld [vmem:[#allocation6 + $0x16] ss:$8 sm:$0x3] }
 0x384   :  { %5852 = vmatprep.subr.mxu0 %v5646_v56  ;;  %5887 = vmatprep.subr.mxu1 %v5678_v61  ;;  %v5650_v29 = vld [vmem:[%s9336_s5 + $0x308] sm:$0xff]  ;;  %v5665_v56 = vld [vmem:[%s9336_s5 + $0x380] sm:$0xff] }
 0x385   :  { %5853 = vmatpush3.msra.mxu0 %v5630_v25  ;;  %5888 = vmatpush3.msra.mxu1 %v5662_v15  ;;  %v5617_v61 = vld [vmem:[%s9336_s5 + $0x200] sm:$0xff]  ;;  %v4859_v15 = vcombine.high %v8986_v28, %v8986_v28 }
 0x386   :  { %5854 = vmatprep.subr.mxu0 %v5645_v21  ;;  %5889 = vmatprep.subr.mxu1 %v5677_v7  ;;  %v5649_v25 = vld [vmem:[%s9336_s5 + $0x300] sm:$0xff]  ;;  %v4994_v21 = vcombine.high %v8995_v54, %v8995_v54  ;;  %v4596_v7 = vrot.slane %v8808_v26, %v8803_v45 }
 0x387   :  { %5855 = vmatpush3.msra.mxu0 %v5629_v18  ;;  %5890 = vmatpush3.msra.mxu1 %v5661_v57  ;;  %v4731_v18 = vrot.slane %v8811_v46, %v8803_v45  ;;  %v5712_v57 = vld [vmem:[%s9336_s5 + $0x4f8] sm:$0xff]  ;;  %v4873_v26 = vrot.slane %v4859_v15, %v8803_v45  ;;  %v5699_v15 = vld [vmem:[%s9336_s5 + $0x490] sm:$0xff] }
 0x388   :  { %5856 = vmatprep.subr.mxu0 %v5644_v1  ;;  %5891 = vmatprep.subr.mxu1 %v5676_v14  ;;  %v5744_v1 = vld [vmem:[%s9336_s5 + $0x5f8] sm:$0xff] }
 0x389   :  { %5857 = vmatpush3.msra.mxu0 %v5628_v53  ;;  %5892 = vmatpush3.msra.mxu1 %v5660_v38  ;;  %v5696_v14 = vld [vmem:[%s9336_s5 + $0x478] sm:$0xff]  ;;  %v5008_v53 = vrot.slane %v4994_v21, %v8803_v45  ;;  %v5711_v38 = vld [vmem:[%s9336_s5 + $0x4f0] sm:$0xff] }
 0x38a   :  { %5858 = vmatprep.subr.mxu0 %v5643_v40  ;;  %5893 = vmatprep.subr.mxu1 %v5675_v55  ;;  %v5728_v46 = vld [vmem:[%s9336_s5 + $0x578] sm:$0xff]  ;;  %v5743_v40 = vld [vmem:[%s9336_s5 + $0x5f0] sm:$0xff] }
 0x38b   :  { %5859 = vmatpush3.msra.mxu0 %v5627_v33  ;;  %5894 = vmatpush3.msra.mxu1 %v5659_v3  ;;  %v5695_v55 = vld [vmem:[%s9336_s5 + $0x470] sm:$0xff]  ;;  %v5710_v3 = vld [vmem:[%s9336_s5 + $0x4e8] sm:$0xff] }
 0x38c   :  { %5860 = vmatprep.subr.mxu0 %v5642_v52  ;;  %5895 = vmatprep.subr.mxu1 %v5674_v41  ;;  %v5727_v33 = vld [vmem:[%s9336_s5 + $0x570] sm:$0xff]  ;;  %v5742_v52 = vld [vmem:[%s9336_s5 + $0x5e8] sm:$0xff] }
 0x38d   :  { %5861 = vmatpush3.msra.mxu0 %v5626_v8  ;;  %5896 = vmatpush3.msra.mxu1 %v5658_v37  ;;  %v5694_v41 = vld [vmem:[%s9336_s5 + $0x468] sm:$0xff]  ;;  %v5709_v37 = vld [vmem:[%s9336_s5 + $0x4e0] sm:$0xff]  ;;  %v5731_v21 = vld [vmem:[%s9336_s5 + $0x590] sm:$0xff] }
 0x38e   :  { %5862 = vmatprep.subr.mxu0 %v5641_v11  ;;  %5897 = vmatprep.subr.mxu1 %v5673_v36  ;;  %v5726_v8 = vld [vmem:[%s9336_s5 + $0x568] sm:$0xff]  ;;  %v5741_v11 = vld [vmem:[%s9336_s5 + $0x5e0] sm:$0xff] }
 0x38f   :  { %5863 = vmatpush3.msra.mxu0 %v5625_v30  ;;  %5898 = vmatpush3.msra.mxu1 %v5657_v59  ;;  %v5693_v36 = vld [vmem:[%s9336_s5 + $0x460] sm:$0xff]  ;;  %v5708_v59 = vld [vmem:[%s9336_s5 + $0x4d8] sm:$0xff] }
 0x390   :  { %5864 = vmatprep.subr.mxu0 %v5640_v60  ;;  %5899 = vmatprep.subr.mxu1 %v5672_v58  ;;  %v5725_v30 = vld [vmem:[%s9336_s5 + $0x560] sm:$0xff]  ;;  %v5740_v60 = vld [vmem:[%s9336_s5 + $0x5d8] sm:$0xff] }
 0x391   :  { %5865 = vmatpush3.msra.mxu0 %v5624_v32  ;;  %5900 = vmatpush3.msra.mxu1 %v5656_v44  ;;  %v5692_v58 = vld [vmem:[%s9336_s5 + $0x458] sm:$0xff]  ;;  %v5707_v44 = vld [vmem:[%s9336_s5 + $0x4d0] sm:$0xff] }
 0x392   :  { %5866 = vmatprep.subr.mxu0 %v5639_v22  ;;  %5901 = vmatprep.subr.mxu1 %v5671_v49  ;;  %v5724_v32 = vld [vmem:[%s9336_s5 + $0x558] sm:$0xff]  ;;  %v5739_v22 = vld [vmem:[%s9336_s5 + $0x5d0] sm:$0xff] }
 0x393   :  { %5867 = vmatpush3.msra.mxu0 %v5623_v12  ;;  %5902 = vmatpush3.msra.mxu1 %v5655_v23  ;;  %v5691_v49 = vld [vmem:[%s9336_s5 + $0x450] sm:$0xff]  ;;  %v5706_v23 = vld [vmem:[%s9336_s5 + $0x4c8] sm:$0xff] }
 0x394   :  { %5868 = vmatprep.subr.mxu0 %v5638_v4  ;;  %5903 = vmatprep.subr.mxu1 %v5670_v2  ;;  %v5723_v12 = vld [vmem:[%s9336_s5 + $0x550] sm:$0xff]  ;;  %v5738_v4 = vld [vmem:[%s9336_s5 + $0x5c8] sm:$0xff] }
 0x395   :  { %5869 = vmatpush3.msra.mxu0 %v5622_v31  ;;  %5904 = vmatpush3.msra.mxu1 %v5654_v0  ;;  %v5690_v2 = vld [vmem:[%s9336_s5 + $0x448] sm:$0xff]  ;;  %v5705_v31 = vld [vmem:[%s9336_s5 + $0x4c0] sm:$0xff] }
 0x396   :  { %5870 = vmatprep.subr.mxu0 %v5637_v63  ;;  %5905 = vmatprep.subr.mxu1 %v5669_v17  ;;  %v5737_v0 = vld [vmem:[%s9336_s5 + $0x5c0] sm:$0xff]  ;;  %v5704_v17 = vld [vmem:[%s9336_s5 + $0x4b8] sm:$0xff] }
 0x397   :  { %5871 = vmatpush3.msra.mxu0 %v5621_v20  ;;  %5906 = vmatpush3.msra.mxu1 %v5653_v19  ;;  %v5721_v63 = vld [vmem:[%s9336_s5 + $0x540] sm:$0xff]  ;;  %v5688_v20 = vld [vmem:[%s9336_s5 + $0x438] sm:$0xff] }
 0x398   :  { %5872 = vmatprep.subr.mxu0 %v5636_v43  ;;  %5907 = vmatprep.subr.mxu1 %v5668_v48  ;;  %v5720_v19 = vld [vmem:[%s9336_s5 + $0x538] sm:$0xff]  ;;  %v5687_v43 = vld [vmem:[%s9336_s5 + $0x430] sm:$0xff] }
 0x399   :  { %5873 = vmatpush3.msra.mxu0 %v5620_v42  ;;  %5908 = vmatpush3.msra.mxu1 %v5652_v13  ;;  %v5719_v48 = vld [vmem:[%s9336_s5 + $0x530] sm:$0xff]  ;;  %v5702_v42 = vld [vmem:[%s9336_s5 + $0x4a8] sm:$0xff] }
 0x39a   :  { %5874 = vmatprep.subr.mxu0 %v5635_v9  ;;  %5909 = vmatprep.subr.mxu1 %v5667_v6  ;;  %v5734_v13 = vld [vmem:[%s9336_s5 + $0x5a8] sm:$0xff] }
 0x39b   :  { %5875 = vmatpush3.msra.mxu0 %v5619_v34  ;;  %5910 = vmatpush3.msra.mxu1 %v5651_v27  ;;  %v5686_v9 = vld [vmem:[%s9336_s5 + $0x428] sm:$0xff]  ;;  %v5701_v27 = vld [vmem:[%s9336_s5 + $0x4a0] sm:$0xff] }
 0x39c   :  { %5876 = vmatprep.subr.mxu0 %v5634_v16  ;;  %5911 = vmatprep.subr.mxu1 %v5666_v47  ;;  %v5718_v6 = vld [vmem:[%s9336_s5 + $0x528] sm:$0xff]  ;;  %v5733_v16 = vld [vmem:[%s9336_s5 + $0x5a0] sm:$0xff] }
 0x39d   :  { %5877 = vmatpush3.msra.mxu0 %v5618_v35  ;;  %5912 = vmatpush3.msra.mxu1 %v5650_v29  ;;  %v5083_v34 = vld [vmem:[#allocation6 + $0x6] ss:$8 sm:$0x3] }
 0x39e   :  { %5878 = vmatprep.subr.mxu0 %v5633_v10  ;;  %5913 = vmatprep.subr.mxu1 %v5665_v56  ;;  %v5121_v47 = vcombine.low %v5083_v34, %v5085_v39  ;;  %v5685_v35 = vld [vmem:[%s9336_s5 + $0x420] sm:$0xff]  ;;  %v5700_v10 = vld [vmem:[%s9336_s5 + $0x498] sm:$0xff] }
 0x39f   :  { %5879 = vmatpush3.msra.mxu0 %v5617_v61  ;;  %5914 = vmatpush3.msra.mxu1 %v5649_v25  ;;  %v5717_v29 = vld [vmem:[%s9336_s5 + $0x520] sm:$0xff]  ;;  %v5732_v56 = vld [vmem:[%s9336_s5 + $0x598] sm:$0xff] }
 0x3a0   :  { %4671 = vmatmul.mubr.f32.vlgmr.msra.gmra.mxu0 %v4596_v7  ;;  %4806 = vmatmul.mubr.f32.vlgmr.msra.gmra.mxu1 %v4731_v18  ;;  %v5684_v61 = vld [vmem:[%s9336_s5 + $0x418] sm:$0xff]  ;;  %v9188_v7 = vrot.slane %v5121_v47, %v8803_v45  ;;  %v5683_v18 = vld [vmem:[%s9336_s5 + $0x410] sm:$0xff]  ;;  %v5745_v39 = vld [vmem:[%s9336_s5 + $0x600] sm:$0xff] }
 0x3a1   :  { %5918 = vmatprep.subr.mxu0 %v5712_v57  ;;  %5953 = vmatprep.subr.mxu1 %v5744_v1  ;;  %v5716_v25 = vld [vmem:[%s9336_s5 + $0x518] sm:$0xff]  ;;  %v5715_v57 = vld [vmem:[%s9336_s5 + $0x510] sm:$0xff]  ;;  %v5698_v1 = vld [vmem:[%s9336_s5 + $0x488] sm:$0xff] }
 0x3a2   :  { %5919 = vmatpush3.msra.mxu0 %v5696_v14  ;;  %4940 = vmatprep.mubr.f32.mxu0 %v4873_v26  ;;  %v5730_v14 = vld [vmem:[%s9336_s5 + $0x588] sm:$0xff] }
 0x3a3   :  { %5954 = vmatpush3.msra.mxu1 %v5728_v46  ;;  %5075 = vmatprep.mubr.f32.mxu1 %v5008_v53  ;;  %v5682_v26 = vld [vmem:[%s9336_s5 + $0x408] sm:$0xff]  ;;  %v5697_v53 = vld [vmem:[%s9336_s5 + $0x480] sm:$0xff] }
 0x3a4   :  { %5920 = vmatprep.subr.mxu0 %v5711_v38  ;;  %5955 = vmatprep.subr.mxu1 %v5743_v40  ;;  %v5714_v46 = vld [vmem:[%s9336_s5 + $0x508] sm:$0xff]  ;;  %v5729_v38 = vld [vmem:[%s9336_s5 + $0x580] sm:$0xff]  ;;  %v5129_v40 = vcombine.high %v9188_v7, %v9188_v7 }
 0x3a5   :  { %5921 = vmatpush3.msra.mxu0 %v5695_v55  ;;  %5956 = vmatpush3.msra.mxu1 %v5727_v33  ;;  %v5681_v55 = vld [vmem:[%s9336_s5 + $0x400] sm:$0xff] }
 0x3a6   :  { %5922 = vmatprep.subr.mxu0 %v5710_v3  ;;  %5957 = vmatprep.subr.mxu1 %v5742_v52  ;;  %v5713_v33 = vld [vmem:[%s9336_s5 + $0x500] sm:$0xff]  ;;  %v4866_v3 = vrot.slane %v8986_v28, %v8803_v45  ;;  %v5001_v52 = vrot.slane %v8995_v54, %v8803_v45  ;;  %v5775_v28 = vld [vmem:[%s9336_s5 + $0x6f0] sm:$0xff] }
 0x3a7   :  { %5923 = vmatpush3.msra.mxu0 %v5694_v41  ;;  %5958 = vmatpush3.msra.mxu1 %v5726_v8  ;;  %v5776_v41 = vld [vmem:[%s9336_s5 + $0x6f8] sm:$0xff]  ;;  %v5759_v54 = vld [vmem:[%s9336_s5 + $0x670] sm:$0xff] }
 0x3a8   :  { %5924 = vmatprep.subr.mxu0 %v5709_v37  ;;  %5959 = vmatprep.subr.mxu1 %v5741_v11  ;;  %v5760_v8 = vld [vmem:[%s9336_s5 + $0x678] sm:$0xff]  ;;  %v5143_v37 = vrot.slane %v5129_v40, %v8803_v45  ;;  %v5774_v11 = vld [vmem:[%s9336_s5 + $0x6e8] sm:$0xff] }
 0x3a9   :  { %5925 = vmatpush3.msra.mxu0 %v5693_v36  ;;  %5960 = vmatpush3.msra.mxu1 %v5725_v30  ;;  %v5758_v36 = vld [vmem:[%s9336_s5 + $0x668] sm:$0xff]  ;;  %v5773_v30 = vld [vmem:[%s9336_s5 + $0x6e0] sm:$0xff] }
 0x3aa   :  { %5926 = vmatprep.subr.mxu0 %v5708_v59  ;;  %5961 = vmatprep.subr.mxu1 %v5740_v60  ;;  %v5757_v59 = vld [vmem:[%s9336_s5 + $0x660] sm:$0xff]  ;;  %v5772_v60 = vld [vmem:[%s9336_s5 + $0x6d8] sm:$0xff] }
 0x3ab   :  { %5927 = vmatpush3.msra.mxu0 %v5692_v58  ;;  %5962 = vmatpush3.msra.mxu1 %v5724_v32  ;;  %v5756_v58 = vld [vmem:[%s9336_s5 + $0x658] sm:$0xff]  ;;  %v5771_v32 = vld [vmem:[%s9336_s5 + $0x6d0] sm:$0xff] }
 0x3ac   :  { %5928 = vmatprep.subr.mxu0 %v5707_v44  ;;  %5963 = vmatprep.subr.mxu1 %v5739_v22  ;;  %v5755_v44 = vld [vmem:[%s9336_s5 + $0x650] sm:$0xff]  ;;  %v5770_v22 = vld [vmem:[%s9336_s5 + $0x6c8] sm:$0xff] }
 0x3ad   :  { %5929 = vmatpush3.msra.mxu0 %v5691_v49  ;;  %5964 = vmatpush3.msra.mxu1 %v5723_v12  ;;  %v5754_v49 = vld [vmem:[%s9336_s5 + $0x648] sm:$0xff]  ;;  %v5769_v12 = vld [vmem:[%s9336_s5 + $0x6c0] sm:$0xff] }
 0x3ae   :  { %5930 = vmatprep.subr.mxu0 %v5706_v23  ;;  %5965 = vmatprep.subr.mxu1 %v5738_v4  ;;  %v5753_v23 = vld [vmem:[%s9336_s5 + $0x640] sm:$0xff]  ;;  %v5768_v4 = vld [vmem:[%s9336_s5 + $0x6b8] sm:$0xff] }
 0x3af   :  { %5931 = vmatpush3.msra.mxu0 %v5690_v2  ;;  %5966 = vmatpush3.msra.mxu1 %v5722_v62  ;;  %v5752_v2 = vld [vmem:[%s9336_s5 + $0x638] sm:$0xff]  ;;  %v5767_v62 = vld [vmem:[%s9336_s5 + $0x6b0] sm:$0xff] }
 0x3b0   :  { %5932 = vmatprep.subr.mxu0 %v5705_v31  ;;  %5967 = vmatprep.subr.mxu1 %v5737_v0  ;;  %v5751_v31 = vld [vmem:[%s9336_s5 + $0x630] sm:$0xff]  ;;  %v5766_v0 = vld [vmem:[%s9336_s5 + $0x6a8] sm:$0xff] }
 0x3b1   :  { %5933 = vmatpush3.msra.mxu0 %v5689_v50  ;;  %5968 = vmatpush3.msra.mxu1 %v5721_v63  ;;  %v5750_v50 = vld [vmem:[%s9336_s5 + $0x628] sm:$0xff]  ;;  %v5765_v63 = vld [vmem:[%s9336_s5 + $0x6a0] sm:$0xff] }
 0x3b2   :  { %5934 = vmatprep.subr.mxu0 %v5704_v17  ;;  %5969 = vmatprep.subr.mxu1 %v5736_v51  ;;  %v5749_v17 = vld [vmem:[%s9336_s5 + $0x620] sm:$0xff]  ;;  %v5764_v51 = vld [vmem:[%s9336_s5 + $0x698] sm:$0xff] }
 0x3b3   :  { %5935 = vmatpush3.msra.mxu0 %v5688_v20  ;;  %5970 = vmatpush3.msra.mxu1 %v5720_v19  ;;  %v5748_v20 = vld [vmem:[%s9336_s5 + $0x618] sm:$0xff]  ;;  %v5763_v19 = vld [vmem:[%s9336_s5 + $0x690] sm:$0xff] }
 0x3b4   :  { %5936 = vmatprep.subr.mxu0 %v5703_v24  ;;  %5971 = vmatprep.subr.mxu1 %v5735_v5  ;;  %v5747_v24 = vld [vmem:[%s9336_s5 + $0x610] sm:$0xff]  ;;  %v5762_v5 = vld [vmem:[%s9336_s5 + $0x688] sm:$0xff] }
 0x3b5   :  { %5937 = vmatpush3.msra.mxu0 %v5687_v43  ;;  %5972 = vmatpush3.msra.mxu1 %v5719_v48  ;;  %v5746_v43 = vld [vmem:[%s9336_s5 + $0x608] sm:$0xff]  ;;  %v5761_v48 = vld [vmem:[%s9336_s5 + $0x680] sm:$0xff] }
 0x3b6   :  { %5938 = vmatprep.subr.mxu0 %v5702_v42  ;;  %5973 = vmatprep.subr.mxu1 %v5734_v13  ;;  %v5136_v42 = vrot.slane %v9188_v7, %v8803_v45 }
 0x3b7   :  { %5939 = vmatpush3.msra.mxu0 %v5686_v9  ;;  %5974 = vmatpush3.msra.mxu1 %v5718_v6 }
 0x3b8   :  { %5940 = vmatprep.subr.mxu0 %v5701_v27  ;;  %5975 = vmatprep.subr.mxu1 %v5733_v16 }
 0x3b9   :  { %5941 = vmatpush3.msra.mxu0 %v5685_v35  ;;  %5976 = vmatpush3.msra.mxu1 %v5717_v29 }
 0x3ba   :  { %5942 = vmatprep.subr.mxu0 %v5700_v10  ;;  %5977 = vmatprep.subr.mxu1 %v5732_v56 }
 0x3bb   :  { %5943 = vmatpush3.msra.mxu0 %v5684_v61  ;;  %5978 = vmatpush3.msra.mxu1 %v5716_v25 }
 0x3bc   :  { %5944 = vmatprep.subr.mxu0 %v5699_v15  ;;  %5979 = vmatprep.subr.mxu1 %v5731_v21 }
 0x3bd   :  { %5945 = vmatpush3.msra.mxu0 %v5683_v18  ;;  %5980 = vmatpush3.msra.mxu1 %v5715_v57 }
 0x3be   :  { %5946 = vmatprep.subr.mxu0 %v5698_v1  ;;  %5981 = vmatprep.subr.mxu1 %v5730_v14 }
 0x3bf   :  { %5947 = vmatpush3.msra.mxu0 %v5682_v26  ;;  %5982 = vmatpush3.msra.mxu1 %v5714_v46 }
 0x3c0   :  { %5948 = vmatprep.subr.mxu0 %v5697_v53  ;;  %5983 = vmatprep.subr.mxu1 %v5729_v38 }
 0x3c1   :  { %5949 = vmatpush3.msra.mxu0 %v5681_v55  ;;  %5984 = vmatpush3.msra.mxu1 %v5713_v33  ;;  %v5777_v55 = vld [vmem:[%s9337_s6] ss:$0 sm:$0xff] }
 0x3c2   :  { %4941 = vmatmul.mubr.f32.vlgmr.msra.gmra.mxu0 %v4866_v3  ;;  %5076 = vmatmul.mubr.f32.vlgmr.msra.gmra.mxu1 %v5001_v52 }
 0x3c3   :  { %5988 = vmatprep.subr.mxu0 %v5776_v41  ;;  %5210 = vmatprep.mubr.f32.mxu0 %v5143_v37 }
 0x3c4   :  { %5989 = vmatpush3.msra.mxu0 %v5760_v8 }
 0x3c5   :  { %5990 = vmatprep.subr.mxu0 %v5775_v28 }
 0x3c6   :  { %5991 = vmatpush3.msra.mxu0 %v5759_v54 }
 0x3c7   :  { %5992 = vmatprep.subr.mxu0 %v5774_v11 }
 0x3c8   :  { %5993 = vmatpush3.msra.mxu0 %v5758_v36 }
 0x3c9   :  { %5994 = vmatprep.subr.mxu0 %v5773_v30 }
 0x3ca   :  { %5995 = vmatpush3.msra.mxu0 %v5757_v59 }
 0x3cb   :  { %5996 = vmatprep.subr.mxu0 %v5772_v60 }
 0x3cc   :  { %5997 = vmatpush3.msra.mxu0 %v5756_v58 }
 0x3cd   :  { %5998 = vmatprep.subr.mxu0 %v5771_v32 }
 0x3ce   :  { %5999 = vmatpush3.msra.mxu0 %v5755_v44 }
 0x3cf   :  { %6000 = vmatprep.subr.mxu0 %v5770_v22 }
 0x3d0   :  { %6001 = vmatpush3.msra.mxu0 %v5754_v49 }
 0x3d1   :  { %6002 = vmatprep.subr.mxu0 %v5769_v12 }
 0x3d2   :  { %6003 = vmatpush3.msra.mxu0 %v5753_v23 }
 0x3d3   :  { %6004 = vmatprep.subr.mxu0 %v5768_v4 }
 0x3d4   :  { %6005 = vmatpush3.msra.mxu0 %v5752_v2 }
 0x3d5   :  { %6006 = vmatprep.subr.mxu0 %v5767_v62 }
 0x3d6   :  { %6007 = vmatpush3.msra.mxu0 %v5751_v31 }
 0x3d7   :  { %6008 = vmatprep.subr.mxu0 %v5766_v0 }
 0x3d8   :  { %6009 = vmatpush3.msra.mxu0 %v5750_v50 }
 0x3d9   :  { %6010 = vmatprep.subr.mxu0 %v5765_v63 }
 0x3da   :  { %6011 = vmatpush3.msra.mxu0 %v5749_v17 }
 0x3db   :  { %6012 = vmatprep.subr.mxu0 %v5764_v51 }
 0x3dc   :  { %6013 = vmatpush3.msra.mxu0 %v5748_v20 }
 0x3dd   :  { %6014 = vmatprep.subr.mxu0 %v5763_v19 }
 0x3de   :  { %6015 = vmatpush3.msra.mxu0 %v5747_v24 }
 0x3df   :  { %6016 = vmatprep.subr.mxu0 %v5762_v5 }
 0x3e0   :  { %6017 = vmatpush3.msra.mxu0 %v5746_v43 }
 0x3e1   :  { %6018 = vmatprep.subr.mxu0 %v5761_v48 }
 0x3e2   :  { %6019 = vmatpush3.msra.mxu0 %v5745_v39 }
 0x3e3   :  { %5211 = vmatmul.mubr.f32.vlgmr.msra.gmra.mxu0 %v5136_v42 }
 0x43f   :  { %v5810_v13 = vpop.f32.mrf.mxu0  ;;  %v5845_v9 = vpop.f32.mrf.mxu1 }
 0x441   :  { %v5811_v6 = vpop.f32.mrf.mxu0  ;;  %v5846_v27 = vpop.f32.mrf.mxu1 }
 0x442   :  { %v5812_v47 = vadd.f32 %v5811_v6, %v5810_v13  ;;  %v5847_v35 = vadd.f32 %v5846_v27, %v5845_v9 }
 0x444   :  { %v4539_v61 = vadd.f32 %v5847_v35, %v5812_v47 }
 0x460   :  { %v5880_v34 = vpop.f32.mrf.mxu0  ;;  %v5915_v29 = vpop.f32.mrf.mxu1 }
 0x462   :  { %v5881_v16 = vpop.f32.mrf.mxu0  ;;  %v5916_v25 = vpop.f32.mrf.mxu1 }
 0x463   :  { %v5882_v56 = vadd.f32 %v5881_v16, %v5880_v34  ;;  %v5917_v57 = vadd.f32 %v5916_v25, %v5915_v29 }
 0x465   :  { %v4676_v21 = vadd.f32 %v5882_v56, %v4539_v61 }
 0x467   :  { %v4811_v7 = vadd.f32 %v5917_v57, %v4676_v21 }
 0x482   :  { %v5950_v10 = vpop.f32.mrf.mxu0  ;;  %v5985_v18 = vpop.f32.mrf.mxu1 }
 0x484   :  { %v5951_v15 = vpop.f32.mrf.mxu0  ;;  %v5986_v1 = vpop.f32.mrf.mxu1 }
 0x485   :  { %v5952_v45 = vadd.f32 %v5951_v15, %v5950_v10  ;;  %v5987_v46 = vadd.f32 %v5986_v1, %v5985_v18 }
 0x487   :  { %v4946_v14 = vadd.f32 %v5952_v45, %v4811_v7 }
 0x489   :  { %v5081_v38 = vadd.f32 %v5987_v46, %v4946_v14 }
 0x4a3   :  { %v6020_v26 = vpop.f32.mrf.mxu0 }
 0x4a5   :  { %v6021_v53 = vpop.f32.mrf.mxu0 }
 0x4a6   :  { %v6022_v40 = vadd.f32 %v6021_v53, %v6020_v26 }
 0x4a8   :  { %v5216_v33 = vadd.f32 %v6022_v40, %v5081_v38 }
 0x4aa   :  { %v5224_v3 = vadd.f32 %v5777_v55, %v5216_v33 }
 0x4ac   :  { %5225 = vst [vmem:[#allocation7] sm:$0x3] %v5224_v3 }
 0x4ad   :  { %6100 = shalt.err (!%p6097_p4)
}
 0x4ae   :  { %5235 = dma.vmem_to_hbm [thread:$0]  %s5233_s0, 32, %s9338_s7, [#allocation8]  }
 0x4af   :  { %6109 = dma.done.wait [#allocation8], 32  }
 0x4b0   :  { %6110 = vsyncadd [#allocation8], 4294967264 }
 0x4b1   :  { %5239 = vsyncpa [#allocation8], 1 }

</bundles_post_ra>
